<compile_context>
chip_gen: v7x
topology: tpu7x:2x2x1
jax: 0.10.0
libtpu: 0.0.40
codegen_flags: <defaults>
</compile_context>

<pallas_src>
import jax
import jax.numpy as jnp
import numpy as np
from jax.experimental import pallas as pl
from jax.experimental.pallas import tpu as pltpu


# ----------------------------- Pallas kernel -------------------------------

def siren_mlp_kernel(h0_ref,
                     w1_ref, b1_ref,
                     w2_ref, b2_ref,
                     w3a_ref, w3b_ref, b3_ref,
                     w4_ref, b4_ref,
                     wo_ref, bo_ref,
                     out_ref):
    """Activations are (features, batch_tile) f32; weights are (out, in) f32."""
    f32 = jnp.float32

    # (tile, D0) block -> lane-dense (D0, tile). XLU has slack; this is free.
    h0 = h0_ref[...].T

    def sine(w_ref, x, b_ref):
        z = jnp.dot(w_ref[...], x, preferred_element_type=f32) + b_ref[...]
        return jnp.sin(z)                                   # (out_feat, tile)

    # firstlayers[0]: SineLayer(D0 -> H), is_first (init-only difference)
    h = sine(w1_ref, h0, b1_ref)
    # firstlayers[1]: SineLayer(H -> H)
    h = sine(w2_ref, h, b2_ref)
    # secondlayers[0]: skip -> sin(W3a @ h1 + W3b @ h0 + b3); split dots keep
    # the extra work on the idle MXU and avoid a concat/copy of activations.
    z = (jnp.dot(w3a_ref[...], h, preferred_element_type=f32)
         + jnp.dot(w3b_ref[...], h0, preferred_element_type=f32)
         + b3_ref[...])
    h = jnp.sin(z)
    # secondlayers[1]: SineLayer(H -> H)
    h = sine(w4_ref, h, b4_ref)
    # output_layer: SineLayer(H -> out_dim), lane-dense store
    out_ref[...] = sine(wo_ref, h, bo_ref)


def siren_mlp_pallas(h0, params, *, tile_n=8192):
    """h0: (N, D0) f32 coordinate features. Returns (N, out_dim) f32."""
    N, D0 = h0.shape
    out_dim = params["wo"].shape[1]

    # Lane-dense batch tile: multiple of 128, clamped to the padded batch, and
    # clamped so the grid has >= 2 tiles whenever possible (v7x has 2 TCs).
    tile_n = max(128, (int(tile_n) // 128) * 128)
    n_up128 = ((N + 127) // 128) * 128
    tile = min(tile_n, n_up128)
    if n_up128 >= 256:
        tile = min(tile, max(128, (n_up128 // 2 // 128) * 128))
    num_tiles = pl.cdiv(n_up128, tile)
    n_pad = num_tiles * tile

    # h0 stays (N, D0) in HBM (no wrapper transpose); only row-pad if needed.
    if n_pad != N:
        h0 = jnp.pad(h0, ((0, n_pad - N), (0, 0)))

    f32 = jnp.float32
    # Kernel-layout parameters: transposed (out, in) weights, (out, 1) biases.
    w1t = params["w1"].T.astype(f32)          # (H, D0)
    w2t = params["w2"].T.astype(f32)          # (H, H)
    w3at = params["w3a"].T.astype(f32)        # (H, H)
    w3bt = params["w3b"].T.astype(f32)        # (H, D0)
    w4t = params["w4"].T.astype(f32)          # (H, H)
    wot = params["wo"].T.astype(f32)          # (out_dim, H)
    b1t = params["b1"].T.astype(f32)          # (H, 1)
    b2t = params["b2"].T.astype(f32)
    b3t = params["b3"].T.astype(f32)
    b4t = params["b4"].T.astype(f32)
    bot = params["bo"].T.astype(f32)          # (out_dim, 1)

    def full_block(arr):
        # Full-array block for (tiny) weights/biases, resident across the grid.
        return pl.BlockSpec(arr.shape, lambda i: (0, 0))

    grid = (num_tiles,)
    in_specs = [
        pl.BlockSpec((tile, D0), lambda i: (i, 0)),          # h0 batch tile
        full_block(w1t), full_block(b1t),
        full_block(w2t), full_block(b2t),
        full_block(w3at), full_block(w3bt), full_block(b3t),
        full_block(w4t), full_block(b4t),
        full_block(wot), full_block(bot),
    ]
    out_specs = pl.BlockSpec((out_dim, tile), lambda i: (0, i))

    out_t = pl.pallas_call(
        siren_mlp_kernel,
        out_shape=jax.ShapeDtypeStruct((out_dim, n_pad), jnp.float32),
        grid_spec=pltpu.PrefetchScalarGridSpec(
            num_scalar_prefetch=0,
            grid=grid,
            in_specs=in_specs,
            out_specs=out_specs,
        ),
        compiler_params=pltpu.CompilerParams(
            dimension_semantics=("parallel",),
            vmem_limit_bytes=32 * 1024 * 1024,
        ),
    )(h0,
      w1t, b1t, w2t, b2t, w3at, w3bt, b3t, w4t, b4t, wot, bot)

    return out_t[:, :N].T                                    # (N, out_dim)


# ------------------------------ glue / params ------------------------------

def init_params(key, *, hidden_dim=32, embedding_dim=3, out_dim=2,
                omega_0=30.0, num_x_coords=320, num_y_coords=320):
    """Deterministic synthetic parameters mirroring Siren_skip_emb.__init__ shapes."""
    D0 = embedding_dim * 2 + 2  # coor_embedd_dim
    keys = jax.random.split(key, 16)

    def uniform(k, shape, lim):
        return jax.random.uniform(k, shape, jnp.float32, -lim, lim)

    # Embedding tables (padding_idx=0 -> row 0 zeroed).
    x_emb = jax.random.normal(keys[0], (num_x_coords, embedding_dim), jnp.float32)
    y_emb = jax.random.normal(keys[1], (num_y_coords, embedding_dim), jnp.float32)
    x_emb = x_emb.at[0].set(0.0)
    y_emb = y_emb.at[0].set(0.0)

    hid_lim = np.sqrt(6.0 / hidden_dim) / omega_0

    params = dict(
        x_emb=x_emb,
        y_emb=y_emb,
        # firstlayers[0]: is_first=True -> U(-1/in, 1/in) * omega_0
        w1=uniform(keys[2], (D0, hidden_dim), 1.0 / D0) * omega_0,
        b1=uniform(keys[3], (1, hidden_dim), 1.0 / np.sqrt(D0)),
        # firstlayers[1]
        w2=uniform(keys[4], (hidden_dim, hidden_dim), hid_lim),
        b2=uniform(keys[5], (1, hidden_dim), 1.0 / np.sqrt(hidden_dim)),
        # secondlayers[0]: in = hidden + D0, split for the skip matmul
        w3a=uniform(keys[6], (hidden_dim, hidden_dim),
                    np.sqrt(6.0 / (D0 + hidden_dim)) / omega_0),
        w3b=uniform(keys[7], (D0, hidden_dim),
                    np.sqrt(6.0 / (D0 + hidden_dim)) / omega_0),
        b3=uniform(keys[8], (1, hidden_dim), 1.0 / np.sqrt(D0 + hidden_dim)),
        # secondlayers[1]
        w4=uniform(keys[9], (hidden_dim, hidden_dim), hid_lim),
        b4=uniform(keys[10], (1, hidden_dim), 1.0 / np.sqrt(hidden_dim)),
        # output layer
        wo=uniform(keys[11], (hidden_dim, out_dim), hid_lim),
        bo=uniform(keys[12], (1, out_dim), 1.0 / np.sqrt(hidden_dim)),
    )
    return params


def coor_embedding_fwd(coords, x_emb, y_emb):
    """coor_embedding.forward (gather glue, plain JAX)."""
    kx = jnp.take(x_emb, coords[:, 0].astype(jnp.int32), axis=0)   # (N, E)
    ky = jnp.take(y_emb, coords[:, 1].astype(jnp.int32), axis=0)   # (N, E)
    return jnp.concatenate([kx, ky, coords[:, 2:]], axis=1)        # (N, 2E+2)


def siren_skip_emb_forward(coords, params):
    h0 = coor_embedding_fwd(coords, params["x_emb"], params["y_emb"])
    return siren_mlp_pallas(h0, params)


def siren_skip_emb_reference(coords, params):
    """Pure-JAX f32 reference of Siren_skip_emb.forward."""
    h0 = coor_embedding_fwd(coords, params["x_emb"], params["y_emb"])

    def lin(x, w, b):
        return jnp.dot(x, w, preferred_element_type=jnp.float32,
                       precision=jax.lax.Precision.HIGHEST) + b

    h = jnp.sin(lin(h0, params["w1"], params["b1"]))
    h = jnp.sin(lin(h, params["w2"], params["b2"]))
    h2 = jnp.concatenate([h, h0], axis=-1)
    w3 = jnp.concatenate([params["w3a"], params["w3b"]], axis=0)
    h = jnp.sin(lin(h2, w3, params["b3"]))
    h = jnp.sin(lin(h, params["w4"], params["b4"]))
    return jnp.sin(lin(h, params["wo"], params["bo"]))


# ---------------------------------- main ------------------------------------

if __name__ == "__main__":
    key = jax.random.PRNGKey(0)
    pkey, ckey1, ckey2 = jax.random.split(key, 3)

    hidden_dim = 32
    embedding_dim = 3
    out_dim = 2
    N = 300  # not a multiple of 128 -> exercises the padding / multi-tile path

    params = init_params(pkey, hidden_dim=hidden_dim,
                         embedding_dim=embedding_dim, out_dim=out_dim)

    # coords: (N, 4): [:,0] kx index, [:,1] ky index (integer-valued floats),
    # [:,2:] extra continuous coordinate features (matches coors_kspace[:, 2:]).
    kx_idx = jax.random.randint(ckey1, (N, 1), 0, 320).astype(jnp.float32)
    ky_idx = jax.random.randint(ckey2, (N, 1), 0, 320).astype(jnp.float32)
    extra = jax.random.normal(jax.random.fold_in(key, 7), (N, 2), jnp.float32)
    coords = jnp.concatenate([kx_idx, ky_idx, extra], axis=1)

    forward = jax.jit(siren_skip_emb_forward)
    out = jax.block_until_ready(forward(coords, params))

    ref = jax.block_until_ready(siren_skip_emb_reference(coords, params))
    np.testing.assert_allclose(np.asarray(out), np.asarray(ref),
                               rtol=2e-2, atol=2e-2)

    assert out.shape == (N, out_dim)
    print("KERNEL_OK")
</pallas_src>

<mosaic_0001>
module attributes {stable_mosaic.version = 11 : i64} {
  func.func @siren_mlp_kernel(%arg0: i32, %arg1: memref<128x8xf32, #tpu.memory_space<vmem>>, %arg2: memref<32x8xf32, #tpu.memory_space<vmem>>, %arg3: memref<32x1xf32, #tpu.memory_space<vmem>>, %arg4: memref<32x32xf32, #tpu.memory_space<vmem>>, %arg5: memref<32x1xf32, #tpu.memory_space<vmem>>, %arg6: memref<32x32xf32, #tpu.memory_space<vmem>>, %arg7: memref<32x8xf32, #tpu.memory_space<vmem>>, %arg8: memref<32x1xf32, #tpu.memory_space<vmem>>, %arg9: memref<32x32xf32, #tpu.memory_space<vmem>>, %arg10: memref<32x1xf32, #tpu.memory_space<vmem>>, %arg11: memref<2x32xf32, #tpu.memory_space<vmem>>, %arg12: memref<2x1xf32, #tpu.memory_space<vmem>>, %arg13: memref<2x128xf32, #tpu.memory_space<vmem>>) attributes {dimension_semantics = [#tpu.dimension_semantics<parallel>], iteration_bounds = array<i64: 3>, scalar_prefetch = 0 : i64, scratch_operands = 0 : i64, tpu.core_type = #tpu.core_type<tc>, window_params = [{transform_indices = @transform_0, window_bounds = array<i64: 128, 8>}, {pipeline_mode = #tpu.pipeline_mode<synchronous>, transform_indices = @transform_1, window_bounds = array<i64: 32, 8>}, {pipeline_mode = #tpu.pipeline_mode<synchronous>, transform_indices = @transform_2, window_bounds = array<i64: 32, 1>}, {pipeline_mode = #tpu.pipeline_mode<synchronous>, transform_indices = @transform_3, window_bounds = array<i64: 32, 32>}, {pipeline_mode = #tpu.pipeline_mode<synchronous>, transform_indices = @transform_4, window_bounds = array<i64: 32, 1>}, {pipeline_mode = #tpu.pipeline_mode<synchronous>, transform_indices = @transform_5, window_bounds = array<i64: 32, 32>}, {pipeline_mode = #tpu.pipeline_mode<synchronous>, transform_indices = @transform_6, window_bounds = array<i64: 32, 8>}, {pipeline_mode = #tpu.pipeline_mode<synchronous>, transform_indices = @transform_7, window_bounds = array<i64: 32, 1>}, {pipeline_mode = #tpu.pipeline_mode<synchronous>, transform_indices = @transform_8, window_bounds = array<i64: 32, 32>}, {pipeline_mode = #tpu.pipeline_mode<synchronous>, transform_indices = @transform_9, window_bounds = array<i64: 32, 1>}, {pipeline_mode = #tpu.pipeline_mode<synchronous>, transform_indices = @transform_10, window_bounds = array<i64: 2, 32>}, {pipeline_mode = #tpu.pipeline_mode<synchronous>, transform_indices = @transform_11, window_bounds = array<i64: 2, 1>}, {transform_indices = @transform_12, window_bounds = array<i64: 2, 128>}]} {
    %c0 = arith.constant 0 : index
    %c0_0 = arith.constant 0 : index
    %0 = vector.load %arg1[%c0, %c0_0] : memref<128x8xf32, #tpu.memory_space<vmem>>, vector<128x8xf32>
    %1 = tpu.transpose %0, [1, 0] : vector<128x8xf32> -> vector<8x128xf32>
    %c0_1 = arith.constant 0 : index
    %c0_2 = arith.constant 0 : index
    %2 = vector.load %arg2[%c0_1, %c0_2] : memref<32x8xf32, #tpu.memory_space<vmem>>, vector<32x8xf32>
    %cst = arith.constant dense<0.000000e+00> : vector<32x128xf32>
    %3 = tpu.matmul %2, %1, %cst {dimension_numbers = #tpu.dot_dimension_numbers<[1], [0], [0], [1], [0, 0, 1, 1], [], []>} : vector<32x8xf32>, vector<8x128xf32>, vector<32x128xf32> -> vector<32x128xf32>
    %c0_3 = arith.constant 0 : index
    %c0_4 = arith.constant 0 : index
    %4 = vector.load %arg3[%c0_3, %c0_4] : memref<32x1xf32, #tpu.memory_space<vmem>>, vector<32x1xf32>
    %5 = vector.broadcast %4 : vector<32x1xf32> to vector<32x128xf32>
    %6 = arith.addf %3, %5 : vector<32x128xf32>
    %7 = math.sin %6 : vector<32x128xf32>
    %c0_5 = arith.constant 0 : index
    %c0_6 = arith.constant 0 : index
    %8 = vector.load %arg4[%c0_5, %c0_6] : memref<32x32xf32, #tpu.memory_space<vmem>>, vector<32x32xf32>
    %cst_7 = arith.constant dense<0.000000e+00> : vector<32x128xf32>
    %9 = tpu.matmul %8, %7, %cst_7 {dimension_numbers = #tpu.dot_dimension_numbers<[1], [0], [0], [1], [0, 0, 1, 1], [], []>} : vector<32x32xf32>, vector<32x128xf32>, vector<32x128xf32> -> vector<32x128xf32>
    %c0_8 = arith.constant 0 : index
    %c0_9 = arith.constant 0 : index
    %10 = vector.load %arg5[%c0_8, %c0_9] : memref<32x1xf32, #tpu.memory_space<vmem>>, vector<32x1xf32>
    %11 = vector.broadcast %10 : vector<32x1xf32> to vector<32x128xf32>
    %12 = arith.addf %9, %11 : vector<32x128xf32>
    %13 = math.sin %12 : vector<32x128xf32>
    %c0_10 = arith.constant 0 : index
    %c0_11 = arith.constant 0 : index
    %14 = vector.load %arg6[%c0_10, %c0_11] : memref<32x32xf32, #tpu.memory_space<vmem>>, vector<32x32xf32>
    %cst_12 = arith.constant dense<0.000000e+00> : vector<32x128xf32>
    %15 = tpu.matmul %14, %13, %cst_12 {dimension_numbers = #tpu.dot_dimension_numbers<[1], [0], [0], [1], [0, 0, 1, 1], [], []>} : vector<32x32xf32>, vector<32x128xf32>, vector<32x128xf32> -> vector<32x128xf32>
    %c0_13 = arith.constant 0 : index
    %c0_14 = arith.constant 0 : index
    %16 = vector.load %arg7[%c0_13, %c0_14] : memref<32x8xf32, #tpu.memory_space<vmem>>, vector<32x8xf32>
    %cst_15 = arith.constant dense<0.000000e+00> : vector<32x128xf32>
    %17 = tpu.matmul %16, %1, %cst_15 {dimension_numbers = #tpu.dot_dimension_numbers<[1], [0], [0], [1], [0, 0, 1, 1], [], []>} : vector<32x8xf32>, vector<8x128xf32>, vector<32x128xf32> -> vector<32x128xf32>
    %18 = arith.addf %15, %17 : vector<32x128xf32>
    %c0_16 = arith.constant 0 : index
    %c0_17 = arith.constant 0 : index
    %19 = vector.load %arg8[%c0_16, %c0_17] : memref<32x1xf32, #tpu.memory_space<vmem>>, vector<32x1xf32>
    %20 = vector.broadcast %19 : vector<32x1xf32> to vector<32x128xf32>
    %21 = arith.addf %18, %20 : vector<32x128xf32>
    %22 = math.sin %21 : vector<32x128xf32>
    %c0_18 = arith.constant 0 : index
    %c0_19 = arith.constant 0 : index
    %23 = vector.load %arg9[%c0_18, %c0_19] : memref<32x32xf32, #tpu.memory_space<vmem>>, vector<32x32xf32>
    %cst_20 = arith.constant dense<0.000000e+00> : vector<32x128xf32>
    %24 = tpu.matmul %23, %22, %cst_20 {dimension_numbers = #tpu.dot_dimension_numbers<[1], [0], [0], [1], [0, 0, 1, 1], [], []>} : vector<32x32xf32>, vector<32x128xf32>, vector<32x128xf32> -> vector<32x128xf32>
    %c0_21 = arith.constant 0 : index
    %c0_22 = arith.constant 0 : index
    %25 = vector.load %arg10[%c0_21, %c0_22] : memref<32x1xf32, #tpu.memory_space<vmem>>, vector<32x1xf32>
    %26 = vector.broadcast %25 : vector<32x1xf32> to vector<32x128xf32>
    %27 = arith.addf %24, %26 : vector<32x128xf32>
    %28 = math.sin %27 : vector<32x128xf32>
    %c0_23 = arith.constant 0 : index
    %c0_24 = arith.constant 0 : index
    %29 = vector.load %arg11[%c0_23, %c0_24] : memref<2x32xf32, #tpu.memory_space<vmem>>, vector<2x32xf32>
    %cst_25 = arith.constant dense<0.000000e+00> : vector<2x128xf32>
    %30 = tpu.matmul %29, %28, %cst_25 {dimension_numbers = #tpu.dot_dimension_numbers<[1], [0], [0], [1], [0, 0, 1, 1], [], []>} : vector<2x32xf32>, vector<32x128xf32>, vector<2x128xf32> -> vector<2x128xf32>
    %c0_26 = arith.constant 0 : index
    %c0_27 = arith.constant 0 : index
    %31 = vector.load %arg12[%c0_26, %c0_27] : memref<2x1xf32, #tpu.memory_space<vmem>>, vector<2x1xf32>
    %32 = vector.broadcast %31 : vector<2x1xf32> to vector<2x128xf32>
    %33 = arith.addf %30, %32 : vector<2x128xf32>
    %34 = math.sin %33 : vector<2x128xf32>
    %c0_28 = arith.constant 0 : index
    %c0_29 = arith.constant 0 : index
    %35 = vector.load %arg13[%c0_28, %c0_29] : memref<2x128xf32, #tpu.memory_space<vmem>>, vector<2x128xf32>
    tpu.vector_store %arg13[%c0_28, %c0_29], %34 {strides = array<i32>} : memref<2x128xf32, #tpu.memory_space<vmem>>, vector<2x128xf32>,
    return
  }
  func.func @transform_0(%arg0: i32) -> (i32, i32) {
    %c0_i32 = arith.constant 0 : i32
    %c0_i32_0 = arith.constant 0 : i32
    return %arg0, %c0_i32 : i32, i32
  }
  func.func @transform_1(%arg0: i32) -> (i32, i32) {
    %c0_i32 = arith.constant 0 : i32
    %c0_i32_0 = arith.constant 0 : i32
    %c0_i32_1 = arith.constant 0 : i32
    return %c0_i32, %c0_i32_0 : i32, i32
  }
  func.func @transform_2(%arg0: i32) -> (i32, i32) {
    %c0_i32 = arith.constant 0 : i32
    %c0_i32_0 = arith.constant 0 : i32
    %c0_i32_1 = arith.constant 0 : i32
    return %c0_i32, %c0_i32_0 : i32, i32
  }
  func.func @transform_3(%arg0: i32) -> (i32, i32) {
    %c0_i32 = arith.constant 0 : i32
    %c0_i32_0 = arith.constant 0 : i32
    %c0_i32_1 = arith.constant 0 : i32
    return %c0_i32, %c0_i32_0 : i32, i32
  }
  func.func @transform_4(%arg0: i32) -> (i32, i32) {
    %c0_i32 = arith.constant 0 : i32
    %c0_i32_0 = arith.constant 0 : i32
    %c0_i32_1 = arith.constant 0 : i32
    return %c0_i32, %c0_i32_0 : i32, i32
  }
  func.func @transform_5(%arg0: i32) -> (i32, i32) {
    %c0_i32 = arith.constant 0 : i32
    %c0_i32_0 = arith.constant 0 : i32
    %c0_i32_1 = arith.constant 0 : i32
    return %c0_i32, %c0_i32_0 : i32, i32
  }
  func.func @transform_6(%arg0: i32) -> (i32, i32) {
    %c0_i32 = arith.constant 0 : i32
    %c0_i32_0 = arith.constant 0 : i32
    %c0_i32_1 = arith.constant 0 : i32
    return %c0_i32, %c0_i32_0 : i32, i32
  }
  func.func @transform_7(%arg0: i32) -> (i32, i32) {
    %c0_i32 = arith.constant 0 : i32
    %c0_i32_0 = arith.constant 0 : i32
    %c0_i32_1 = arith.constant 0 : i32
    return %c0_i32, %c0_i32_0 : i32, i32
  }
  func.func @transform_8(%arg0: i32) -> (i32, i32) {
    %c0_i32 = arith.constant 0 : i32
    %c0_i32_0 = arith.constant 0 : i32
    %c0_i32_1 = arith.constant 0 : i32
    return %c0_i32, %c0_i32_0 : i32, i32
  }
  func.func @transform_9(%arg0: i32) -> (i32, i32) {
    %c0_i32 = arith.constant 0 : i32
    %c0_i32_0 = arith.constant 0 : i32
    %c0_i32_1 = arith.constant 0 : i32
    return %c0_i32, %c0_i32_0 : i32, i32
  }
  func.func @transform_10(%arg0: i32) -> (i32, i32) {
    %c0_i32 = arith.constant 0 : i32
    %c0_i32_0 = arith.constant 0 : i32
    %c0_i32_1 = arith.constant 0 : i32
    return %c0_i32, %c0_i32_0 : i32, i32
  }
  func.func @transform_11(%arg0: i32) -> (i32, i32) {
    %c0_i32 = arith.constant 0 : i32
    %c0_i32_0 = arith.constant 0 : i32
    %c0_i32_1 = arith.constant 0 : i32
    return %c0_i32, %c0_i32_0 : i32, i32
  }
  func.func @transform_12(%arg0: i32) -> (i32, i32) {
    %c0_i32 = arith.constant 0 : i32
    %c0_i32_0 = arith.constant 0 : i32
    return %c0_i32, %arg0 : i32, i32
  }
}

</mosaic_0001>

<bundles_post_ra>
// kernel: siren_skip_emb_forward.1
= control target key start
LH: loop header
LB: loop body
LE: loop exit
PB: predicated region body
PF: predicated region fallthrough
CT: control target
= control target key end

     0   :  { %s3685_s21 = smov 0   ;;  %s5162_s0 = inlined_call_operand.vmem [shape: f32[384,8], index: 0, kind: input, shape index: {}]   ;;  %s5163_s1 = inlined_call_operand.vmem [shape: f32[32,8], index: 1, kind: input, shape index: {}]   ;;  %s5164_s2 = inlined_call_operand.vmem [shape: f32[32,1], index: 2, kind: input, shape index: {}]   ;;  %s5165_s3 = inlined_call_operand.vmem [shape: f32[32,32], index: 3, kind: input, shape index: {}]   ;;  %s5166_s4 = inlined_call_operand.vmem [shape: f32[32,1], index: 4, kind: input, shape index: {}]   ;;  %s5167_s5 = inlined_call_operand.vmem [shape: f32[32,32], index: 5, kind: input, shape index: {}]   ;;  %s5168_s6 = inlined_call_operand.vmem [shape: f32[32,8], index: 6, kind: input, shape index: {}]   ;;  %s5169_s7 = inlined_call_operand.vmem [shape: f32[32,1], index: 7, kind: input, shape index: {}]   ;;  %s5170_s8 = inlined_call_operand.vmem [shape: f32[32,32], index: 8, kind: input, shape index: {}]   ;;  %s5171_s9 = inlined_call_operand.vmem [shape: f32[32,1], index: 9, kind: input, shape index: {}]   ;;  %s5172_s10 = inlined_call_operand.vmem [shape: f32[2,32], index: 10, kind: input, shape index: {}]   ;;  %s5173_s11 = inlined_call_operand.vmem [shape: f32[2,1], index: 11, kind: input, shape index: {}]   ;;  %s5174_s12 = inlined_call_operand.vmem [shape: f32[2,384], index: 12, kind: output, shape index: {}]  }
   0x1 LB: > { %s3691_s22 = sadd.s32 4294967295, %s3608_s21   ;;  %p2991_p0 = scmp.ge.s32.totalorder %s3608_s21, 1  ;;  %s3608_s21 = sphi %s3685_s21, %s22_s21  }
   0x2   : > { %p363_p1 = scmp.lt.s32.totalorder %s3608_s21, 4 }
   0x4   : > { %p364_p2 = pnand %p2991_p0, %p363_p1 }
   0x5   : > { %s2992_s23 = sshll.u32 (!%p364_p2), %s3691_s22, 4  ;;  %vm458_vm0 = vcmask (!%p364_p2), 64512   ;;  %v430_v0 = vld [vmem:[%s5163_s1] sm:$0xff] (!%p364_p2)  ;;  %v3610_v1 = vmov (!%p364_p2), 0   ;;  %v436_v3 = vld [vmem:[%s5164_s2 + $0x10] sm:$0xff] (!%p364_p2)  ;;  %v435_v4 = vld [vmem:[%s5164_s2 + $0x8] sm:$0xff] (!%p364_p2) }
   0x6   : > { %367 = sbr.rel (%p364_p2) target bundleno = 1781 (0x6f5), region = 68  ;;  %p405_p3 = scmp.lt.s32.totalorder (!%p364_p2), %s2992_s23, 47  ;;  %3219 = vmatprep.mubr.msk.f32.mxu0 (!%p364_p2), %vm458_vm0, %v430_v0  ;;  %3532 = vset.pattern.permute.xlu0 (!%p364_p2), %v3610_v1  ;;  %v434_v2 = vld [vmem:[%s5164_s2] sm:$0xff] (!%p364_p2)  ;;  %v437_v5 = vld [vmem:[%s5164_s2 + $0x18] sm:$0xff] (!%p364_p2)  ;;  %vm3719_vm1 = vmpackc.low (!%p364_p2), %vm458_vm0, %vm458_vm0  ;;  %vm1048_vm14 = vcmask (!%p364_p2), 261120  }
   0x7   : > { %440 = vperm.xlu0 (!%p364_p2), %3532, %v434_v2   ;;  %3533 = vset.pattern.permute.xlu1 (!%p364_p2), %v3610_v1  ;;  %v1024_v7 = vld [vmem:[%s5166_s4] sm:$0xff] (!%p364_p2)  ;;  %v1025_v13 = vld [vmem:[%s5166_s4 + $0x8] sm:$0xff] (!%p364_p2)  ;;  %v1026_v15 = vld [vmem:[%s5166_s4 + $0x10] sm:$0xff] (!%p364_p2)  ;;  %p410_p4 = scmp.lt.s32.totalorder (!%p364_p2), %s3691_s22, 2 }
   0x8   : > { %450 = vperm.xlu1 (!%p364_p2), %3533, %v436_v3   ;;  %v1027_v16 = vld [vmem:[%s5166_s4 + $0x18] sm:$0xff] (!%p364_p2)  ;;  %v1764_v19 = vld [vmem:[%s5169_s7] sm:$0xff] (!%p364_p2)  ;;  %v1765_v21 = vld [vmem:[%s5169_s7 + $0x8] sm:$0xff] (!%p364_p2) }
   0x9   : > { %v1766_v22 = vld [vmem:[%s5169_s7 + $0x10] sm:$0xff] (!%p364_p2)  ;;  %v1767_v23 = vld [vmem:[%s5169_s7 + $0x18] sm:$0xff] (!%p364_p2)  ;;  %v2212_v26 = vld [vmem:[%s5171_s9] sm:$0xff] (!%p364_p2) }
   0xa   : > { %v2213_v28 = vld [vmem:[%s5171_s9 + $0x8] sm:$0xff] (!%p364_p2)  ;;  %v2214_v29 = vld [vmem:[%s5171_s9 + $0x10] sm:$0xff] (!%p364_p2)  ;;  %v2215_v30 = vld [vmem:[%s5171_s9 + $0x18] sm:$0xff] (!%p364_p2) }
   0xb   : > { %445 = vperm.xlu0 (!%p364_p2), %3532, %v435_v4   ;;  %v2750_v33 = vld [vmem:[%s5173_s11] sm:$0x3] (!%p364_p2)  ;;  %v431_v44 = vld [vmem:[%s5163_s1 + $0x8] sm:$0xff] (!%p364_p2)  ;;  %v432_v45 = vld [vmem:[%s5163_s1 + $0x10] sm:$0xff] (!%p364_p2) }
   0xc   : > { %455 = vperm.xlu1 (!%p364_p2), %3533, %v437_v5   ;;  %v433_v46 = vld [vmem:[%s5163_s1 + $0x18] sm:$0xff] (!%p364_p2) }
   0xd   : > { %s5202_s23 = smov (!%p405_p3, %s2992_s23), 47  ;;  %v1569_v6 = vld [vmem:[%s5168_s6 + $0x18] sm:$0xff]  ;;  %s5204_s22 = smov (!%p410_p4, %s3691_s22), 2 }
   0xe   : > { %s2993_s16 = sshll.u32 %s5202_s23, 3  ;;  %s2994_s25 = sshll.u32 %s5204_s22, 1 }
   0xf   : > { %s3715_s19 = scalar_lea.vmem %s5162_s0, %s2993_s16  ;;  %1030 = vperm.xlu0 %3532, %v1024_v7   ;;  %s413_s28 = scalar_lea.vmem %s5174_s12, %s2994_s25 }
  0x10   : > { %v414_v8 = vld [vmem:[%s3715_s19] sm:$0xff]  ;;  %v415_v9 = vld [vmem:[%s3715_s19 + $0x8] sm:$0xff]  ;;  %v416_v10 = vld [vmem:[%s3715_s19 + $0x10] sm:$0xff]  ;;  %1035 = vperm.xlu1 %3533, %v1025_v13  }
  0x11   : > { %v3729_v11 = vpack.c.bf16 %v415_v9, %v414_v8  ;;  %v417_v12 = vld [vmem:[%s3715_s19 + $0x18] sm:$0xff]  ;;  %v418_v17 = vld [vmem:[%s3715_s19 + $0x20] sm:$0xff]  ;;  %v419_v18 = vld [vmem:[%s3715_s19 + $0x28] sm:$0xff] }
  0x12   : > { %v3735_v14 = vpack.c.bf16 %v417_v12, %v416_v10  ;;  %v3757_v20 = vpack.c.bf16 %v419_v18, %v418_v17  ;;  %v420_v24 = vld [vmem:[%s3715_s19 + $0x30] sm:$0xff]  ;;  %v421_v25 = vld [vmem:[%s3715_s19 + $0x38] sm:$0xff]  ;;  %v422_v31 = vld [vmem:[%s3715_s19 + $0x40] sm:$0xff] }
  0x13   : > { %3318 = vmatprep.subr.msk.bf16.mxu0 %vm3719_vm1, %v3729_v11  ;;  %1040 = vperm.xlu0 %3532, %v1026_v15   ;;  %v3779_v27 = vpack.c.bf16 %v421_v25, %v420_v24  ;;  %v423_v32 = vld [vmem:[%s3715_s19 + $0x48] sm:$0xff]  ;;  %v424_v35 = vld [vmem:[%s3715_s19 + $0x50] sm:$0xff]  ;;  %v425_v36 = vld [vmem:[%s3715_s19 + $0x58] sm:$0xff] }
  0x14   : > { %3321 = vmatpush3.bf16.xpose.msk.msra.mxu0 %vm3719_vm1, %v3729_v11  ;;  %1045 = vperm.xlu1 %3533, %v1027_v16   ;;  %v3801_v34 = vpack.c.bf16 %v423_v32, %v422_v31  ;;  %v3811_v37 = vpack.c.bf16 %v425_v36, %v424_v35  ;;  %v426_v38 = vld [vmem:[%s3715_s19 + $0x60] sm:$0xff]  ;;  %v427_v39 = vld [vmem:[%s3715_s19 + $0x68] sm:$0xff]  ;;  %v428_v41 = vld [vmem:[%s3715_s19 + $0x70] sm:$0xff]  ;;  %v3611_v31 = vmov 683565275  }
  0x15   : > { %3324 = vmatprep.subr.msk.bf16.mxu0 %vm3719_vm1, %v3735_v14  ;;  %v3821_v40 = vpack.c.bf16 %v427_v39, %v426_v38  ;;  %v429_v42 = vld [vmem:[%s3715_s19 + $0x78] sm:$0xff]  ;;  %v3613_v38 = vmov 2131351028  }
  0x16   : > { %v3831_v43 = vpack.c.bf16 %v429_v42, %v428_v41  ;;  %v3614_v41 = vmov 2102212464  }
  0x17   : > { %1770 = vperm.xlu0 %3532, %v1764_v19  }
  0x18   : > { %1775 = vperm.xlu1 %3533, %v1765_v21  }
  0x1b   : > { %1780 = vperm.xlu0 %3532, %v1766_v22  }
  0x1c   : > { %3327 = vmatpush3.bf16.xpose.msk.msra.mxu0 %vm3719_vm1, %v3735_v14  ;;  %1785 = vperm.xlu1 %3533, %v1767_v23  }
  0x1d   : > { %3330 = vmatprep.subr.msk.bf16.mxu0 %vm3719_vm1, %v3757_v20 }
  0x1f   : > { %2218 = vperm.xlu0 %3532, %v2212_v26  }
  0x20   : > { %2223 = vperm.xlu1 %3533, %v2213_v28  }
  0x23   : > { %2228 = vperm.xlu0 %3532, %v2214_v29  }
  0x24   : > { %3333 = vmatpush3.bf16.xpose.msk.msra.mxu0 %vm3719_vm1, %v3757_v20  ;;  %2233 = vperm.xlu1 %3533, %v2215_v30  }
  0x25   : > { %3336 = vmatprep.subr.msk.bf16.mxu0 %vm3719_vm1, %v3779_v27 }
  0x27   : > { %2753 = vperm.xlu0 %3532, %v2750_v33   ;;  %v3612_v33 = vmov 2475754826  }
  0x2c   : > { %3339 = vmatpush3.bf16.xpose.msk.msra.mxu0 %vm3719_vm1, %v3779_v27 }
  0x2d   : > { %3342 = vmatprep.subr.msk.bf16.mxu0 %vm3719_vm1, %v3801_v34 }
  0x34   : > { %3345 = vmatpush3.bf16.xpose.msk.msra.mxu0 %vm3719_vm1, %v3801_v34 }
  0x35   : > { %3348 = vmatprep.subr.msk.bf16.mxu0 %vm3719_vm1, %v3811_v37 }
  0x3c   : > { %3351 = vmatpush3.bf16.xpose.msk.msra.mxu0 %vm3719_vm1, %v3811_v37 }
  0x3d   : > { %3354 = vmatprep.subr.msk.bf16.mxu0 %vm3719_vm1, %v3821_v40 }
  0x44   : > { %3357 = vmatpush3.bf16.xpose.msk.msra.mxu0 %vm3719_vm1, %v3821_v40 }
  0x45   : > { %3360 = vmatprep.subr.msk.bf16.mxu0 %vm3719_vm1, %v3831_v43 }
  0x4c   : > { %3363 = vmatpush3.bf16.xpose.msk.msra.mxu0 %vm3719_vm1, %v3831_v43 }
  0x53   : > { %3220 = vmatmul.mubr.msk.f32.vlgmr.msra.gmra.mrb[0].mxu0 %vm458_vm0, %v431_v44  ;;  %v3615_v44 = vmov 920167782  }
  0x54   : > { %3222 = vmatprep.mubr.msk.f32.mxu0 %vm458_vm0, %v432_v45 }
  0x57   : > { %3223 = vmatmul.mubr.msk.f32.gmra.mrb[2].mxu0 %vm458_vm0, %v433_v46 }
  0x86   : > { %v441_v47 = vpop.permute.xlu0 %440 }
  0x87   : > { %v451_v48 = vpop.permute.xlu1 %450 }
  0x8a   : > { %v446_v49 = vpop.permute.xlu0 %445 }
  0x8b   : > { %v456_v56 = vpop.permute.xlu1 %455 }
 0x126   : > { %v3221_v50 = vpop.f32.mrb[0].mxu0 }
 0x127   : > { %v3854_v51 = vadd.f32 %v3221_v50, %v446_v49  ;;  %v585_v52 = vpop.f32.mrb[1].mxu0 }
 0x128   : > { %v3856_v53 = vadd.f32 %v585_v52, %v441_v47  ;;  %v3616_v52 = vmov 1326507024  }
 0x129   : > { %v708_v54 = vand.u32 2147483647, %v3854_v51  ;;  %v711_v55 = vand.u32 2139095040, %v3854_v51 }
 0x12a   : > { %v604_v57 = vand.u32 2147483647, %v3856_v53  ;;  %v607_v58 = vand.u32 2139095040, %v3856_v53  ;;  %v3224_v59 = vpop.f32.mrb[2].mxu0 }
 0x12b   : > { %v712_v60 = vshrl.u32 %v711_v55, 23  ;;  %v715_v61 = vand.u32 8388607, %v708_v54  ;;  %v3864_v62 = vadd.f32 %v3224_v59, %v456_v56  ;;  %v595_v63 = vpop.f32.mrb[3].mxu0 }
 0x12c   : > { %v608_v0 = vshrl.u32 %v607_v58, 23  ;;  %v611_v1 = vand.u32 8388607, %v604_v57  ;;  %v3869_v4 = vadd.f32 %v595_v63, %v451_v48 }
 0x12d   : > { %v3019_v2 = vadd.s32 4294967169, %v712_v60  ;;  %v916_v3 = vand.u32 2147483647, %v3864_v62  ;;  %v716_v5 = vor.u32 8388608, %v715_v61  ;;  %v919_v8 = vand.u32 2139095040, %v3864_v62 }
 0x12e   : > { %v3015_v7 = vadd.s32 4294967169, %v608_v0  ;;  %v612_v10 = vor.u32 8388608, %v611_v1  ;;  %v812_v16 = vand.u32 2147483647, %v3869_v4  ;;  %v815_v29 = vand.u32 2139095040, %v3869_v4 }
 0x12f   : > { %v718_v9 = vadd.s32 1, %v3019_v2  ;;  %v920_v13 = vshrl.u32 %v919_v8, 23  ;;  %v3874_v15 = vand.u32 8388607, %v916_v3  ;;  %v3877_v18 = vshll.u32 %v716_v5, 8 }
 0x130   : > { %v614_v12 = vadd.s32 1, %v3015_v7  ;;  %v3879_v24 = vshll.u32 %v612_v10, 8 }
 0x131   : > { %vm719_vm2 = vcmp.gt.s32.totalorder %v718_v9, 0  ;;  %v3027_v19 = vadd.s32 4294967169, %v920_v13  ;;  %v924_v28 = vor.u32 8388608, %v3874_v15 }
 0x132   : > { %v720_v17 = vsel %vm719_vm2, %v718_v9, 0  ;;  %vm615_vm3 = vcmp.gt.s32.totalorder %v614_v12, 0 }
 0x133   : > { %v721_v21 = vshrl.u32 %v720_v17, 5  ;;  %v722_v22 = vand.u32 31, %v720_v17  ;;  %v616_v23 = vsel %vm615_vm3, %v614_v12, 0  ;;  %v3887_v36 = vadd.s32 1, %v3027_v19 }
 0x134   : > { %v3881_v25 = vshrl.u32 %v616_v23, 5  ;;  %v618_v26 = vand.u32 31, %v616_v23 }
 0x135   : > { %v723_v30 = vsub.s32 32, %v722_v22  ;;  %v725_v32 = vshll.u32 %v3611_v31, %v722_v22  ;;  %v728_v35 = vshll.u32 %v3612_v33, %v722_v22  ;;  %v731_v39 = vshll.u32 %v3613_v38, %v722_v22 }
 0x136   : > { %v734_v42 = vshll.u32 %v3614_v41, %v722_v22  ;;  %v737_v45 = vshll.u32 %v3615_v44, %v722_v22  ;;  %vm740_vm4 = vcmp.lt.s32.totalorder %v721_v21, 1  ;;  %vm741_vm5 = vcmp.lt.s32.totalorder %v721_v21, 2 }
 0x137   : > { %v726_v46 = vshrl.u32 %v3612_v33, %v723_v30  ;;  %v729_v47 = vshrl.u32 %v3613_v38, %v723_v30  ;;  %v732_v48 = vshrl.u32 %v3614_v41, %v723_v30  ;;  %v724_v49 = vshrl.u32 %v3611_v31, %v723_v30 }
 0x138   : > { %v735_v50 = vshrl.u32 %v3615_v44, %v723_v30  ;;  %v738_v55 = vshrl.u32 %v3616_v52, %v723_v30  ;;  %vm742_vm6 = vcmp.lt.s32.totalorder %v721_v21, 3  ;;  %v619_v60 = vsub.s32 32, %v618_v26 }
 0x139   : > { %v727_v56 = vor.u32 %v726_v46, %v725_v32  ;;  %v730_v58 = vor.u32 %v729_v47, %v728_v35  ;;  %v733_v59 = vor.u32 %v732_v48, %v731_v39  ;;  %vm743_vm7 = vcmp.lt.s32.totalorder %v721_v21, 4 }
 0x13a   : > { %v736_v61 = vor.u32 %v735_v50, %v734_v42  ;;  %v739_v63 = vor.u32 %v738_v55, %v737_v45  ;;  %v621_v0 = vshll.u32 %v3611_v31, %v618_v26  ;;  %v624_v12 = vshll.u32 %v3612_v33, %v618_v26 }
 0x13b   : > { %v744_v1 = vsel %vm740_vm4, %v724_v49, %v727_v56  ;;  %v745_v2 = vsel %vm743_vm7, %v733_v59, 2102212464  ;;  %v748_v5 = vsel %vm740_vm4, %v727_v56, %v730_v58  ;;  %v752_v7 = vsel %vm740_vm4, %v730_v58, %v733_v59 }
 0x13c   : > { %v746_v8 = vsel %vm742_vm6, %v730_v58, %v745_v2  ;;  %v749_v9 = vsel %vm743_vm7, %v736_v61, 920167782  ;;  %v753_v10 = vsel %vm743_vm7, %v739_v63, 1326507024  ;;  %v620_v19 = vshrl.u32 %v3611_v31, %v619_v60 }
 0x13d   : > { %v750_v13 = vsel %vm742_vm6, %v733_v59, %v749_v9  ;;  %v754_v17 = vsel %vm742_vm6, %v736_v61, %v753_v10  ;;  %v622_v22 = vshrl.u32 %v3612_v33, %v619_v60  ;;  %v747_v23 = vsel %vm741_vm5, %v744_v1, %v746_v8 }
 0x13e   : > { %v751_v30 = vsel %vm741_vm5, %v748_v5, %v750_v13  ;;  %v755_v32 = vsel %vm741_vm5, %v752_v7, %v754_v17  ;;  %v625_v35 = vshrl.u32 %v3613_v38, %v619_v60  ;;  %v627_v49 = vshll.u32 %v3613_v38, %v618_v26 }
 0x13f   : > { %v3913_v39 = vmul.u32.u64.low %v3877_v18, %v755_v32  ;;  %v3914_v42 = vmul.u32.u64.high %v3877_v18, %v755_v32, %v3913_v39  ;;  %v3917_v45 = vmul.u32.u64.low %v3877_v18, %v751_v30  ;;  %v3918_v46 = vmul.u32.u64.high %v3877_v18, %v751_v30, %v3917_v45 }
 0x140   : > { %v623_v47 = vor.u32 %v622_v22, %v621_v0  ;;  %v626_v48 = vor.u32 %v625_v35, %v624_v12  ;;  %v628_v50 = vshrl.u32 %v3614_v41, %v619_v60  ;;  %v763_v21 = vmul.u32 %v3877_v18, %v747_v23 }
 0x141   : > { %v630_v55 = vshll.u32 %v3614_v41, %v618_v26  ;;  %v631_v56 = vshrl.u32 %v3615_v44, %v619_v60  ;;  %v634_v58 = vshrl.u32 %v3616_v52, %v619_v60  ;;  %v633_v61 = vshll.u32 %v3615_v44, %v618_v26 }
 0x142   : > { %v629_v59 = vor.u32 %v628_v50, %v627_v49  ;;  %vm636_vm8 = vcmp.lt.s32.totalorder %v3881_v25, 1  ;;  %vm637_vm9 = vcmp.lt.s32.totalorder %v3881_v25, 2  ;;  %vm765_vm10 = vc.u32 %v3914_v42, %v3917_v45 }
 0x143   : > { %v766_v63 = vadd.s32 1, %v3918_v46  ;;  %v632_v0 = vor.u32 %v631_v56, %v630_v55  ;;  %vm638_vm11 = vcmp.lt.s32.totalorder %v3881_v25, 3  ;;  %v635_v18 = vor.u32 %v634_v58, %v633_v61 }
 0x144   : > { %vm639_vm12 = vcmp.lt.s32.totalorder %v3881_v25, 4  ;;  %v640_v1 = vsel %vm636_vm8, %v620_v19, %v623_v47  ;;  %v644_v60 = vsel %vm636_vm8, %v623_v47, %v626_v48  ;;  %v648_v7 = vsel %vm636_vm8, %v626_v48, %v629_v59 }
 0x145   : > { %v767_v2 = vsel %vm765_vm10, %v766_v63, %v3918_v46  ;;  %v641_v26 = vsel %vm639_vm12, %v629_v59, 2102212464  ;;  %v645_v5 = vsel %vm639_vm12, %v632_v0, 920167782  ;;  %v649_v12 = vsel %vm639_vm12, %v635_v18, 1326507024 }
 0x146   : > { %v768_v8 = vadd.s32 %v767_v2, %v763_v21  ;;  %v642_v9 = vsel %vm638_vm11, %v626_v48, %v641_v26  ;;  %v646_v10 = vsel %vm638_vm11, %v629_v59, %v645_v5  ;;  %v650_v22 = vsel %vm638_vm11, %v632_v0, %v649_v12  ;;  %v1020_v48 = vld [vmem:[%s5165_s3] sm:$0xff] }
 0x147   : > { %v643_v13 = vsel %vm637_vm9, %v640_v1, %v642_v9  ;;  %v647_v17 = vsel %vm637_vm9, %v644_v60, %v646_v10  ;;  %vm927_vm13 = vcmp.gt.s32.totalorder %v3887_v36, 0  ;;  %v651_v23 = vsel %vm637_vm9, %v648_v7, %v650_v22  ;;  %3233 = vmatprep.mubr.msk.f32.mxu1 %vm1048_vm14, %v1020_v48 }
 0x148   : > { %v769_v19 = vadd.s32 536870912, %v768_v8  ;;  %v3944_v30 = vmul.u32.u64.low %v3879_v24, %v647_v17  ;;  %v3945_v32 = vmul.u32.u64.high %v3879_v24, %v647_v17, %v3944_v30  ;;  %v928_v46 = vsel %vm927_vm13, %v3887_v36, 0 }
 0x149   : > { %v3949_v35 = vmul.u32.u64.low %v3879_v24, %v651_v23  ;;  %v3950_v39 = vmul.u32.u64.high %v3879_v24, %v651_v23, %v3949_v35  ;;  %v816_v47 = vshrl.u32 %v815_v29, 23  ;;  %v930_v49 = vand.u32 31, %v928_v46 }
 0x14a   : > { %v3958_v25 = vshrl.u32 %v769_v19, 30  ;;  %v659_v50 = vmul.u32 %v3879_v24, %v643_v13  ;;  %v3963_v21 = vshll.u32 %v924_v28, 8  ;;  %v3967_v55 = vand.u32 8388607, %v812_v16 }
 0x14b   : > { %v662_v36 = vadd.s32 1, %v3945_v32  ;;  %v929_v56 = vshrl.u32 %v928_v46, 5  ;;  %v931_v58 = vsub.s32 32, %v930_v49  ;;  %vm661_vm15 = vc.u32 %v3950_v39, %v3944_v30 }
 0x14c   : > { %v771_v29 = vshll.u32 %v3958_v25, 30  ;;  %v933_v15 = vshll.u32 %v3611_v31, %v930_v49  ;;  %v936_v24 = vshll.u32 %v3612_v33, %v930_v49  ;;  %v3023_v28 = vadd.s32 4294967169, %v816_v47 }
 0x14d   : > { %v663_v61 = vsel %vm661_vm15, %v662_v36, %v3945_v32  ;;  %v934_v63 = vshrl.u32 %v3612_v33, %v931_v58  ;;  %v939_v0 = vshll.u32 %v3613_v38, %v930_v49  ;;  %v937_v1 = vshrl.u32 %v3613_v38, %v931_v58 }
 0x14e   : > { %v3976_v59 = vsub.s32 %v768_v8, %v771_v29  ;;  %v664_v18 = vadd.s32 %v663_v61, %v659_v50  ;;  %v940_v60 = vshrl.u32 %v3614_v41, %v931_v58  ;;  %v942_v2 = vshll.u32 %v3614_v41, %v930_v49 }
 0x14f   : > { %v935_v5 = vor.u32 %v934_v63, %v933_v15  ;;  %v943_v7 = vshrl.u32 %v3615_v44, %v931_v58  ;;  %v945_v8 = vshll.u32 %v3615_v44, %v930_v49  ;;  %v938_v10 = vor.u32 %v937_v1, %v936_v24 }
 0x150   : > { %v774_v26 = vsub.s32 0, %v3976_v59  ;;  %v665_v9 = vadd.s32 536870912, %v664_v18  ;;  %v941_v12 = vor.u32 %v940_v60, %v939_v0  ;;  %v946_v13 = vshrl.u32 %v3616_v52, %v931_v58 }
 0x151   : > { %v932_v22 = vshrl.u32 %v3611_v31, %v931_v58  ;;  %v944_v19 = vor.u32 %v943_v7, %v942_v2  ;;  %vm948_vm2 = vcmp.lt.s32.totalorder %v929_v56, 1  ;;  %vm950_vm3 = vcmp.lt.s32.totalorder %v929_v56, 3 }
 0x152   : > { %v3020_v17 = vmin.u32 %v774_v26, %v3976_v59  ;;  %v666_v23 = vshrl.u32 %v665_v9, 30  ;;  %v947_v32 = vor.u32 %v946_v13, %v945_v8  ;;  %vm951_vm4 = vcmp.lt.s32.totalorder %v929_v56, 4 }
 0x153   : > { %v952_v46 = vsel %vm948_vm2, %v932_v22, %v935_v5  ;;  %v953_v47 = vsel %vm951_vm4, %v941_v12, 2102212464  ;;  %v956_v48 = vsel %vm948_vm2, %v935_v5, %v938_v10  ;;  %v957_v29 = vsel %vm951_vm4, %v944_v19, 920167782 }
 0x154   : > { %v776_v35 = vclz %v3020_v17  ;;  %v667_v49 = vshll.u32 %v666_v23, 30  ;;  %v954_v50 = vsel %vm950_vm3, %v938_v10, %v953_v47  ;;  %v960_v36 = vsel %vm948_vm2, %v938_v10, %v941_v12 }
 0x155   : > { %vm949_vm5 = vcmp.lt.s32.totalorder %v929_v56, 2  ;;  %v958_v24 = vsel %vm950_vm3, %v941_v12, %v957_v29  ;;  %v961_v58 = vsel %vm951_vm4, %v947_v32, 1326507024  ;;  %v822_v12 = vadd.s32 1, %v3023_v28 }
 0x156   : > { %v3021_v15 = vadd.s32 4294967294, %v776_v35  ;;  %v3992_v61 = vsub.s32 %v664_v18, %v667_v49  ;;  %v955_v63 = vsel %vm949_vm5, %v952_v46, %v954_v50  ;;  %v959_v0 = vsel %vm949_vm5, %v956_v48, %v958_v24 }
 0x157   : > { %v962_v1 = vsel %vm950_vm3, %v944_v19, %v961_v58  ;;  %v3996_v2 = vmul.u32.u64.low %v3963_v21, %v959_v0  ;;  %v3997_v26 = vmul.u32.u64.high %v3963_v21, %v959_v0, %v3996_v2  ;;  %v764_v18 = vadd.s32 %v3917_v45, %v3914_v42 }
 0x158   : > { %vm3022_vm6 = vcmp.lt.s32.totalorder %v3021_v15, 0  ;;  %v963_v60 = vsel %vm949_vm5, %v960_v36, %v962_v1  ;;  %v670_v7 = vsub.s32 0, %v3992_v61  ;;  %v971_v22 = vmul.u32 %v3963_v21, %v955_v63 }
 0x159   : > { %v779_v5 = vsel %vm3022_vm6, 0, %v3021_v15  ;;  %v4002_v8 = vmul.u32.u64.low %v3963_v21, %v963_v60  ;;  %v4003_v9 = vmul.u32.u64.high %v3963_v21, %v963_v60, %v4002_v8  ;;  %v820_v19 = vor.u32 8388608, %v3967_v55 }
 0x15a   : > { %v780_v10 = vsub.s32 32, %v779_v5  ;;  %v784_v56 = vsub.s32 4294967266, %v779_v5  ;;  %v781_v13 = vshll.u32 %v3976_v59, %v779_v5  ;;  %v3016_v17 = vmin.u32 %v670_v7, %v3992_v61 }
 0x15b   : > { %v974_v46 = vadd.s32 1, %v3997_v26  ;;  %vm823_vm7 = vcmp.gt.s32.totalorder %v822_v12, 0  ;;  %vm973_vm8 = vc.u32 %v4003_v9, %v3996_v2  ;;  %v690_v45 = vsub.s32 4, %v666_v23 }
 0x15c   : > { %v782_v32 = vshrl.u32 %v764_v18, %v780_v10  ;;  %v785_v35 = vadd.s32 127, %v784_v56  ;;  %v672_v47 = vclz %v3016_v17  ;;  %v824_v42 = vsel %vm823_vm7, %v822_v12, 0 }
 0x15d   : > { %vm606_vm9 = vcmp.lt.s32.totalorder %v3856_v53, 0  ;;  %v975_v59 = vsel %vm973_vm8, %v974_v46, %v3997_v26  ;;  %v660_v21 = vadd.s32 %v3944_v30, %v3950_v39  ;;  %v826_v50 = vand.u32 31, %v824_v42 }
 0x15e   : > { %v783_v28 = vor.u32 %v782_v32, %v781_v13  ;;  %v786_v48 = vshll.u32 %v785_v35, 23  ;;  %v3017_v55 = vadd.s32 4294967294, %v672_v47  ;;  %v976_v49 = vadd.s32 %v975_v59, %v971_v22 }
 0x15f   : > { %v4018_v36 = vshrl.u32 %v824_v42, 5  ;;  %v4020_v15 = vshll.u32 %v820_v19, 8  ;;  %v794_v24 = vsub.s32 4, %v3958_v25  ;;  %v827_v63 = vsub.s32 32, %v826_v50 }
 0x160   : > { %v787_v29 = vor.u32 4788187, %v786_v48  ;;  %vm3018_vm10 = vcmp.lt.s32.totalorder %v3017_v55, 0  ;;  %v977_v58 = vadd.s32 536870912, %v976_v49  ;;  %v4025_v0 = vsel %vm606_vm9, %v690_v45, %v666_v23 }
 0x161   : > { %v790_v60 = vcvt.s32.f32 %v783_v28  ;;  %v675_v30 = vsel %vm3018_vm10, 0, %v3017_v55  ;;  %v829_v39 = vshll.u32 %v3611_v31, %v826_v50  ;;  %v832_v8 = vshll.u32 %v3612_v33, %v826_v50 }
 0x162   : > { %v788_v1 = vand.u32 2147483647, %v787_v29  ;;  %v676_v26 = vsub.s32 32, %v675_v30  ;;  %v680_v5 = vsub.s32 4294967266, %v675_v30  ;;  %v4028_v7 = vshrl.u32 %v977_v58, 30 }
 0x163   : > { %v677_v10 = vshll.u32 %v3992_v61, %v675_v30  ;;  %v830_v56 = vshrl.u32 %v3612_v33, %v827_v63  ;;  %v833_v12 = vshrl.u32 %v3613_v38, %v827_v63  ;;  %vm710_vm11 = vcmp.lt.s32.totalorder %v3854_v51, 0 }
 0x164   : > { %v791_v18 = vmul.f32 %v790_v60, %v788_v1  ;;  %v678_v23 = vshrl.u32 %v660_v21, %v676_v26  ;;  %v681_v13 = vadd.s32 127, %v680_v5  ;;  %v979_v17 = vshll.u32 %v4028_v7, 30 }
 0x165   : > { %v836_v22 = vshrl.u32 %v3614_v41, %v827_v63  ;;  %v831_v19 = vor.u32 %v830_v56, %v829_v39  ;;  %v834_v32 = vor.u32 %v833_v12, %v832_v8  ;;  %v835_v35 = vshll.u32 %v3613_v38, %v826_v50 }
 0x166   : > { %vm844_vm12 = vcmp.lt.s32.totalorder %v4018_v36, 1  ;;  %v679_v46 = vor.u32 %v678_v23, %v677_v10  ;;  %v682_v61 = vshll.u32 %v681_v13, 23  ;;  %v4039_v47 = vsub.s32 %v976_v49, %v979_v17 }
 0x167   : > { %v838_v42 = vshll.u32 %v3614_v41, %v826_v50  ;;  %v837_v45 = vor.u32 %v836_v22, %v835_v35  ;;  %v839_v28 = vshrl.u32 %v3615_v44, %v827_v63  ;;  %v841_v48 = vshll.u32 %v3615_v44, %v826_v50 }
 0x168   : > { %v842_v59 = vshrl.u32 %v3616_v52, %v827_v63  ;;  %v792_v21 = vxor.u32 2147483648, %v791_v18  ;;  %v683_v55 = vor.u32 4788187, %v682_v61  ;;  %v982_v29 = vsub.s32 0, %v4039_v47 }
 0x169   : > { %v828_v58 = vshrl.u32 %v3611_v31, %v827_v63  ;;  %v686_v1 = vcvt.s32.f32 %v679_v46  ;;  %v840_v60 = vor.u32 %v839_v28, %v838_v42  ;;  %vm846_vm13 = vcmp.lt.s32.totalorder %v4018_v36, 3 }
 0x16a   : > { %v843_v30 = vor.u32 %v842_v59, %v841_v48  ;;  %v684_v49 = vand.u32 2147483647, %v683_v55  ;;  %v3028_v39 = vmin.u32 %v982_v29, %v4039_v47  ;;  %vm847_vm15 = vcmp.lt.s32.totalorder %v4018_v36, 4 }
 0x16b   : > { %v852_v50 = vsel %vm844_vm12, %v831_v19, %v834_v32  ;;  %v849_v26 = vsel %vm847_vm15, %v837_v45, 2102212464  ;;  %v853_v5 = vsel %vm847_vm15, %v840_v60, 920167782  ;;  %v856_v8 = vsel %vm844_vm12, %v834_v32, %v837_v45 }
 0x16c   : > { %v857_v10 = vsel %vm847_vm15, %v843_v30, 1326507024  ;;  %v687_v63 = vmul.f32 %v686_v1, %v684_v49  ;;  %v984_v56 = vclz %v3028_v39  ;;  %vm845_vm2 = vcmp.lt.s32.totalorder %v4018_v36, 2 }
 0x16d   : > { %v854_v12 = vsel %vm846_vm13, %v837_v45, %v853_v5  ;;  %v793_v23 = vsel %vm710_vm11, %v792_v21, %v791_v18  ;;  %v848_v13 = vsel %vm844_vm12, %v828_v58, %v831_v19  ;;  %v858_v22 = vsel %vm846_vm13, %v840_v60, %v857_v10 }
 0x16e   : > { %v855_v17 = vsel %vm845_vm2, %v852_v50, %v854_v12  ;;  %v688_v35 = vxor.u32 2147483648, %v687_v63  ;;  %v3029_v46 = vadd.s32 4294967294, %v984_v56  ;;  %v850_v61 = vsel %vm846_vm13, %v834_v32, %v849_v26 }
 0x16f   : > { %v859_v42 = vsel %vm845_vm2, %v856_v8, %v858_v22  ;;  %v4074_v19 = vmul.u32.u64.low %v4020_v15, %v855_v17  ;;  %v4075_v28 = vmul.u32.u64.high %v4020_v15, %v855_v17, %v4074_v19  ;;  %vm4082_vm4 = vcmp.le.f32.partialorder %v604_v57, 0.7853982 }
 0x170   : > { %v4070_v45 = vmul.u32.u64.low %v4020_v15, %v859_v42  ;;  %v4071_v18 = vmul.u32.u64.high %v4020_v15, %v859_v42, %v4070_v45  ;;  %v689_v48 = vsel %vm606_vm9, %v688_v35, %v687_v63  ;;  %vm3030_vm3 = vcmp.lt.s32.totalorder %v3029_v46, 0 }
 0x171   : > { %v987_v59 = vsel %vm3030_vm3, 0, %v3029_v46  ;;  %v851_v21 = vsel %vm845_vm2, %v848_v13, %v850_v61  ;;  %v692_v55 = vsel %vm4082_vm4, %v3856_v53, %v689_v48  ;;  %vm4093_vm5 = vcmp.le.f32.partialorder %v708_v54, 0.7853982 }
 0x172   : > { %v992_v58 = vsub.s32 4294967266, %v987_v59  ;;  %v693_v57 = vsel %vm4082_vm4, 0, %v4025_v0  ;;  %3534 = vcosq.f32 %v692_v55  ;;  %v796_v36 = vsel %vm4093_vm5, %v3854_v51, %v793_v23 }
 0x173   : > { %vm869_vm6 = vc.u32 %v4071_v18, %v4074_v19  ;;  %v870_v1 = vadd.s32 1, %v4075_v28  ;;  %3536 = vsinq.f32 %v692_v55  ;;  %v795_v54 = vsel %vm710_vm11, %v794_v24, %v3958_v25 }
 0x174   : > { %v988_v60 = vsub.s32 32, %v987_v59  ;;  %v993_v30 = vadd.s32 127, %v992_v58  ;;  %v867_v0 = vmul.u32 %v4020_v15, %v851_v21  ;;  %v972_v49 = vadd.s32 %v3996_v2, %v4003_v9 }
 0x175   : > { %v871_v39 = vsel %vm869_vm6, %v870_v1, %v4075_v28  ;;  %v697_v50 = vadd.s32 3, %v693_v57  ;;  %3538 = vcosq.f32 %v796_v36  ;;  %v797_v8 = vsel %vm4093_vm5, 0, %v795_v54 }
 0x176   : > { %v994_v26 = vshll.u32 %v993_v30, 23  ;;  %v872_v5 = vadd.s32 %v871_v39, %v867_v0  ;;  %3540 = vsinq.f32 %v796_v36  ;;  %v990_v10 = vshrl.u32 %v972_v49, %v988_v60 }
 0x177   : > { %v801_v25 = vadd.s32 3, %v797_v8  ;;  %v989_v24 = vshll.u32 %v4039_v47, %v987_v59  ;;  %v698_v12 = vand.u32 3, %v697_v50  ;;  %vm696_vm10 = vweird.f32 %v3856_v53 }
 0x178   : > { %v873_v63 = vadd.s32 536870912, %v872_v5  ;;  %v995_v56 = vor.u32 4788187, %v994_v26  ;;  %vm800_vm15 = vweird.f32 %v3854_v51  ;;  %vm918_vm3 = vcmp.lt.s32.totalorder %v3864_v62, 0 }
 0x179   : > { %v991_v9 = vor.u32 %v990_v10, %v989_v24  ;;  %v802_v22 = vand.u32 3, %v801_v25  ;;  %vm703_vm7 = vcmp.eq.s32.totalorder %v698_v12, 2  ;;  %vm699_vm8 = vcmp.lt.s32.totalorder %v698_v12, 2 }
 0x17a   : > { %v4118_v15 = vshrl.u32 %v873_v63, 30  ;;  %v996_v35 = vand.u32 2147483647, %v995_v56  ;;  %vm700_vm9 = vcmp.eq.s32.totalorder %v698_v12, 0  ;;  %v868_v26 = vadd.s32 %v4074_v19, %v4071_v18 }
 0x17b   : > { %v998_v28 = vcvt.s32.f32 %v991_v9  ;;  %vm807_vm11 = vcmp.eq.s32.totalorder %v802_v22, 2  ;;  %vm804_vm12 = vcmp.eq.s32.totalorder %v802_v22, 0  ;;  %vm803_vm13 = vcmp.lt.s32.totalorder %v802_v22, 2 }
 0x17c   : > { %v3535_v2 = vpop.eup %3534  ;;  %v875_v23 = vshll.u32 %v4118_v15, 30  ;;  %vm4130_vm4 = vcmp.le.f32.partialorder %v916_v3, 0.7853982  ;;  %vm814_vm5 = vcmp.lt.s32.totalorder %v3869_v4, 0  ;;  %vm813_vm6 = vcmp.le.f32.partialorder %v812_v16, 0.7853982 }
 0x17d   : > { %v3537_v13 = vpop.eup %3536  ;;  %v704_v17 = vxor.u32 2147483648, %v3535_v2  ;;  %v999_v29 = vmul.f32 %v998_v28, %v996_v35 }
 0x17e   : > { %v876_v46 = vsub.s32 %v872_v5, %v875_v23  ;;  %v701_v61 = vxor.u32 2147483648, %v3537_v13 }
 0x17f   : > { %v3539_v42 = vpop.eup %3538  ;;  %v705_v45 = vsel %vm703_vm7, %v704_v17, %v3537_v13  ;;  %v1000_v0 = vxor.u32 2147483648, %v999_v29  ;;  %v898_v13 = vsub.s32 4, %v4118_v15 }
 0x180   : > { %v3541_v47 = vpop.eup %3540  ;;  %v878_v48 = vsub.s32 0, %v876_v46  ;;  %v702_v32 = vsel %vm700_vm9, %v3535_v2, %v701_v61  ;;  %v808_v59 = vxor.u32 2147483648, %v3539_v42  ;;  %v1002_v2 = vsub.s32 4, %v4028_v7 }
 0x181   : > { %v706_v21 = vsel %vm699_vm8, %v702_v32, %v705_v45  ;;  %v805_v55 = vxor.u32 2147483648, %v3541_v47  ;;  %v1001_v50 = vsel %vm918_vm3, %v1000_v0, %v999_v29 }
 0x182   : > { %v3024_v58 = vmin.u32 %v878_v48, %v876_v46  ;;  %v809_v57 = vsel %vm807_vm11, %v808_v59, %v3541_v47  ;;  %v707_v36 = vsel %vm696_vm10, nan, %v706_v21  ;;  %v1004_v24 = vsel %vm4130_vm4, %v3864_v62, %v1001_v50 }
 0x183   : > { %v806_v1 = vsel %vm804_vm12, %v3539_v42, %v805_v55  ;;  %3542 = vcosq.f32 %v1004_v24  ;;  %v1003_v3 = vsel %vm918_vm3, %v1002_v2, %v4028_v7  ;;  %vm1008_vm12 = vweird.f32 %v3864_v62  ;;  %v1023_v62 = vld [vmem:[%s5165_s3 + $0x18] sm:$0xff] }
 0x184   : > { %v880_v54 = vclz %v3024_v58  ;;  %v810_v60 = vsel %vm803_vm13, %v806_v1, %v809_v57  ;;  %3544 = vsinq.f32 %v1004_v24  ;;  %v1005_v22 = vsel %vm4130_vm4, 0, %v1003_v3 }
 0x185   : > { %v811_v30 = vsel %vm800_vm15, nan, %v810_v60  ;;  %v1009_v42 = vadd.s32 3, %v1005_v22  ;;  %vm904_vm15 = vweird.f32 %v3869_v4 }
 0x186   : > { %v3025_v49 = vadd.s32 4294967294, %v880_v54  ;;  %v3364_v39 = vpack.c.bf16 %v811_v30, %v707_v36 }
 0x187   : > { %v1010_v28 = vand.u32 3, %v1009_v42 }
 0x188   : > { %vm3026_vm2 = vcmp.lt.s32.totalorder %v3025_v49, 0  ;;  %3365 = vmatprep.subr.bf16.mxu1 %v3364_v39 }
 0x189   : > { %v883_v53 = vsel %vm3026_vm2, 0, %v3025_v49  ;;  %3367 = vmatpush3.bf16.msra.mxu1 %v3364_v39  ;;  %vm1012_vm7 = vcmp.eq.s32.totalorder %v1010_v28, 0  ;;  %vm1015_vm8 = vcmp.eq.s32.totalorder %v1010_v28, 2  ;;  %vm1011_vm9 = vcmp.lt.s32.totalorder %v1010_v28, 2  ;;  %v1021_v39 = vld [vmem:[%s5165_s3 + $0x8] sm:$0xff] }
 0x18a   : > { %v884_v5 = vsub.s32 32, %v883_v53  ;;  %v888_v8 = vsub.s32 4294967266, %v883_v53  ;;  %v885_v10 = vshll.u32 %v876_v46, %v883_v53  ;;  %v899_v46 = vsel %vm814_vm5, %v898_v13, %v4118_v15  ;;  %v1022_v53 = vld [vmem:[%s5165_s3 + $0x10] sm:$0xff] }
 0x18b   : > { %v901_v47 = vsel %vm813_vm6, 0, %v899_v46 }
 0x18c   : > { %v886_v63 = vshrl.u32 %v868_v26, %v884_v5  ;;  %v889_v25 = vadd.s32 127, %v888_v8  ;;  %v905_v48 = vadd.s32 3, %v901_v47 }
 0x18d   : > { %v3543_v45 = vpop.eup %3542 }
 0x18e   : > { %v887_v56 = vor.u32 %v886_v63, %v885_v10  ;;  %v890_v12 = vshll.u32 %v889_v25, 23  ;;  %v3545_v7 = vpop.eup %3544  ;;  %v1016_v59 = vxor.u32 2147483648, %v3543_v45  ;;  %v906_v21 = vand.u32 3, %v905_v48 }
 0x18f   : > { %v1013_v32 = vxor.u32 2147483648, %v3545_v7 }
 0x190   : > { %v891_v18 = vor.u32 4788187, %v890_v12  ;;  %v894_v9 = vcvt.s32.f32 %v887_v56  ;;  %v1017_v16 = vsel %vm1015_vm8, %v1016_v59, %v3545_v7  ;;  %vm911_vm10 = vcmp.eq.s32.totalorder %v906_v21, 2 }
 0x191   : > { %v1014_v55 = vsel %vm1012_vm7, %v3543_v45, %v1013_v32  ;;  %vm908_vm11 = vcmp.eq.s32.totalorder %v906_v21, 0  ;;  %vm907_vm13 = vcmp.lt.s32.totalorder %v906_v21, 2  ;;  %v1562_v45 = vld [vmem:[%s5167_s5] sm:$0xff] }
 0x192   : > { %v892_v19 = vand.u32 2147483647, %v891_v18  ;;  %v1018_v57 = vsel %vm1011_vm9, %v1014_v55, %v1017_v16 }
 0x193   : > { %v1019_v60 = vsel %vm1008_vm12, nan, %v1018_v57 }
 0x194   : > { %v895_v23 = vmul.f32 %v894_v9, %v892_v19 }
 0x196   : > { %v896_v17 = vxor.u32 2147483648, %v895_v23 }
 0x198   : > { %v897_v35 = vsel %vm814_vm5, %v896_v17, %v895_v23 }
 0x199   : > { %v900_v61 = vsel %vm813_vm6, %v3869_v4, %v897_v35 }
 0x19a   : > { %3546 = vcosq.f32 %v900_v61 }
 0x19b   : > { %3548 = vsinq.f32 %v900_v61 }
 0x1a4   : > { %v3547_v29 = vpop.eup %3546 }
 0x1a5   : > { %v3549_v15 = vpop.eup %3548  ;;  %v912_v58 = vxor.u32 2147483648, %v3547_v29 }
 0x1a6   : > { %v909_v36 = vxor.u32 2147483648, %v3549_v15 }
 0x1a7   : > { %v913_v1 = vsel %vm911_vm10, %v912_v58, %v3549_v15 }
 0x1a8   : > { %v910_v54 = vsel %vm908_vm11, %v3547_v29, %v909_v36 }
 0x1a9   : > { %v914_v30 = vsel %vm907_vm13, %v910_v54, %v913_v1 }
 0x1aa   : > { %v915_v0 = vsel %vm904_vm15, nan, %v914_v30 }
 0x1ab   : > { %v3368_v49 = vpack.c.bf16 %v1019_v60, %v915_v0 }
 0x1ad   : > { %3369 = vmatprep.subr.bf16.mxu1 %v3368_v49 }
 0x1ae   : > { %3371 = vmatpush3.bf16.msra.mxu1 %v3368_v49 }
 0x1af   : > { %3374 = vmatprep.subr.msk.bf16.mxu1 %vm3719_vm1, %v3729_v11 }
 0x1b1   : > { %3234 = vmatmul.mubr.msk.f32.vlgmr.msra.gmra.mrb[0].mxu1 %vm1048_vm14, %v1021_v39 }
 0x1b2   : > { %3236 = vmatprep.mubr.msk.f32.mxu1 %vm1048_vm14, %v1022_v53 }
 0x1b5   : > { %3237 = vmatmul.mubr.msk.f32.gmra.mrb[2].mxu1 %vm1048_vm14, %v1023_v62 }
 0x1b7   : > { %3377 = vmatpush3.bf16.xpose.msk.msra.mxu1 %vm3719_vm1, %v3729_v11  ;;  %v1566_v11 = vld [vmem:[%s5168_s6] sm:$0xff] }
 0x1b8   : > { %3380 = vmatprep.subr.msk.bf16.mxu1 %vm3719_vm1, %v3735_v14  ;;  %3271 = vmatprep.mubr.msk.f32.mxu1 %vm458_vm0, %v1566_v11 }
 0x1bf   : > { %3383 = vmatpush3.bf16.xpose.msk.msra.mxu1 %vm3719_vm1, %v3735_v14  ;;  %v1567_v14 = vld [vmem:[%s5168_s6 + $0x8] sm:$0xff] }
 0x1c0   : > { %3386 = vmatprep.subr.msk.bf16.mxu1 %vm3719_vm1, %v3757_v20 }
 0x1c7   : > { %3389 = vmatpush3.bf16.xpose.msk.msra.mxu1 %vm3719_vm1, %v3757_v20  ;;  %v1568_v20 = vld [vmem:[%s5168_s6 + $0x10] sm:$0xff] }
 0x1c8   : > { %3392 = vmatprep.subr.msk.bf16.mxu1 %vm3719_vm1, %v3779_v27 }
 0x1cf   : > { %3395 = vmatpush3.bf16.xpose.msk.msra.mxu1 %vm3719_vm1, %v3779_v27  ;;  %v1036_v27 = vpop.permute.xlu1 %1035 }
 0x1d0   : > { %3398 = vmatprep.subr.msk.bf16.mxu1 %vm3719_vm1, %v3801_v34 }
 0x1d3   : > { %v1046_v5 = vpop.permute.xlu1 %1045 }
 0x1d7   : > { %3401 = vmatpush3.bf16.xpose.msk.msra.mxu1 %vm3719_vm1, %v3801_v34 }
 0x1d8   : > { %3404 = vmatprep.subr.msk.bf16.mxu1 %vm3719_vm1, %v3811_v37 }
 0x1df   : > { %3407 = vmatpush3.bf16.xpose.msk.msra.mxu1 %vm3719_vm1, %v3811_v37  ;;  %v1031_v37 = vpop.permute.xlu0 %1030 }
 0x1e0   : > { %3410 = vmatprep.subr.msk.bf16.mxu1 %vm3719_vm1, %v3821_v40 }
 0x1e3   : > { %v1041_v18 = vpop.permute.xlu0 %1040 }
 0x1e7   : > { %3413 = vmatpush3.bf16.xpose.msk.msra.mxu1 %vm3719_vm1, %v3821_v40 }
 0x1e8   : > { %3416 = vmatprep.subr.msk.bf16.mxu1 %vm3719_vm1, %v3831_v43 }
 0x1ef   : > { %3419 = vmatpush3.bf16.xpose.msk.msra.mxu1 %vm3719_vm1, %v3831_v43 }
 0x1f6   : > { %3272 = vmatmul.mubr.msk.f32.vlgmr.msra.gmra.mrb[4].mxu1 %vm458_vm0, %v1567_v14 }
 0x1f7   : > { %3274 = vmatprep.mubr.msk.f32.mxu1 %vm458_vm0, %v1568_v20 }
 0x1fa   : > { %3275 = vmatmul.mubr.msk.f32.gmra.mrb[6].mxu1 %vm458_vm0, %v1569_v6 }
 0x1fb   : > { %3285 = vmatprep.mubr.msk.f32.mxu1 %vm1048_vm14, %v1562_v45 }
 0x284   : > { %v3235_v34 = vpop.f32.mrb[0].mxu1 }
 0x285   : > { %v4227_v40 = vadd.f32 %v3235_v34, %v1036_v27  ;;  %v1127_v43 = vpop.f32.mrb[1].mxu1 }
 0x286   : > { %v4229_v4 = vadd.f32 %v1127_v43, %v1031_v37 }
 0x287   : > { %v1250_v50 = vand.u32 2147483647, %v4227_v40  ;;  %v1253_v26 = vand.u32 2139095040, %v4227_v40 }
 0x288   : > { %v1146_v8 = vand.u32 2147483647, %v4229_v4  ;;  %v1149_v51 = vand.u32 2139095040, %v4229_v4  ;;  %v3238_v10 = vpop.f32.mrb[2].mxu1 }
 0x289   : > { %v1254_v63 = vshrl.u32 %v1253_v26, 23  ;;  %v1257_v25 = vand.u32 8388607, %v1250_v50  ;;  %v4237_v24 = vadd.f32 %v3238_v10, %v1046_v5  ;;  %v1137_v56 = vpop.f32.mrb[3].mxu1 }
 0x28a   : > { %v1150_v12 = vshrl.u32 %v1149_v51, 23  ;;  %v1153_v2 = vand.u32 8388607, %v1146_v8  ;;  %v4243_v13 = vadd.f32 %v1137_v56, %v1041_v18 }
 0x28b   : > { %v3039_v19 = vadd.s32 4294967169, %v1254_v63  ;;  %v1458_v9 = vand.u32 2147483647, %v4237_v24  ;;  %v1461_v23 = vand.u32 2139095040, %v4237_v24  ;;  %v1258_v17 = vor.u32 8388608, %v1257_v25 }
 0x28c   : > { %v3035_v3 = vadd.s32 4294967169, %v1150_v12  ;;  %v1154_v35 = vor.u32 8388608, %v1153_v2  ;;  %v1354_v28 = vand.u32 2147483647, %v4243_v13 }
 0x28d   : > { %v1260_v22 = vadd.s32 1, %v3039_v19  ;;  %v1462_v61 = vshrl.u32 %v1461_v23, 23  ;;  %v4247_v42 = vand.u32 8388607, %v1458_v9  ;;  %v4254_v59 = vshll.u32 %v1258_v17, 8 }
 0x28e   : > { %v1156_v46 = vadd.s32 1, %v3035_v3  ;;  %v4258_v29 = vshll.u32 %v1154_v35, 8 }
 0x28f   : > { %vm1261_vm0 = vcmp.gt.s32.totalorder %v1260_v22, 0  ;;  %v3047_v47 = vadd.s32 4294967169, %v1462_v61  ;;  %v1466_v15 = vor.u32 8388608, %v4247_v42 }
 0x290   : > { %v1262_v7 = vsel %vm1261_vm0, %v1260_v22, 0  ;;  %vm1157_vm1 = vcmp.gt.s32.totalorder %v1156_v46, 0 }
 0x291   : > { %v1263_v48 = vshrl.u32 %v1262_v7, 5  ;;  %v1264_v32 = vand.u32 31, %v1262_v7  ;;  %v1158_v21 = vsel %vm1157_vm1, %v1156_v46, 0  ;;  %v4263_v1 = vadd.s32 1, %v3047_v47 }
 0x292   : > { %v4256_v55 = vshrl.u32 %v1158_v21, 5  ;;  %v1160_v16 = vand.u32 31, %v1158_v21 }
 0x293   : > { %v1265_v58 = vsub.s32 32, %v1264_v32  ;;  %v1267_v57 = vshll.u32 %v3611_v31, %v1264_v32  ;;  %v1270_v36 = vshll.u32 %v3612_v33, %v1264_v32  ;;  %v1273_v54 = vshll.u32 %v3613_v38, %v1264_v32 }
 0x294   : > { %v1276_v60 = vshll.u32 %v3614_v41, %v1264_v32  ;;  %v1279_v30 = vshll.u32 %v3615_v44, %v1264_v32  ;;  %vm1282_vm2 = vcmp.lt.s32.totalorder %v1263_v48, 1  ;;  %vm1283_vm3 = vcmp.lt.s32.totalorder %v1263_v48, 2 }
 0x295   : > { %v1268_v0 = vshrl.u32 %v3612_v33, %v1265_v58  ;;  %v1271_v49 = vshrl.u32 %v3613_v38, %v1265_v58  ;;  %v1274_v39 = vshrl.u32 %v3614_v41, %v1265_v58  ;;  %v1266_v53 = vshrl.u32 %v3611_v31, %v1265_v58 }
 0x296   : > { %v1277_v62 = vshrl.u32 %v3615_v44, %v1265_v58  ;;  %v1280_v11 = vshrl.u32 %v3616_v52, %v1265_v58  ;;  %vm1284_vm4 = vcmp.lt.s32.totalorder %v1263_v48, 3  ;;  %v1161_v27 = vsub.s32 32, %v1160_v16 }
 0x297   : > { %v1269_v14 = vor.u32 %v1268_v0, %v1267_v57  ;;  %v1272_v20 = vor.u32 %v1271_v49, %v1270_v36  ;;  %v1275_v6 = vor.u32 %v1274_v39, %v1273_v54  ;;  %vm1285_vm5 = vcmp.lt.s32.totalorder %v1263_v48, 4 }
 0x298   : > { %v1278_v34 = vor.u32 %v1277_v62, %v1276_v60  ;;  %v1281_v37 = vor.u32 %v1280_v11, %v1279_v30  ;;  %v1163_v43 = vshll.u32 %v3611_v31, %v1160_v16  ;;  %v1166_v12 = vshll.u32 %v3612_v33, %v1160_v16 }
 0x299   : > { %v1286_v26 = vsel %vm1282_vm2, %v1266_v53, %v1269_v14  ;;  %v1287_v5 = vsel %vm1285_vm5, %v1275_v6, 2102212464  ;;  %v1290_v51 = vsel %vm1282_vm2, %v1269_v14, %v1272_v20  ;;  %v1294_v10 = vsel %vm1282_vm2, %v1272_v20, %v1275_v6 }
 0x29a   : > { %v1288_v63 = vsel %vm1284_vm4, %v1272_v20, %v1287_v5  ;;  %v1291_v25 = vsel %vm1285_vm5, %v1278_v34, 920167782  ;;  %v1295_v56 = vsel %vm1285_vm5, %v1281_v37, 1326507024  ;;  %v1162_v19 = vshrl.u32 %v3611_v31, %v1161_v27 }
 0x29b   : > { %v1292_v2 = vsel %vm1284_vm4, %v1275_v6, %v1291_v25  ;;  %v1296_v18 = vsel %vm1284_vm4, %v1278_v34, %v1295_v56  ;;  %v1164_v3 = vshrl.u32 %v3612_v33, %v1161_v27  ;;  %v1289_v23 = vsel %vm1283_vm3, %v1286_v26, %v1288_v63 }
 0x29c   : > { %v1293_v17 = vsel %vm1283_vm3, %v1290_v51, %v1292_v2  ;;  %v1297_v22 = vsel %vm1283_vm3, %v1294_v10, %v1296_v18  ;;  %v1167_v35 = vshrl.u32 %v3613_v38, %v1161_v27  ;;  %v1169_v21 = vshll.u32 %v3613_v38, %v1160_v16 }
 0x29d   : > { %v4289_v46 = vmul.u32.u64.low %v4254_v59, %v1297_v22  ;;  %v4290_v61 = vmul.u32.u64.high %v4254_v59, %v1297_v22, %v4289_v46  ;;  %v4293_v45 = vmul.u32.u64.low %v4254_v59, %v1293_v17  ;;  %v4294_v7 = vmul.u32.u64.high %v4254_v59, %v1293_v17, %v4293_v45 }
 0x29e   : > { %v1165_v47 = vor.u32 %v1164_v3, %v1163_v43  ;;  %v1168_v32 = vor.u32 %v1167_v35, %v1166_v12  ;;  %v1170_v58 = vshrl.u32 %v3614_v41, %v1161_v27  ;;  %v1305_v57 = vmul.u32 %v4254_v59, %v1289_v23 }
 0x29f   : > { %v1172_v48 = vshll.u32 %v3614_v41, %v1160_v16  ;;  %v1173_v36 = vshrl.u32 %v3615_v44, %v1161_v27  ;;  %v1176_v54 = vshrl.u32 %v3616_v52, %v1161_v27  ;;  %v1175_v30 = vshll.u32 %v3615_v44, %v1160_v16 }
 0x2a0   : > { %v1171_v60 = vor.u32 %v1170_v58, %v1169_v21  ;;  %vm1178_vm6 = vcmp.lt.s32.totalorder %v4256_v55, 1  ;;  %vm1179_vm7 = vcmp.lt.s32.totalorder %v4256_v55, 2  ;;  %vm1307_vm8 = vc.u32 %v4290_v61, %v4293_v45 }
 0x2a1   : > { %v1308_v0 = vadd.s32 1, %v4294_v7  ;;  %v1174_v49 = vor.u32 %v1173_v36, %v1172_v48  ;;  %vm1180_vm9 = vcmp.lt.s32.totalorder %v4256_v55, 3  ;;  %v1177_v59 = vor.u32 %v1176_v54, %v1175_v30 }
 0x2a2   : > { %vm1181_vm10 = vcmp.lt.s32.totalorder %v4256_v55, 4  ;;  %v1182_v39 = vsel %vm1178_vm6, %v1162_v19, %v1165_v47  ;;  %v1186_v53 = vsel %vm1178_vm6, %v1165_v47, %v1168_v32  ;;  %v1190_v14 = vsel %vm1178_vm6, %v1168_v32, %v1171_v60 }
 0x2a3   : > { %v1309_v62 = vsel %vm1307_vm8, %v1308_v0, %v4294_v7  ;;  %v1183_v11 = vsel %vm1181_vm10, %v1171_v60, 2102212464  ;;  %v1187_v16 = vsel %vm1181_vm10, %v1174_v49, 920167782  ;;  %v1191_v34 = vsel %vm1181_vm10, %v1177_v59, 1326507024 }
 0x2a4   : > { %v1310_v20 = vadd.s32 %v1309_v62, %v1305_v57  ;;  %v1184_v6 = vsel %vm1180_vm9, %v1168_v32, %v1183_v11  ;;  %v1188_v27 = vsel %vm1180_vm9, %v1171_v60, %v1187_v16  ;;  %v1192_v43 = vsel %vm1180_vm9, %v1174_v49, %v1191_v34 }
 0x2a5   : > { %v1189_v37 = vsel %vm1179_vm7, %v1186_v53, %v1188_v27  ;;  %vm1469_vm11 = vcmp.gt.s32.totalorder %v4263_v1, 0  ;;  %v1357_v26 = vand.u32 2139095040, %v4243_v13  ;;  %v1193_v51 = vsel %vm1179_vm7, %v1190_v14, %v1192_v43 }
 0x2a6   : > { %v1311_v5 = vadd.s32 536870912, %v1310_v20  ;;  %v4317_v10 = vmul.u32.u64.low %v4258_v29, %v1189_v37  ;;  %v4318_v63 = vmul.u32.u64.high %v4258_v29, %v1189_v37, %v4317_v10  ;;  %v1185_v25 = vsel %vm1179_vm7, %v1182_v39, %v1184_v6 }
 0x2a7   : > { %v4324_v56 = vmul.u32.u64.low %v4258_v29, %v1193_v51  ;;  %v4325_v12 = vmul.u32.u64.high %v4258_v29, %v1193_v51, %v4324_v56  ;;  %v1470_v2 = vsel %vm1469_vm11, %v4263_v1, 0  ;;  %v4331_v3 = vadd.s32 %v4293_v45, %v4290_v61 }
 0x2a8   : > { %v4328_v18 = vshrl.u32 %v1311_v5, 30  ;;  %v1472_v19 = vand.u32 31, %v1470_v2  ;;  %v4335_v23 = vshll.u32 %v1466_v15, 8  ;;  %v1358_v17 = vshrl.u32 %v1357_v26, 23 }
 0x2a9   : > { %v4339_v55 = vand.u32 8388607, %v1354_v28  ;;  %v1201_v35 = vmul.u32 %v4258_v29, %v1185_v25  ;;  %v1204_v1 = vadd.s32 1, %v4318_v63  ;;  %vm1203_vm12 = vc.u32 %v4325_v12, %v4317_v10 }
 0x2aa   : > { %v1313_v22 = vshll.u32 %v4328_v18, 30  ;;  %v1473_v46 = vsub.s32 32, %v1472_v19  ;;  %v1471_v61 = vshrl.u32 %v1470_v2, 5  ;;  %v1475_v42 = vshll.u32 %v3611_v31, %v1472_v19 }
 0x2ab   : > { %v1478_v15 = vshll.u32 %v3612_v33, %v1472_v19  ;;  %v1205_v7 = vsel %vm1203_vm12, %v1204_v1, %v4318_v63  ;;  %v1481_v32 = vshll.u32 %v3613_v38, %v1472_v19  ;;  %v1484_v57 = vshll.u32 %v3614_v41, %v1472_v19 }
 0x2ac   : > { %v4348_v45 = vsub.s32 %v1310_v20, %v1313_v22  ;;  %v1476_v47 = vshrl.u32 %v3612_v33, %v1473_v46  ;;  %v1206_v29 = vadd.s32 %v1205_v7, %v1201_v35  ;;  %v1479_v21 = vshrl.u32 %v3613_v38, %v1473_v46 }
 0x2ad   : > { %v1482_v58 = vshrl.u32 %v3614_v41, %v1473_v46  ;;  %v1485_v54 = vshrl.u32 %v3615_v44, %v1473_v46  ;;  %v1487_v60 = vshll.u32 %v3615_v44, %v1472_v19  ;;  %v1488_v59 = vshrl.u32 %v3616_v52, %v1473_v46 }
 0x2ae   : > { %v1316_v48 = vsub.s32 0, %v4348_v45  ;;  %v1477_v36 = vor.u32 %v1476_v47, %v1475_v42  ;;  %v1207_v30 = vadd.s32 536870912, %v1206_v29  ;;  %v1480_v0 = vor.u32 %v1479_v21, %v1478_v15 }
 0x2af   : > { %v1483_v49 = vor.u32 %v1482_v58, %v1481_v32  ;;  %v1474_v53 = vshrl.u32 %v3611_v31, %v1473_v46  ;;  %v1486_v62 = vor.u32 %v1485_v54, %v1484_v57  ;;  %v3043_v11 = vadd.s32 4294967169, %v1358_v17 }
 0x2b0   : > { %v3040_v39 = vmin.u32 %v1316_v48, %v4348_v45  ;;  %v4362_v16 = vshrl.u32 %v1207_v30, 30  ;;  %v1489_v14 = vor.u32 %v1488_v59, %v1487_v60  ;;  %vm1490_vm13 = vcmp.lt.s32.totalorder %v1471_v61, 1 }
 0x2b1   : > { %vm1493_vm15 = vcmp.lt.s32.totalorder %v1471_v61, 4  ;;  %vm1491_vm0 = vcmp.lt.s32.totalorder %v1471_v61, 2  ;;  %v1498_v27 = vsel %vm1490_vm13, %v1477_v36, %v1480_v0  ;;  %vm1492_vm1 = vcmp.lt.s32.totalorder %v1471_v61, 3 }
 0x2b2   : > { %v1318_v20 = vclz %v3040_v39  ;;  %v1495_v6 = vsel %vm1493_vm15, %v1483_v49, 2102212464  ;;  %v1209_v34 = vshll.u32 %v4362_v16, 30  ;;  %v1499_v37 = vsel %vm1493_vm15, %v1486_v62, 920167782 }
 0x2b3   : > { %v1502_v43 = vsel %vm1490_vm13, %v1480_v0, %v1483_v49  ;;  %v1494_v5 = vsel %vm1490_vm13, %v1474_v53, %v1477_v36  ;;  %v1500_v51 = vsel %vm1492_vm1, %v1483_v49, %v1499_v37  ;;  %v1503_v63 = vsel %vm1493_vm15, %v1489_v14, 1326507024 }
 0x2b4   : > { %v3041_v26 = vadd.s32 4294967294, %v1318_v20  ;;  %v4365_v25 = vsub.s32 %v1206_v29, %v1209_v34  ;;  %v1496_v56 = vsel %vm1492_vm1, %v1480_v0, %v1495_v6  ;;  %v1501_v2 = vsel %vm1491_vm0, %v1498_v27, %v1500_v51 }
 0x2b5   : > { %v1504_v19 = vsel %vm1492_vm1, %v1486_v62, %v1503_v63  ;;  %v4370_v22 = vmul.u32.u64.low %v4335_v23, %v1501_v2  ;;  %v4371_v35 = vmul.u32.u64.high %v4335_v23, %v1501_v2, %v4370_v22  ;;  %v1497_v32 = vsel %vm1491_vm0, %v1494_v5, %v1496_v56 }
 0x2b6   : > { %vm3042_vm2 = vcmp.lt.s32.totalorder %v3041_v26, 0  ;;  %v1505_v17 = vsel %vm1491_vm0, %v1502_v43, %v1504_v19  ;;  %v1212_v46 = vsub.s32 0, %v4365_v25  ;;  %v1364_v29 = vadd.s32 1, %v3043_v11 }
 0x2b7   : > { %v1321_v1 = vsel %vm3042_vm2, 0, %v3041_v26  ;;  %v4376_v42 = vmul.u32.u64.low %v4335_v23, %v1505_v17  ;;  %v4377_v15 = vmul.u32.u64.high %v4335_v23, %v1505_v17, %v4376_v42  ;;  %v1362_v57 = vor.u32 8388608, %v4339_v55 }
 0x2b8   : > { %v1322_v7 = vsub.s32 32, %v1321_v1  ;;  %v1326_v47 = vsub.s32 4294967266, %v1321_v1  ;;  %v1323_v21 = vshll.u32 %v4348_v45, %v1321_v1  ;;  %v3036_v58 = vmin.u32 %v1212_v46, %v4365_v25 }
 0x2b9   : > { %v1516_v54 = vadd.s32 1, %v4371_v35  ;;  %vm1365_vm3 = vcmp.gt.s32.totalorder %v1364_v29, 0  ;;  %v1513_v30 = vmul.u32 %v4335_v23, %v1497_v32  ;;  %vm1515_vm4 = vc.u32 %v4377_v15, %v4370_v22 }
 0x2ba   : > { %v1324_v48 = vshrl.u32 %v4331_v3, %v1322_v7  ;;  %v1327_v36 = vadd.s32 127, %v1326_v47  ;;  %v1214_v60 = vclz %v3036_v58  ;;  %v1366_v61 = vsel %vm1365_vm3, %v1364_v29, 0 }
 0x2bb   : > { %v1202_v45 = vadd.s32 %v4317_v10, %v4325_v12  ;;  %v1517_v55 = vsel %vm1515_vm4, %v1516_v54, %v4371_v35  ;;  %vm1252_vm5 = vcmp.lt.s32.totalorder %v4227_v40, 0  ;;  %v4392_v39 = vshrl.u32 %v1366_v61, 5 }
 0x2bc   : > { %v1325_v0 = vor.u32 %v1324_v48, %v1323_v21  ;;  %v1328_v49 = vshll.u32 %v1327_v36, 23  ;;  %v3037_v3 = vadd.s32 4294967294, %v1214_v60  ;;  %v1518_v59 = vadd.s32 %v1517_v55, %v1513_v30 }
 0x2bd   : > { %v1368_v53 = vand.u32 31, %v1366_v61  ;;  %vm4396_vm6 = vcmp.le.f32.partialorder %v1250_v50, 0.7853982  ;;  %v4400_v11 = vshll.u32 %v1362_v57, 8  ;;  %v1232_v10 = vsub.s32 4, %v4362_v16 }
 0x2be   : > { %v1329_v62 = vor.u32 4788187, %v1328_v49  ;;  %v1336_v12 = vsub.s32 4, %v4328_v18  ;;  %v1332_v14 = vcvt.s32.f32 %v1325_v0  ;;  %vm3038_vm7 = vcmp.lt.s32.totalorder %v3037_v3, 0 }
 0x2bf   : > { %v1519_v20 = vadd.s32 536870912, %v1518_v59  ;;  %v1369_v6 = vsub.s32 32, %v1368_v53  ;;  %v1217_v34 = vsel %vm3038_vm7, 0, %v3037_v3  ;;  %v1371_v37 = vshll.u32 %v3611_v31, %v1368_v53 }
 0x2c0   : > { %v1330_v27 = vand.u32 2147483647, %v1329_v62  ;;  %v1374_v50 = vshll.u32 %v3612_v33, %v1368_v53  ;;  %v1218_v43 = vsub.s32 32, %v1217_v34  ;;  %v1222_v26 = vsub.s32 4294967266, %v1217_v34 }
 0x2c1   : > { %v4406_v5 = vshrl.u32 %v1519_v20, 30  ;;  %v1377_v51 = vshll.u32 %v3613_v38, %v1368_v53  ;;  %vm1386_vm8 = vcmp.lt.s32.totalorder %v4392_v39, 1  ;;  %v1219_v56 = vshll.u32 %v4365_v25, %v1217_v34 }
 0x2c2   : > { %v1333_v63 = vmul.f32 %v1332_v14, %v1330_v27  ;;  %v1372_v2 = vshrl.u32 %v3612_v33, %v1369_v6  ;;  %v1375_v19 = vshrl.u32 %v3613_v38, %v1369_v6  ;;  %v1220_v17 = vshrl.u32 %v1202_v45, %v1218_v43 }
 0x2c3   : > { %v1223_v35 = vadd.s32 127, %v1222_v26  ;;  %v1521_v1 = vshll.u32 %v4406_v5, 30  ;;  %v1378_v46 = vshrl.u32 %v3614_v41, %v1369_v6  ;;  %v1380_v32 = vshll.u32 %v3614_v41, %v1368_v53 }
 0x2c4   : > { %v1334_v42 = vxor.u32 2147483648, %v1333_v63  ;;  %v1373_v7 = vor.u32 %v1372_v2, %v1371_v37  ;;  %v1376_v47 = vor.u32 %v1375_v19, %v1374_v50  ;;  %vm1148_vm9 = vcmp.lt.s32.totalorder %v4229_v4, 0 }
 0x2c5   : > { %v1221_v29 = vor.u32 %v1220_v17, %v1219_v56  ;;  %v1224_v21 = vshll.u32 %v1223_v35, 23  ;;  %v4417_v25 = vsub.s32 %v1518_v59, %v1521_v1  ;;  %v1379_v58 = vor.u32 %v1378_v46, %v1377_v51 }
 0x2c6   : > { %v1335_v57 = vsel %vm1252_vm5, %v1334_v42, %v1333_v63  ;;  %v1381_v48 = vshrl.u32 %v3615_v44, %v1369_v6  ;;  %v1383_v36 = vshll.u32 %v3615_v44, %v1368_v53  ;;  %v1384_v54 = vshrl.u32 %v3616_v52, %v1369_v6 }
 0x2c7   : > { %v1338_v60 = vsel %vm4396_vm6, %v4227_v40, %v1335_v57  ;;  %vm4429_vm10 = vcmp.le.f32.partialorder %v1146_v8, 0.7853982  ;;  %v1225_v61 = vor.u32 4788187, %v1224_v21  ;;  %v1524_v0 = vsub.s32 0, %v4417_v25 }
 0x2c8   : > { %v1370_v49 = vshrl.u32 %v3611_v31, %v1369_v6  ;;  %3550 = vcosq.f32 %v1338_v60  ;;  %v1228_v45 = vcvt.s32.f32 %v1221_v29  ;;  %v1382_v55 = vor.u32 %v1381_v48, %v1380_v32 }
 0x2c9   : > { %v1385_v3 = vor.u32 %v1384_v54, %v1383_v36  ;;  %3552 = vsinq.f32 %v1338_v60  ;;  %v1226_v59 = vand.u32 2147483647, %v1225_v61  ;;  %v3048_v53 = vmin.u32 %v1524_v0, %v4417_v25 }
 0x2ca   : > { %vm1389_vm11 = vcmp.lt.s32.totalorder %v4392_v39, 4  ;;  %vm1388_vm12 = vcmp.lt.s32.totalorder %v4392_v39, 3  ;;  %v1394_v62 = vsel %vm1386_vm8, %v1373_v7, %v1376_v47  ;;  %vm1387_vm13 = vcmp.lt.s32.totalorder %v4392_v39, 2 }
 0x2cb   : > { %v1391_v8 = vsel %vm1389_vm11, %v1379_v58, 2102212464  ;;  %v1395_v14 = vsel %vm1389_vm11, %v1382_v55, 920167782  ;;  %v1229_v20 = vmul.f32 %v1228_v45, %v1226_v59  ;;  %v1526_v27 = vclz %v3048_v53 }
 0x2cc   : > { %v1396_v6 = vsel %vm1388_vm12, %v1379_v58, %v1395_v14  ;;  %v1390_v34 = vsel %vm1386_vm8, %v1370_v49, %v1373_v7  ;;  %v1398_v50 = vsel %vm1386_vm8, %v1376_v47, %v1379_v58  ;;  %v1399_v43 = vsel %vm1389_vm11, %v1385_v3, 1326507024 }
 0x2cd   : > { %v1397_v37 = vsel %vm1387_vm13, %v1394_v62, %v1396_v6  ;;  %v1230_v26 = vxor.u32 2147483648, %v1229_v20  ;;  %v3049_v51 = vadd.s32 4294967294, %v1526_v27  ;;  %v1392_v63 = vsel %vm1388_vm12, %v1376_v47, %v1391_v8 }
 0x2ce   : > { %v1400_v56 = vsel %vm1388_vm12, %v1382_v55, %v1399_v43  ;;  %v4450_v19 = vmul.u32.u64.low %v4400_v11, %v1397_v37  ;;  %v4451_v17 = vmul.u32.u64.high %v4400_v11, %v1397_v37, %v4450_v19  ;;  %v1233_v35 = vsel %vm1148_vm9, %v1232_v10, %v4362_v16 }
 0x2cf   : > { %v1401_v2 = vsel %vm1387_vm13, %v1398_v50, %v1400_v56  ;;  %v1231_v1 = vsel %vm1148_vm9, %v1230_v26, %v1229_v20  ;;  %vm3050_vm15 = vcmp.lt.s32.totalorder %v3049_v51, 0  ;;  %v1393_v32 = vsel %vm1387_vm13, %v1390_v34, %v1392_v63 }
 0x2d0   : > { %v4462_v46 = vmul.u32.u64.low %v4400_v11, %v1401_v2  ;;  %v4463_v42 = vmul.u32.u64.high %v4400_v11, %v1401_v2, %v4462_v46  ;;  %v1234_v7 = vsel %vm4429_vm10, %v4229_v4, %v1231_v1  ;;  %v1529_v47 = vsel %vm3050_vm15, 0, %v3049_v51 }
 0x2d1   : > { %v1337_v16 = vsel %vm1252_vm5, %v1336_v12, %v4328_v18  ;;  %3554 = vcosq.f32 %v1234_v7  ;;  %v1534_v10 = vsub.s32 4294967266, %v1529_v47  ;;  %v1235_v29 = vsel %vm4429_vm10, 0, %v1233_v35 }
 0x2d2   : > { %v3551_v21 = vpop.eup %3550  ;;  %3556 = vsinq.f32 %v1234_v7  ;;  %v1412_v58 = vadd.s32 1, %v4451_v17  ;;  %v1339_v57 = vsel %vm4396_vm6, 0, %v1337_v16  ;;  %v1530_v48 = vsub.s32 32, %v1529_v47 }
 0x2d3   : > { %v3553_v39 = vpop.eup %3552  ;;  %v1535_v36 = vadd.s32 127, %v1534_v10  ;;  %v1409_v54 = vmul.u32 %v4400_v11, %v1393_v32  ;;  %vm1411_vm0 = vc.u32 %v4463_v42, %v4450_v19  ;;  %v1239_v12 = vadd.s32 3, %v1235_v29 }
 0x2d4   : > { %v1413_v18 = vsel %vm1411_vm0, %v1412_v58, %v4451_v17  ;;  %v1514_v60 = vadd.s32 %v4370_v22, %v4377_v15  ;;  %v1343_v0 = vadd.s32 3, %v1339_v57  ;;  %v1347_v49 = vxor.u32 2147483648, %v3553_v39 }
 0x2d5   : > { %v1536_v30 = vshll.u32 %v1535_v36, 23  ;;  %v1414_v61 = vadd.s32 %v1413_v18, %v1409_v54  ;;  %v1350_v3 = vxor.u32 2147483648, %v3551_v21  ;;  %v1240_v59 = vand.u32 3, %v1239_v12 }
 0x2d6   : > { %v1532_v23 = vshrl.u32 %v1514_v60, %v1530_v48  ;;  %v1344_v55 = vand.u32 3, %v1343_v0  ;;  %v1531_v11 = vshll.u32 %v4417_v25, %v1529_v47  ;;  %vm1342_vm5 = vweird.f32 %v4227_v40 }
 0x2d7   : > { %v1415_v45 = vadd.s32 536870912, %v1414_v61  ;;  %v1537_v53 = vor.u32 4788187, %v1536_v30  ;;  %vm1245_vm4 = vcmp.eq.s32.totalorder %v1240_v59, 2  ;;  %vm1242_vm6 = vcmp.eq.s32.totalorder %v1240_v59, 0 }
 0x2d8   : > { %vm1346_vm1 = vcmp.eq.s32.totalorder %v1344_v55, 0  ;;  %vm1349_vm2 = vcmp.eq.s32.totalorder %v1344_v55, 2  ;;  %v1533_v20 = vor.u32 %v1532_v23, %v1531_v11  ;;  %vm1345_vm3 = vcmp.lt.s32.totalorder %v1344_v55, 2 }
 0x2d9   : > { %v4487_v8 = vshrl.u32 %v1415_v45, 30  ;;  %v1348_v62 = vsel %vm1346_vm1, %v3551_v21, %v1347_v49  ;;  %v1351_v15 = vsel %vm1349_vm2, %v1350_v3, %v3553_v39  ;;  %v1538_v37 = vand.u32 2147483647, %v1537_v53 }
 0x2da   : > { %v1352_v34 = vsel %vm1345_vm3, %v1348_v62, %v1351_v15  ;;  %v1540_v51 = vcvt.s32.f32 %v1533_v20  ;;  %vm1241_vm7 = vcmp.lt.s32.totalorder %v1240_v59, 2  ;;  %vm1238_vm8 = vweird.f32 %v4229_v4 }
 0x2db   : > { %v3555_v14 = vpop.eup %3554  ;;  %v1417_v22 = vshll.u32 %v4487_v8, 30  ;;  %v1353_v43 = vsel %vm1342_vm5, nan, %v1352_v34  ;;  %vm1460_vm10 = vcmp.lt.s32.totalorder %v4237_v24, 0  ;;  %v1410_v4 = vadd.s32 %v4450_v19, %v4463_v42 }
 0x2dc   : > { %v3557_v27 = vpop.eup %3556  ;;  %v1246_v6 = vxor.u32 2147483648, %v3555_v14  ;;  %v1541_v17 = vmul.f32 %v1540_v51, %v1538_v37  ;;  %vm4499_vm11 = vcmp.le.f32.partialorder %v1458_v9, 0.7853982  ;;  %v1544_v18 = vsub.s32 4, %v4406_v5 }
 0x2dd   : > { %v1418_v25 = vsub.s32 %v1414_v61, %v1417_v22  ;;  %v1243_v50 = vxor.u32 2147483648, %v3557_v27  ;;  %v1440_v30 = vsub.s32 4, %v4487_v8  ;;  %vm1356_vm12 = vcmp.lt.s32.totalorder %v4243_v13, 0 }
 0x2de   : > { %v1247_v26 = vsel %vm1245_vm4, %v1246_v6, %v3557_v27  ;;  %v1542_v40 = vxor.u32 2147483648, %v1541_v17  ;;  %v1545_v9 = vsel %vm1460_vm10, %v1544_v18, %v4406_v5  ;;  %vm1355_vm13 = vcmp.le.f32.partialorder %v1354_v28, 0.7853982 }
 0x2df   : > { %v1420_v63 = vsub.s32 0, %v1418_v25  ;;  %v1244_v56 = vsel %vm1242_vm6, %v3555_v14, %v1243_v50  ;;  %v1547_v0 = vsel %vm4499_vm11, 0, %v1545_v9  ;;  %v1441_v23 = vsel %vm1356_vm12, %v1440_v30, %v4487_v8 }
 0x2e0   : > { %v1248_v2 = vsel %vm1241_vm7, %v1244_v56, %v1247_v26  ;;  %v1543_v16 = vsel %vm1460_vm10, %v1542_v40, %v1541_v17  ;;  %v1551_v55 = vadd.s32 3, %v1547_v0  ;;  %v1443_v59 = vsel %vm1355_vm13, 0, %v1441_v23  ;;  %v1564_v56 = vld [vmem:[%s5167_s5 + $0x10] sm:$0xff]  ;;  %v1771_v17 = vpop.permute.xlu0 %1770 }
 0x2e1   : > { %v3044_v35 = vmin.u32 %v1420_v63, %v1418_v25  ;;  %v1249_v1 = vsel %vm1238_vm8, nan, %v1248_v2  ;;  %v1546_v48 = vsel %vm4499_vm11, %v4237_v24, %v1543_v16  ;;  %v1447_v53 = vadd.s32 3, %v1443_v59  ;;  %v1563_v63 = vld [vmem:[%s5167_s5 + $0x8] sm:$0xff] }
 0x2e2   : > { %v3420_v46 = vpack.c.bf16 %v1353_v43, %v1249_v1  ;;  %3558 = vcosq.f32 %v1546_v48  ;;  %v1552_v11 = vand.u32 3, %v1551_v55  ;;  %vm1550_vm4 = vweird.f32 %v4237_v24  ;;  %v1565_v24 = vld [vmem:[%s5167_s5 + $0x18] sm:$0xff] }
 0x2e3   : > { %v1422_v7 = vclz %v3044_v35  ;;  %3560 = vsinq.f32 %v1546_v48  ;;  %v1448_v20 = vand.u32 3, %v1447_v53  ;;  %vm1446_vm6 = vweird.f32 %v4243_v13 }
 0x2e4   : > { %3421 = vmatprep.subr.bf16.mxu1 %v3420_v46  ;;  %vm1554_vm15 = vcmp.eq.s32.totalorder %v1552_v11, 0  ;;  %vm1557_vm0 = vcmp.eq.s32.totalorder %v1552_v11, 2  ;;  %vm1553_vm1 = vcmp.lt.s32.totalorder %v1552_v11, 2  ;;  %v1781_v48 = vpop.permute.xlu0 %1780 }
 0x2e5   : > { %v3045_v47 = vadd.s32 4294967294, %v1422_v7  ;;  %3423 = vmatpush3.bf16.msra.mxu1 %v3420_v46  ;;  %vm1453_vm2 = vcmp.eq.s32.totalorder %v1448_v20, 2  ;;  %vm1450_vm3 = vcmp.eq.s32.totalorder %v1448_v20, 0  ;;  %vm1449_vm5 = vcmp.lt.s32.totalorder %v1448_v20, 2 }
 0x2e7   : > { %vm3046_vm9 = vcmp.lt.s32.totalorder %v3045_v47, 0 }
 0x2e8   : > { %v1425_v32 = vsel %vm3046_vm9, 0, %v3045_v47 }
 0x2e9   : > { %v1426_v10 = vsub.s32 32, %v1425_v32  ;;  %v1430_v29 = vsub.s32 4294967266, %v1425_v32  ;;  %v1427_v58 = vshll.u32 %v1418_v25, %v1425_v32 }
 0x2eb   : > { %v1428_v57 = vshrl.u32 %v1410_v4, %v1426_v10  ;;  %v1431_v39 = vadd.s32 127, %v1430_v29 }
 0x2ec   : > { %v3559_v3 = vpop.eup %3558 }
 0x2ed   : > { %v1429_v36 = vor.u32 %v1428_v57, %v1427_v58  ;;  %v1432_v54 = vshll.u32 %v1431_v39, 23  ;;  %v3561_v5 = vpop.eup %3560  ;;  %v1558_v14 = vxor.u32 2147483648, %v3559_v3 }
 0x2ee   : > { %v1555_v62 = vxor.u32 2147483648, %v3561_v5 }
 0x2ef   : > { %v1433_v19 = vor.u32 4788187, %v1432_v54  ;;  %v1436_v12 = vcvt.s32.f32 %v1429_v36  ;;  %v1559_v28 = vsel %vm1557_vm0, %v1558_v14, %v3561_v5 }
 0x2f0   : > { %v1556_v22 = vsel %vm1554_vm15, %v3559_v3, %v1555_v62 }
 0x2f1   : > { %v1434_v42 = vand.u32 2147483647, %v1433_v19  ;;  %v1560_v6 = vsel %vm1553_vm1, %v1556_v22, %v1559_v28 }
 0x2f2   : > { %v1561_v50 = vsel %vm1550_vm4, nan, %v1560_v6 }
 0x2f3   : > { %v1437_v60 = vmul.f32 %v1436_v12, %v1434_v42 }
 0x2f5   : > { %v1438_v61 = vxor.u32 2147483648, %v1437_v60 }
 0x2f7   : > { %v1439_v49 = vsel %vm1356_vm12, %v1438_v61, %v1437_v60 }
 0x2f8   : > { %v1442_v45 = vsel %vm1355_vm13, %v4243_v13, %v1439_v49  ;;  %v1776_v13 = vpop.permute.xlu1 %1775  ;;  %v2208_v49 = vld [vmem:[%s5170_s8] sm:$0xff] }
 0x2f9   : > { %3562 = vcosq.f32 %v1442_v45  ;;  %3299 = vmatprep.mubr.msk.f32.mxu0 %vm1048_vm14, %v2208_v49 }
 0x2fa   : > { %3564 = vsinq.f32 %v1442_v45 }
 0x2fc   : > { %v1786_v47 = vpop.permute.xlu1 %1785 }
 0x303   : > { %v3563_v15 = vpop.eup %3562 }
 0x304   : > { %v3565_v8 = vpop.eup %3564  ;;  %v1454_v27 = vxor.u32 2147483648, %v3563_v15 }
 0x305   : > { %v1451_v34 = vxor.u32 2147483648, %v3565_v8 }
 0x306   : > { %v1455_v37 = vsel %vm1453_vm2, %v1454_v27, %v3565_v8 }
 0x307   : > { %v1452_v25 = vsel %vm1450_vm3, %v3563_v15, %v1451_v34 }
 0x308   : > { %v1456_v43 = vsel %vm1449_vm5, %v1452_v25, %v1455_v37 }
 0x309   : > { %v1457_v26 = vsel %vm1446_vm6, nan, %v1456_v43 }
 0x30a   : > { %v3424_v51 = vpack.c.bf16 %v1561_v50, %v1457_v26 }
 0x30c   : > { %3425 = vmatprep.subr.bf16.mxu1 %v3424_v51 }
 0x30d   : > { %3427 = vmatpush3.bf16.msra.mxu1 %v3424_v51 }
 0x310   : > { %3286 = vmatmul.mubr.msk.f32.vlgmr.msra.gmra.mrb[4].mxu1 %vm1048_vm14, %v1563_v63 }
 0x311   : > { %3288 = vmatprep.mubr.msk.f32.mxu1 %vm1048_vm14, %v1564_v56 }
 0x314   : > { %3289 = vmatmul.mubr.msk.f32.gmra.mrb[6].mxu1 %vm1048_vm14, %v1565_v24 }
 0x3e3   : > { %v3287_v2 = vpop.f32.mrb[4].mxu1 }
 0x3e4   : > { %v4532_v35 = vadd.f32 %v3287_v2, %v1776_v13  ;;  %v1745_v1 = vpop.f32.mrb[5].mxu1 }
 0x3e5   : > { %v4534_v46 = vadd.f32 %v1771_v17, %v1745_v1 }
 0x3e6   : > { %v1896_v7 = vand.u32 2147483647, %v4532_v35  ;;  %v1899_v40 = vand.u32 2139095040, %v4532_v35 }
 0x3e7   : > { %v1792_v32 = vand.u32 2147483647, %v4534_v46  ;;  %v1795_v16 = vand.u32 2139095040, %v4534_v46  ;;  %v3290_v4 = vpop.f32.mrb[6].mxu1 }
 0x3e8   : > { %v1900_v10 = vshrl.u32 %v1899_v40, 23  ;;  %v1903_v29 = vand.u32 8388607, %v1896_v7  ;;  %v4542_v21 = vadd.f32 %v3290_v4, %v1786_v47  ;;  %v1755_v58 = vpop.f32.mrb[7].mxu1 }
 0x3e9   : > { %v1796_v57 = vshrl.u32 %v1795_v16, 23  ;;  %v1799_v39 = vand.u32 8388607, %v1792_v32  ;;  %v4548_v42 = vadd.f32 %v1781_v48, %v1755_v58 }
 0x3ea   : > { %v3079_v36 = vadd.s32 4294967169, %v1900_v10  ;;  %v2104_v54 = vand.u32 2147483647, %v4542_v21  ;;  %v2107_v19 = vand.u32 2139095040, %v4542_v21  ;;  %v1904_v12 = vor.u32 8388608, %v1903_v29 }
 0x3eb   : > { %v3075_v18 = vadd.s32 4294967169, %v1796_v57  ;;  %v1800_v60 = vor.u32 8388608, %v1799_v39  ;;  %v2000_v55 = vand.u32 2147483647, %v4548_v42 }
 0x3ec   : > { %v1906_v9 = vadd.s32 1, %v3079_v36  ;;  %v2108_v61 = vshrl.u32 %v2107_v19, 23  ;;  %v4552_v0 = vand.u32 8388607, %v2104_v54  ;;  %v4559_v59 = vshll.u32 %v1904_v12, 8 }
 0x3ed   : > { %v1802_v30 = vadd.s32 1, %v3075_v18  ;;  %v4563_v14 = vshll.u32 %v1800_v60, 8 }
 0x3ee   : > { %vm1907_vm7 = vcmp.gt.s32.totalorder %v1906_v9, 0  ;;  %v3087_v45 = vadd.s32 4294967169, %v2108_v61  ;;  %v2112_v20 = vor.u32 8388608, %v4552_v0 }
 0x3ef   : > { %v1908_v23 = vsel %vm1907_vm7, %v1906_v9, 0  ;;  %vm1803_vm8 = vcmp.gt.s32.totalorder %v1802_v30, 0 }
 0x3f0   : > { %v1909_v3 = vshrl.u32 %v1908_v23, 5  ;;  %v1910_v5 = vand.u32 31, %v1908_v23  ;;  %v1804_v11 = vsel %vm1803_vm8, %v1802_v30, 0  ;;  %v4568_v8 = vadd.s32 1, %v3087_v45 }
 0x3f1   : > { %v4561_v53 = vshrl.u32 %v1804_v11, 5  ;;  %v1806_v62 = vand.u32 31, %v1804_v11 }
 0x3f2   : > { %v1911_v22 = vsub.s32 32, %v1910_v5  ;;  %v1913_v28 = vshll.u32 %v3611_v31, %v1910_v5  ;;  %v1916_v15 = vshll.u32 %v3612_v33, %v1910_v5  ;;  %v1919_v27 = vshll.u32 %v3613_v38, %v1910_v5 }
 0x3f3   : > { %v1922_v6 = vshll.u32 %v3614_v41, %v1910_v5  ;;  %v1925_v34 = vshll.u32 %v3615_v44, %v1910_v5  ;;  %vm1928_vm9 = vcmp.lt.s32.totalorder %v1909_v3, 1  ;;  %vm1929_vm10 = vcmp.lt.s32.totalorder %v1909_v3, 2 }
 0x3f4   : > { %v1914_v37 = vshrl.u32 %v3612_v33, %v1911_v22  ;;  %v1917_v25 = vshrl.u32 %v3613_v38, %v1911_v22  ;;  %v1920_v50 = vshrl.u32 %v3614_v41, %v1911_v22  ;;  %v1912_v43 = vshrl.u32 %v3611_v31, %v1911_v22 }
 0x3f5   : > { %v1923_v26 = vshrl.u32 %v3615_v44, %v1911_v22  ;;  %v1926_v51 = vshrl.u32 %v3616_v52, %v1911_v22  ;;  %vm1930_vm11 = vcmp.lt.s32.totalorder %v1909_v3, 3  ;;  %v1807_v13 = vsub.s32 32, %v1806_v62 }
 0x3f6   : > { %v1915_v63 = vor.u32 %v1914_v37, %v1913_v28  ;;  %v1918_v56 = vor.u32 %v1917_v25, %v1916_v15  ;;  %v1921_v24 = vor.u32 %v1920_v50, %v1919_v27  ;;  %vm1931_vm12 = vcmp.lt.s32.totalorder %v1909_v3, 4 }
 0x3f7   : > { %v1924_v2 = vor.u32 %v1923_v26, %v1922_v6  ;;  %v1927_v17 = vor.u32 %v1926_v51, %v1925_v34  ;;  %v1809_v1 = vshll.u32 %v3611_v31, %v1806_v62  ;;  %v1812_v57 = vshll.u32 %v3612_v33, %v1806_v62 }
 0x3f8   : > { %v1932_v40 = vsel %vm1928_vm9, %v1912_v43, %v1915_v63  ;;  %v1933_v47 = vsel %vm1931_vm12, %v1921_v24, 2102212464  ;;  %v1936_v16 = vsel %vm1928_vm9, %v1915_v63, %v1918_v56  ;;  %v1940_v4 = vsel %vm1928_vm9, %v1918_v56, %v1921_v24 }
 0x3f9   : > { %v1934_v10 = vsel %vm1930_vm11, %v1918_v56, %v1933_v47  ;;  %v1937_v29 = vsel %vm1931_vm12, %v1924_v2, 920167782  ;;  %v1941_v58 = vsel %vm1931_vm12, %v1927_v17, 1326507024  ;;  %v1808_v36 = vshrl.u32 %v3611_v31, %v1807_v13 }
 0x3fa   : > { %v1938_v39 = vsel %vm1930_vm11, %v1921_v24, %v1937_v29  ;;  %v1942_v48 = vsel %vm1930_vm11, %v1924_v2, %v1941_v58  ;;  %v1810_v18 = vshrl.u32 %v3612_v33, %v1807_v13  ;;  %v1935_v19 = vsel %vm1929_vm10, %v1932_v40, %v1934_v10 }
 0x3fb   : > { %v1939_v12 = vsel %vm1929_vm10, %v1936_v16, %v1938_v39  ;;  %v1943_v9 = vsel %vm1929_vm10, %v1940_v4, %v1942_v48  ;;  %v1813_v60 = vshrl.u32 %v3613_v38, %v1807_v13  ;;  %v1815_v11 = vshll.u32 %v3613_v38, %v1806_v62 }
 0x3fc   : > { %v4594_v30 = vmul.u32.u64.low %v4559_v59, %v1943_v9  ;;  %v4595_v61 = vmul.u32.u64.high %v4559_v59, %v1943_v9, %v4594_v30  ;;  %v4598_v49 = vmul.u32.u64.low %v4559_v59, %v1939_v12  ;;  %v4599_v23 = vmul.u32.u64.high %v4559_v59, %v1939_v12, %v4598_v49 }
 0x3fd   : > { %v1811_v45 = vor.u32 %v1810_v18, %v1809_v1  ;;  %v1814_v5 = vor.u32 %v1813_v60, %v1812_v57  ;;  %v1816_v22 = vshrl.u32 %v3614_v41, %v1807_v13  ;;  %v1951_v28 = vmul.u32 %v4559_v59, %v1935_v19 }
 0x3fe   : > { %v1818_v3 = vshll.u32 %v3614_v41, %v1806_v62  ;;  %v1819_v15 = vshrl.u32 %v3615_v44, %v1807_v13  ;;  %v1822_v27 = vshrl.u32 %v3616_v52, %v1807_v13  ;;  %v1821_v34 = vshll.u32 %v3615_v44, %v1806_v62 }
 0x3ff   : > { %v1817_v6 = vor.u32 %v1816_v22, %v1815_v11  ;;  %vm1824_vm13 = vcmp.lt.s32.totalorder %v4561_v53, 1  ;;  %vm1825_vm15 = vcmp.lt.s32.totalorder %v4561_v53, 2  ;;  %vm1953_vm0 = vc.u32 %v4595_v61, %v4598_v49 }
 0x400   : > { %v1954_v37 = vadd.s32 1, %v4599_v23  ;;  %v1820_v25 = vor.u32 %v1819_v15, %v1818_v3  ;;  %vm1826_vm1 = vcmp.lt.s32.totalorder %v4561_v53, 3  ;;  %v1823_v59 = vor.u32 %v1822_v27, %v1821_v34 }
 0x401   : > { %vm1827_vm2 = vcmp.lt.s32.totalorder %v4561_v53, 4  ;;  %v1828_v50 = vsel %vm1824_vm13, %v1808_v36, %v1811_v45  ;;  %v1832_v43 = vsel %vm1824_vm13, %v1811_v45, %v1814_v5  ;;  %v1836_v63 = vsel %vm1824_vm13, %v1814_v5, %v1817_v6 }
 0x402   : > { %v1955_v26 = vsel %vm1953_vm0, %v1954_v37, %v4599_v23  ;;  %v1829_v51 = vsel %vm1827_vm2, %v1817_v6, 2102212464  ;;  %v1833_v62 = vsel %vm1827_vm2, %v1820_v25, 920167782  ;;  %v1837_v2 = vsel %vm1827_vm2, %v1823_v59, 1326507024 }
 0x403   : > { %v1956_v56 = vadd.s32 %v1955_v26, %v1951_v28  ;;  %v1830_v24 = vsel %vm1826_vm1, %v1814_v5, %v1829_v51  ;;  %v1834_v13 = vsel %vm1826_vm1, %v1817_v6, %v1833_v62  ;;  %v1838_v1 = vsel %vm1826_vm1, %v1820_v25, %v1837_v2 }
 0x404   : > { %v1835_v17 = vsel %vm1825_vm15, %v1832_v43, %v1834_v13  ;;  %vm2115_vm3 = vcmp.gt.s32.totalorder %v4568_v8, 0  ;;  %v2003_v40 = vand.u32 2139095040, %v4548_v42  ;;  %v1839_v16 = vsel %vm1825_vm15, %v1836_v63, %v1838_v1 }
 0x405   : > { %v1957_v47 = vadd.s32 536870912, %v1956_v56  ;;  %v4622_v4 = vmul.u32.u64.low %v4563_v14, %v1835_v17  ;;  %v4623_v10 = vmul.u32.u64.high %v4563_v14, %v1835_v17, %v4622_v4  ;;  %v1831_v29 = vsel %vm1825_vm15, %v1828_v50, %v1830_v24 }
 0x406   : > { %v4629_v58 = vmul.u32.u64.low %v4563_v14, %v1839_v16  ;;  %v4630_v57 = vmul.u32.u64.high %v4563_v14, %v1839_v16, %v4629_v58  ;;  %v2116_v39 = vsel %vm2115_vm3, %v4568_v8, 0  ;;  %v4636_v18 = vadd.s32 %v4598_v49, %v4595_v61 }
 0x407   : > { %v4633_v48 = vshrl.u32 %v1957_v47, 30  ;;  %v2118_v36 = vand.u32 31, %v2116_v39  ;;  %v4640_v19 = vshll.u32 %v2112_v20, 8  ;;  %v2004_v12 = vshrl.u32 %v2003_v40, 23 }
 0x408   : > { %v4644_v53 = vand.u32 8388607, %v2000_v55  ;;  %v1847_v60 = vmul.u32 %v4563_v14, %v1831_v29  ;;  %v1850_v8 = vadd.s32 1, %v4623_v10  ;;  %vm1849_vm4 = vc.u32 %v4630_v57, %v4622_v4 }
 0x409   : > { %v1959_v9 = vshll.u32 %v4633_v48, 30  ;;  %v2119_v30 = vsub.s32 32, %v2118_v36  ;;  %v2117_v61 = vshrl.u32 %v2116_v39, 5  ;;  %v2121_v0 = vshll.u32 %v3611_v31, %v2118_v36 }
 0x40a   : > { %v2124_v20 = vshll.u32 %v3612_v33, %v2118_v36  ;;  %v1851_v23 = vsel %vm1849_vm4, %v1850_v8, %v4623_v10  ;;  %v2127_v5 = vshll.u32 %v3613_v38, %v2118_v36  ;;  %v2130_v28 = vshll.u32 %v3614_v41, %v2118_v36 }
 0x40b   : > { %v4653_v49 = vsub.s32 %v1956_v56, %v1959_v9  ;;  %v2122_v45 = vshrl.u32 %v3612_v33, %v2119_v30  ;;  %v1852_v14 = vadd.s32 %v1851_v23, %v1847_v60  ;;  %v2125_v11 = vshrl.u32 %v3613_v38, %v2119_v30 }
 0x40c   : > { %v2128_v22 = vshrl.u32 %v3614_v41, %v2119_v30  ;;  %v2131_v27 = vshrl.u32 %v3615_v44, %v2119_v30  ;;  %v2133_v6 = vshll.u32 %v3615_v44, %v2118_v36  ;;  %v2134_v59 = vshrl.u32 %v3616_v52, %v2119_v30 }
 0x40d   : > { %v1962_v3 = vsub.s32 0, %v4653_v49  ;;  %v2123_v15 = vor.u32 %v2122_v45, %v2121_v0  ;;  %v1853_v34 = vadd.s32 536870912, %v1852_v14  ;;  %v2126_v37 = vor.u32 %v2125_v11, %v2124_v20 }
 0x40e   : > { %v2129_v25 = vor.u32 %v2128_v22, %v2127_v5  ;;  %v2120_v43 = vshrl.u32 %v3611_v31, %v2119_v30  ;;  %v2132_v26 = vor.u32 %v2131_v27, %v2130_v28  ;;  %v3083_v51 = vadd.s32 4294967169, %v2004_v12 }
 0x40f   : > { %v3080_v50 = vmin.u32 %v1962_v3, %v4653_v49  ;;  %v4667_v62 = vshrl.u32 %v1853_v34, 30  ;;  %v2135_v63 = vor.u32 %v2134_v59, %v2133_v6  ;;  %vm2136_vm5 = vcmp.lt.s32.totalorder %v2117_v61, 1 }
 0x410   : > { %vm2139_vm6 = vcmp.lt.s32.totalorder %v2117_v61, 4  ;;  %vm2137_vm7 = vcmp.lt.s32.totalorder %v2117_v61, 2  ;;  %v2144_v13 = vsel %vm2136_vm5, %v2123_v15, %v2126_v37  ;;  %vm2138_vm8 = vcmp.lt.s32.totalorder %v2117_v61, 3 }
 0x411   : > { %v1964_v56 = vclz %v3080_v50  ;;  %v2141_v24 = vsel %vm2139_vm6, %v2129_v25, 2102212464  ;;  %v1855_v2 = vshll.u32 %v4667_v62, 30  ;;  %v2145_v17 = vsel %vm2139_vm6, %v2132_v26, 920167782 }
 0x412   : > { %v2148_v1 = vsel %vm2136_vm5, %v2126_v37, %v2129_v25  ;;  %v2140_v47 = vsel %vm2136_vm5, %v2120_v43, %v2123_v15  ;;  %v2146_v16 = vsel %vm2138_vm8, %v2129_v25, %v2145_v17  ;;  %v2149_v10 = vsel %vm2139_vm6, %v2135_v63, 1326507024 }
 0x413   : > { %v3081_v40 = vadd.s32 4294967294, %v1964_v56  ;;  %v4670_v29 = vsub.s32 %v1852_v14, %v1855_v2  ;;  %v2142_v58 = vsel %vm2138_vm8, %v2126_v37, %v2141_v24  ;;  %v2147_v39 = vsel %vm2137_vm7, %v2144_v13, %v2146_v16 }
 0x414   : > { %v2150_v36 = vsel %vm2138_vm8, %v2132_v26, %v2149_v10  ;;  %v4675_v9 = vmul.u32.u64.low %v4640_v19, %v2147_v39  ;;  %v4676_v60 = vmul.u32.u64.high %v4640_v19, %v2147_v39, %v4675_v9  ;;  %v2143_v5 = vsel %vm2137_vm7, %v2140_v47, %v2142_v58 }
 0x415   : > { %vm3082_vm9 = vcmp.lt.s32.totalorder %v3081_v40, 0  ;;  %v2151_v12 = vsel %vm2137_vm7, %v2148_v1, %v2150_v36  ;;  %v1858_v30 = vsub.s32 0, %v4670_v29  ;;  %v2010_v14 = vadd.s32 1, %v3083_v51 }
 0x416   : > { %v1967_v8 = vsel %vm3082_vm9, 0, %v3081_v40  ;;  %v4681_v0 = vmul.u32.u64.low %v4640_v19, %v2151_v12  ;;  %v4682_v20 = vmul.u32.u64.high %v4640_v19, %v2151_v12, %v4681_v0  ;;  %v2008_v28 = vor.u32 8388608, %v4644_v53 }
 0x417   : > { %v1968_v23 = vsub.s32 32, %v1967_v8  ;;  %v1972_v45 = vsub.s32 4294967266, %v1967_v8  ;;  %v1969_v11 = vshll.u32 %v4653_v49, %v1967_v8  ;;  %v3076_v22 = vmin.u32 %v1858_v30, %v4670_v29 }
 0x418   : > { %v2162_v27 = vadd.s32 1, %v4676_v60  ;;  %vm2011_vm10 = vcmp.gt.s32.totalorder %v2010_v14, 0  ;;  %v2159_v34 = vmul.u32 %v4640_v19, %v2143_v5  ;;  %vm2161_vm11 = vc.u32 %v4682_v20, %v4675_v9 }
 0x419   : > { %v1970_v3 = vshrl.u32 %v4636_v18, %v1968_v23  ;;  %v1973_v15 = vadd.s32 127, %v1972_v45  ;;  %v1860_v6 = vclz %v3076_v22  ;;  %v2012_v61 = vsel %vm2011_vm10, %v2010_v14, 0 }
 0x41a   : > { %v1848_v49 = vadd.s32 %v4622_v4, %v4630_v57  ;;  %v2163_v53 = vsel %vm2161_vm11, %v2162_v27, %v4676_v60  ;;  %vm1898_vm12 = vcmp.lt.s32.totalorder %v4532_v35, 0  ;;  %v4697_v50 = vshrl.u32 %v2012_v61, 5 }
 0x41b   : > { %v1971_v37 = vor.u32 %v1970_v3, %v1969_v11  ;;  %v1974_v25 = vshll.u32 %v1973_v15, 23  ;;  %v3077_v18 = vadd.s32 4294967294, %v1860_v6  ;;  %v2164_v59 = vadd.s32 %v2163_v53, %v2159_v34 }
 0x41c   : > { %v2014_v43 = vand.u32 31, %v2012_v61  ;;  %vm4701_vm13 = vcmp.le.f32.partialorder %v1896_v7, 0.7853982  ;;  %v4705_v51 = vshll.u32 %v2008_v28, 8  ;;  %v1878_v4 = vsub.s32 4, %v4667_v62 }
 0x41d   : > { %v1975_v26 = vor.u32 4788187, %v1974_v25  ;;  %v1982_v57 = vsub.s32 4, %v4633_v48  ;;  %v1978_v63 = vcvt.s32.f32 %v1971_v37  ;;  %vm3078_vm15 = vcmp.lt.s32.totalorder %v3077_v18, 0 }
 0x41e   : > { %v2165_v56 = vadd.s32 536870912, %v2164_v59  ;;  %v2015_v24 = vsub.s32 32, %v2014_v43  ;;  %v1863_v2 = vsel %vm3078_vm15, 0, %v3077_v18  ;;  %v2017_v17 = vshll.u32 %v3611_v31, %v2014_v43 }
 0x41f   : > { %v1976_v13 = vand.u32 2147483647, %v1975_v26  ;;  %v2020_v7 = vshll.u32 %v3612_v33, %v2014_v43  ;;  %v1864_v1 = vsub.s32 32, %v1863_v2  ;;  %v1868_v40 = vsub.s32 4294967266, %v1863_v2 }
 0x420   : > { %v4711_v47 = vshrl.u32 %v2165_v56, 30  ;;  %v2023_v16 = vshll.u32 %v3613_v38, %v2014_v43  ;;  %vm2032_vm0 = vcmp.lt.s32.totalorder %v4697_v50, 1  ;;  %v1865_v58 = vshll.u32 %v4670_v29, %v1863_v2 }
 0x421   : > { %v1979_v10 = vmul.f32 %v1978_v63, %v1976_v13  ;;  %v2018_v39 = vshrl.u32 %v3612_v33, %v2015_v24  ;;  %v2021_v36 = vshrl.u32 %v3613_v38, %v2015_v24  ;;  %v1866_v12 = vshrl.u32 %v1848_v49, %v1864_v1 }
 0x422   : > { %v1869_v60 = vadd.s32 127, %v1868_v40  ;;  %v2167_v8 = vshll.u32 %v4711_v47, 30  ;;  %v2024_v30 = vshrl.u32 %v3614_v41, %v2015_v24  ;;  %v2026_v5 = vshll.u32 %v3614_v41, %v2014_v43 }
 0x423   : > { %v1980_v0 = vxor.u32 2147483648, %v1979_v10  ;;  %v2019_v23 = vor.u32 %v2018_v39, %v2017_v17  ;;  %v2022_v45 = vor.u32 %v2021_v36, %v2020_v7  ;;  %vm1794_vm1 = vcmp.lt.s32.totalorder %v4534_v46, 0 }
 0x424   : > { %v1867_v14 = vor.u32 %v1866_v12, %v1865_v58  ;;  %v1870_v11 = vshll.u32 %v1869_v60, 23  ;;  %v4722_v29 = vsub.s32 %v2164_v59, %v2167_v8  ;;  %v2025_v22 = vor.u32 %v2024_v30, %v2023_v16 }
 0x425   : > { %v1981_v28 = vsel %vm1898_vm12, %v1980_v0, %v1979_v10  ;;  %v2027_v3 = vshrl.u32 %v3615_v44, %v2015_v24  ;;  %v2029_v15 = vshll.u32 %v3615_v44, %v2014_v43  ;;  %v2030_v27 = vshrl.u32 %v3616_v52, %v2015_v24 }
 0x426   : > { %v1984_v6 = vsel %vm4701_vm13, %v4532_v35, %v1981_v28  ;;  %vm4734_vm2 = vcmp.le.f32.partialorder %v1792_v32, 0.7853982  ;;  %v1871_v61 = vor.u32 4788187, %v1870_v11  ;;  %v2170_v37 = vsub.s32 0, %v4722_v29 }
 0x427   : > { %v2016_v25 = vshrl.u32 %v3611_v31, %v2015_v24  ;;  %3566 = vcosq.f32 %v1984_v6  ;;  %v1874_v49 = vcvt.s32.f32 %v1867_v14  ;;  %v2028_v53 = vor.u32 %v2027_v3, %v2026_v5 }
 0x428   : > { %v2031_v18 = vor.u32 %v2030_v27, %v2029_v15  ;;  %3568 = vsinq.f32 %v1984_v6  ;;  %v1872_v59 = vand.u32 2147483647, %v1871_v61  ;;  %v3088_v43 = vmin.u32 %v2170_v37, %v4722_v29 }
 0x429   : > { %vm2035_vm3 = vcmp.lt.s32.totalorder %v4697_v50, 4  ;;  %vm2034_vm4 = vcmp.lt.s32.totalorder %v4697_v50, 3  ;;  %v2040_v26 = vsel %vm2032_vm0, %v2019_v23, %v2022_v45  ;;  %vm2033_vm5 = vcmp.lt.s32.totalorder %v4697_v50, 2 }
 0x42a   : > { %v2037_v32 = vsel %vm2035_vm3, %v2025_v22, 2102212464  ;;  %v2041_v63 = vsel %vm2035_vm3, %v2028_v53, 920167782  ;;  %v1875_v56 = vmul.f32 %v1874_v49, %v1872_v59  ;;  %v2172_v13 = vclz %v3088_v43 }
 0x42b   : > { %v2042_v24 = vsel %vm2034_vm4, %v2025_v22, %v2041_v63  ;;  %v2036_v2 = vsel %vm2032_vm0, %v2016_v25, %v2019_v23  ;;  %v2044_v7 = vsel %vm2032_vm0, %v2022_v45, %v2025_v22  ;;  %v2045_v1 = vsel %vm2035_vm3, %v2031_v18, 1326507024 }
 0x42c   : > { %v2043_v17 = vsel %vm2033_vm5, %v2040_v26, %v2042_v24  ;;  %v1876_v40 = vxor.u32 2147483648, %v1875_v56  ;;  %v3089_v16 = vadd.s32 4294967294, %v2172_v13  ;;  %v2038_v10 = vsel %vm2034_vm4, %v2022_v45, %v2037_v32 }
 0x42d   : > { %v2046_v58 = vsel %vm2034_vm4, %v2028_v53, %v2045_v1  ;;  %v4755_v36 = vmul.u32.u64.low %v4705_v51, %v2043_v17  ;;  %v4756_v12 = vmul.u32.u64.high %v4705_v51, %v2043_v17, %v4755_v36  ;;  %v1879_v60 = vsel %vm1794_vm1, %v1878_v4, %v4667_v62 }
 0x42e   : > { %v2047_v39 = vsel %vm2033_vm5, %v2044_v7, %v2046_v58  ;;  %v1877_v8 = vsel %vm1794_vm1, %v1876_v40, %v1875_v56  ;;  %vm3090_vm6 = vcmp.lt.s32.totalorder %v3089_v16, 0  ;;  %v2039_v5 = vsel %vm2033_vm5, %v2036_v2, %v2038_v10 }
 0x42f   : > { %v4767_v30 = vmul.u32.u64.low %v4705_v51, %v2047_v39  ;;  %v4768_v0 = vmul.u32.u64.high %v4705_v51, %v2047_v39, %v4767_v30  ;;  %v1880_v23 = vsel %vm4734_vm2, %v4534_v46, %v1877_v8  ;;  %v2175_v45 = vsel %vm3090_vm6, 0, %v3089_v16 }
 0x430   : > { %v1983_v62 = vsel %vm1898_vm12, %v1982_v57, %v4633_v48  ;;  %3570 = vcosq.f32 %v1880_v23  ;;  %v2180_v4 = vsub.s32 4294967266, %v2175_v45  ;;  %v1881_v14 = vsel %vm4734_vm2, 0, %v1879_v60 }
 0x431   : > { %v3567_v11 = vpop.eup %3566  ;;  %3572 = vsinq.f32 %v1880_v23  ;;  %v2058_v22 = vadd.s32 1, %v4756_v12  ;;  %v1985_v28 = vsel %vm4701_vm13, 0, %v1983_v62  ;;  %v2176_v3 = vsub.s32 32, %v2175_v45 }
 0x432   : > { %v3569_v50 = vpop.eup %3568  ;;  %v2181_v15 = vadd.s32 127, %v2180_v4  ;;  %v2055_v27 = vmul.u32 %v4705_v51, %v2039_v5  ;;  %vm2057_vm7 = vc.u32 %v4768_v0, %v4755_v36  ;;  %v1885_v57 = vadd.s32 3, %v1881_v14 }
 0x433   : > { %v2059_v48 = vsel %vm2057_vm7, %v2058_v22, %v4756_v12  ;;  %v2160_v6 = vadd.s32 %v4675_v9, %v4682_v20  ;;  %v1989_v37 = vadd.s32 3, %v1985_v28  ;;  %v1993_v25 = vxor.u32 2147483648, %v3569_v50 }
 0x434   : > { %v2182_v34 = vshll.u32 %v2181_v15, 23  ;;  %v2060_v61 = vadd.s32 %v2059_v48, %v2055_v27  ;;  %v1996_v18 = vxor.u32 2147483648, %v3567_v11  ;;  %v1886_v59 = vand.u32 3, %v1885_v57 }
 0x435   : > { %v2178_v19 = vshrl.u32 %v2160_v6, %v2176_v3  ;;  %v1990_v53 = vand.u32 3, %v1989_v37  ;;  %v2177_v51 = vshll.u32 %v4722_v29, %v2175_v45  ;;  %vm1988_vm12 = vweird.f32 %v4532_v35 }
 0x436   : > { %v2061_v49 = vadd.s32 536870912, %v2060_v61  ;;  %v2183_v43 = vor.u32 4788187, %v2182_v34  ;;  %vm1891_vm11 = vcmp.eq.s32.totalorder %v1886_v59, 2  ;;  %vm1888_vm13 = vcmp.eq.s32.totalorder %v1886_v59, 0 }
 0x437   : > { %vm1992_vm8 = vcmp.eq.s32.totalorder %v1990_v53, 0  ;;  %vm1995_vm9 = vcmp.eq.s32.totalorder %v1990_v53, 2  ;;  %v2179_v56 = vor.u32 %v2178_v19, %v2177_v51  ;;  %vm1991_vm10 = vcmp.lt.s32.totalorder %v1990_v53, 2 }
 0x438   : > { %v4792_v32 = vshrl.u32 %v2061_v49, 30  ;;  %v1994_v26 = vsel %vm1992_vm8, %v3567_v11, %v1993_v25  ;;  %v1997_v20 = vsel %vm1995_vm9, %v1996_v18, %v3569_v50  ;;  %v2184_v17 = vand.u32 2147483647, %v2183_v43 }
 0x439   : > { %v1998_v2 = vsel %vm1991_vm10, %v1994_v26, %v1997_v20  ;;  %v2186_v16 = vcvt.s32.f32 %v2179_v56  ;;  %vm1887_vm15 = vcmp.lt.s32.totalorder %v1886_v59, 2  ;;  %vm1884_vm0 = vweird.f32 %v4534_v46 }
 0x43a   : > { %v3571_v63 = vpop.eup %3570  ;;  %v2063_v9 = vshll.u32 %v4792_v32, 30  ;;  %v1999_v1 = vsel %vm1988_vm12, nan, %v1998_v2  ;;  %vm2106_vm2 = vcmp.lt.s32.totalorder %v4542_v21, 0  ;;  %v2056_v46 = vadd.s32 %v4755_v36, %v4768_v0 }
 0x43b   : > { %v3573_v13 = vpop.eup %3572  ;;  %v1892_v24 = vxor.u32 2147483648, %v3571_v63  ;;  %v2187_v12 = vmul.f32 %v2186_v16, %v2184_v17  ;;  %vm4804_vm3 = vcmp.le.f32.partialorder %v2104_v54, 0.7853982  ;;  %v2190_v48 = vsub.s32 4, %v4711_v47 }
 0x43c   : > { %v2064_v29 = vsub.s32 %v2060_v61, %v2063_v9  ;;  %v1889_v7 = vxor.u32 2147483648, %v3573_v13  ;;  %v2086_v34 = vsub.s32 4, %v4792_v32  ;;  %vm2002_vm4 = vcmp.lt.s32.totalorder %v4548_v42, 0 }
 0x43d   : > { %v1893_v40 = vsel %vm1891_vm11, %v1892_v24, %v3573_v13  ;;  %v2188_v35 = vxor.u32 2147483648, %v2187_v12  ;;  %v2191_v54 = vsel %vm2106_vm2, %v2190_v48, %v4711_v47  ;;  %vm2001_vm5 = vcmp.le.f32.partialorder %v2000_v55, 0.7853982 }
 0x43e   : > { %v2066_v10 = vsub.s32 0, %v2064_v29  ;;  %v1890_v58 = vsel %vm1888_vm13, %v3571_v63, %v1889_v7  ;;  %v2193_v37 = vsel %vm4804_vm3, 0, %v2191_v54  ;;  %v2087_v19 = vsel %vm2002_vm4, %v2086_v34, %v4792_v32 }
 0x43f   : > { %v1894_v39 = vsel %vm1887_vm15, %v1890_v58, %v1893_v40  ;;  %v2189_v62 = vsel %vm2106_vm2, %v2188_v35, %v2187_v12  ;;  %v2197_v53 = vadd.s32 3, %v2193_v37  ;;  %v2089_v59 = vsel %vm2001_vm5, 0, %v2087_v19  ;;  %v2210_v58 = vld [vmem:[%s5170_s8 + $0x10] sm:$0xff] }
 0x440   : > { %v3084_v60 = vmin.u32 %v2066_v10, %v2064_v29  ;;  %v1895_v8 = vsel %vm1884_vm0, nan, %v1894_v39  ;;  %v2192_v3 = vsel %vm4804_vm3, %v4542_v21, %v2189_v62  ;;  %v2093_v43 = vadd.s32 3, %v2089_v59  ;;  %v2209_v10 = vld [vmem:[%s5170_s8 + $0x8] sm:$0xff]  ;;  %v2224_v39 = vpop.permute.xlu1 %2223 }
 0x441   : > { %v3428_v30 = vpack.c.bf16 %v1999_v1, %v1895_v8  ;;  %3574 = vcosq.f32 %v2192_v3  ;;  %v2198_v51 = vand.u32 3, %v2197_v53  ;;  %vm2196_vm11 = vweird.f32 %v4542_v21  ;;  %v2211_v21 = vld [vmem:[%s5170_s8 + $0x18] sm:$0xff] }
 0x442   : > { %v2068_v23 = vclz %v3084_v60  ;;  %3576 = vsinq.f32 %v2192_v3  ;;  %v2094_v56 = vand.u32 3, %v2093_v43  ;;  %vm2092_vm13 = vweird.f32 %v4548_v42  ;;  %v2219_v60 = vpop.permute.xlu0 %2218 }
 0x443   : > { %3429 = vmatprep.subr.bf16.mxu0 %v3428_v30  ;;  %vm2200_vm6 = vcmp.eq.s32.totalorder %v2198_v51, 0  ;;  %vm2203_vm7 = vcmp.eq.s32.totalorder %v2198_v51, 2  ;;  %vm2199_vm8 = vcmp.lt.s32.totalorder %v2198_v51, 2 }
 0x444   : > { %v3085_v45 = vadd.s32 4294967294, %v2068_v23  ;;  %3431 = vmatpush3.bf16.msra.mxu0 %v3428_v30  ;;  %vm2099_vm9 = vcmp.eq.s32.totalorder %v2094_v56, 2  ;;  %vm2096_vm10 = vcmp.eq.s32.totalorder %v2094_v56, 0  ;;  %vm2095_vm12 = vcmp.lt.s32.totalorder %v2094_v56, 2 }
 0x446   : > { %vm3086_vm1 = vcmp.lt.s32.totalorder %v3085_v45, 0 }
 0x447   : > { %v2071_v5 = vsel %vm3086_vm1, 0, %v3085_v45 }
 0x448   : > { %v2072_v4 = vsub.s32 32, %v2071_v5  ;;  %v2076_v14 = vsub.s32 4294967266, %v2071_v5  ;;  %v2073_v22 = vshll.u32 %v2064_v29, %v2071_v5  ;;  %v2234_v5 = vpop.permute.xlu1 %2233 }
 0x44a   : > { %v2074_v28 = vshrl.u32 %v2056_v46, %v2072_v4  ;;  %v2077_v50 = vadd.s32 127, %v2076_v14 }
 0x44b   : > { %v3575_v18 = vpop.eup %3574 }
 0x44c   : > { %v2075_v15 = vor.u32 %v2074_v28, %v2073_v22  ;;  %v2078_v27 = vshll.u32 %v2077_v50, 23  ;;  %v3577_v47 = vpop.eup %3576  ;;  %v2204_v63 = vxor.u32 2147483648, %v3575_v18 }
 0x44d   : > { %v2201_v26 = vxor.u32 2147483648, %v3577_v47 }
 0x44e   : > { %v2079_v36 = vor.u32 4788187, %v2078_v27  ;;  %v2082_v57 = vcvt.s32.f32 %v2075_v15  ;;  %v2205_v55 = vsel %vm2203_vm7, %v2204_v63, %v3577_v47  ;;  %v2229_v27 = vpop.permute.xlu0 %2228 }
 0x44f   : > { %v2202_v9 = vsel %vm2200_vm6, %v3575_v18, %v2201_v26 }
 0x450   : > { %v2080_v0 = vand.u32 2147483647, %v2079_v36  ;;  %v2206_v24 = vsel %vm2199_vm8, %v2202_v9, %v2205_v55 }
 0x451   : > { %v2207_v7 = vsel %vm2196_vm11, nan, %v2206_v24 }
 0x452   : > { %v2083_v6 = vmul.f32 %v2082_v57, %v2080_v0 }
 0x454   : > { %v2084_v61 = vxor.u32 2147483648, %v2083_v6 }
 0x456   : > { %v2085_v25 = vsel %vm2002_vm4, %v2084_v61, %v2083_v6 }
 0x457   : > { %v2088_v49 = vsel %vm2001_vm5, %v4548_v42, %v2085_v25  ;;  %v3617_v42 = vmov 0.0|0.0  }
 0x458   : > { %3578 = vcosq.f32 %v2088_v49 }
 0x459   : > { %3580 = vsinq.f32 %v2088_v49 }
 0x462   : > { %v3579_v20 = vpop.eup %3578 }
 0x463   : > { %v3581_v32 = vpop.eup %3580  ;;  %v2100_v13 = vxor.u32 2147483648, %v3579_v20 }
 0x464   : > { %v2097_v2 = vxor.u32 2147483648, %v3581_v32 }
 0x465   : > { %v2101_v17 = vsel %vm2099_vm9, %v2100_v13, %v3581_v32 }
 0x466   : > { %v2098_v29 = vsel %vm2096_vm10, %v3579_v20, %v2097_v2 }
 0x467   : > { %v2102_v1 = vsel %vm2095_vm12, %v2098_v29, %v2101_v17 }
 0x468   : > { %v2103_v40 = vsel %vm2092_vm13, nan, %v2102_v1 }
 0x469   : > { %v3432_v16 = vpack.c.bf16 %v2207_v7, %v2103_v40 }
 0x46b   : > { %3433 = vmatprep.subr.bf16.mxu0 %v3432_v16 }
 0x46c   : > { %3435 = vmatpush3.bf16.msra.mxu0 %v3432_v16 }
 0x46d   : > { %3436 = vmatprep.subr.bf16.mxu0 %v3617_v42 }
 0x46f   : > { %3300 = vmatmul.mubr.msk.f32.vlgmr.msra.gmra.mrb[4].mxu0 %vm1048_vm14, %v2209_v10 }
 0x470   : > { %3302 = vmatprep.mubr.msk.f32.mxu0 %vm1048_vm14, %v2210_v58 }
 0x473   : > { %3303 = vmatmul.mubr.msk.f32.gmra.mrb[6].mxu0 %vm1048_vm14, %v2211_v21 }
 0x542   : > { %v3301_v12 = vpop.f32.mrb[4].mxu0 }
 0x543   : > { %v4838_v8 = vadd.f32 %v3301_v12, %v2224_v39  ;;  %v2314_v30 = vpop.f32.mrb[5].mxu0 }
 0x544   : > { %v4840_v23 = vadd.f32 %v2314_v30, %v2219_v60 }
 0x545   : > { %v2437_v35 = vand.u32 2147483647, %v4838_v8  ;;  %v2440_v45 = vand.u32 2139095040, %v4838_v8  ;;  %vm2439_vm12 = vcmp.lt.s32.totalorder %v4838_v8, 0 }
 0x546   : > { %v2333_v62 = vand.u32 2147483647, %v4840_v23  ;;  %v2336_v46 = vand.u32 2139095040, %v4840_v23  ;;  %v3304_v4 = vpop.f32.mrb[6].mxu0 }
 0x547   : > { %v2441_v14 = vshrl.u32 %v2440_v45, 23  ;;  %v2444_v11 = vand.u32 8388607, %v2437_v35  ;;  %v4848_v22 = vadd.f32 %v3304_v4, %v2234_v5  ;;  %v2324_v28 = vpop.f32.mrb[7].mxu0 }
 0x548   : > { %v2337_v50 = vshrl.u32 %v2336_v46, 23  ;;  %v2340_v3 = vand.u32 8388607, %v2333_v62  ;;  %v4853_v54 = vadd.f32 %v2324_v28, %v2229_v27 }
 0x549   : > { %v3099_v15 = vadd.s32 4294967169, %v2441_v14  ;;  %v2648_v36 = vand.u32 2139095040, %v4848_v22  ;;  %v2445_v0 = vor.u32 8388608, %v2444_v11  ;;  %v2645_v61 = vand.u32 2147483647, %v4848_v22 }
 0x54a   : > { %v3095_v48 = vadd.s32 4294967169, %v2337_v50  ;;  %v2341_v6 = vor.u32 8388608, %v2340_v3  ;;  %v2541_v47 = vand.u32 2147483647, %v4853_v54 }
 0x54b   : > { %v2447_v57 = vadd.s32 1, %v3099_v15  ;;  %v2649_v37 = vshrl.u32 %v2648_v36, 23  ;;  %v4857_v59 = vshll.u32 %v2445_v0, 8  ;;  %v4865_v26 = vand.u32 8388607, %v2645_v61 }
 0x54c   : > { %v2343_v34 = vadd.s32 1, %v3095_v48  ;;  %v4861_v43 = vshll.u32 %v2341_v6, 8 }
 0x54d   : > { %vm2448_vm15 = vcmp.gt.s32.totalorder %v2447_v57, 0  ;;  %v3107_v19 = vadd.s32 4294967169, %v2649_v37 }
 0x54e   : > { %v2449_v25 = vsel %vm2448_vm15, %v2447_v57, 0  ;;  %vm2344_vm0 = vcmp.gt.s32.totalorder %v2343_v34, 0 }
 0x54f   : > { %v2450_v49 = vshrl.u32 %v2449_v25, 5  ;;  %v2451_v53 = vand.u32 31, %v2449_v25  ;;  %v2345_v18 = vsel %vm2344_vm0, %v2343_v34, 0  ;;  %v4868_v55 = vadd.s32 1, %v3107_v19 }
 0x550   : > { %v4859_v51 = vshrl.u32 %v2345_v18, 5  ;;  %v2347_v9 = vand.u32 31, %v2345_v18 }
 0x551   : > { %v2452_v63 = vsub.s32 32, %v2451_v53  ;;  %v2454_v56 = vshll.u32 %v3611_v31, %v2451_v53  ;;  %v2457_v20 = vshll.u32 %v3612_v33, %v2451_v53  ;;  %v2460_v32 = vshll.u32 %v3613_v38, %v2451_v53 }
 0x552   : > { %v2463_v13 = vshll.u32 %v3614_v41, %v2451_v53  ;;  %v2466_v24 = vshll.u32 %v3615_v44, %v2451_v53  ;;  %vm2469_vm1 = vcmp.lt.s32.totalorder %v2450_v49, 1  ;;  %vm2470_vm2 = vcmp.lt.s32.totalorder %v2450_v49, 2 }
 0x553   : > { %v2455_v2 = vshrl.u32 %v3612_v33, %v2452_v63  ;;  %v2458_v17 = vshrl.u32 %v3613_v38, %v2452_v63  ;;  %v2461_v29 = vshrl.u32 %v3614_v41, %v2452_v63  ;;  %v2453_v7 = vshrl.u32 %v3611_v31, %v2452_v63 }
 0x554   : > { %v2464_v1 = vshrl.u32 %v3615_v44, %v2452_v63  ;;  %v2467_v40 = vshrl.u32 %v3616_v52, %v2452_v63  ;;  %v2348_v21 = vsub.s32 32, %v2347_v9  ;;  %vm2471_vm3 = vcmp.lt.s32.totalorder %v2450_v49, 3 }
 0x555   : > { %v2456_v16 = vor.u32 %v2455_v2, %v2454_v56  ;;  %v2459_v10 = vor.u32 %v2458_v17, %v2457_v20  ;;  %v2462_v58 = vor.u32 %v2461_v29, %v2460_v32  ;;  %vm2472_vm4 = vcmp.lt.s32.totalorder %v2450_v49, 4 }
 0x556   : > { %v2465_v39 = vor.u32 %v2464_v1, %v2463_v13  ;;  %v2468_v12 = vor.u32 %v2467_v40, %v2466_v24  ;;  %v2350_v11 = vshll.u32 %v3611_v31, %v2347_v9  ;;  %v2351_v3 = vshrl.u32 %v3612_v33, %v2348_v21 }
 0x557   : > { %v2473_v60 = vsel %vm2469_vm1, %v2453_v7, %v2456_v16  ;;  %v2474_v30 = vsel %vm2472_vm4, %v2462_v58, 2102212464  ;;  %v2477_v45 = vsel %vm2469_vm1, %v2456_v16, %v2459_v10  ;;  %v2481_v5 = vsel %vm2469_vm1, %v2459_v10, %v2462_v58 }
 0x558   : > { %v2475_v46 = vsel %vm2471_vm3, %v2459_v10, %v2474_v30  ;;  %v2478_v4 = vsel %vm2472_vm4, %v2465_v39, 920167782  ;;  %v2482_v14 = vsel %vm2472_vm4, %v2468_v12, 1326507024  ;;  %v2353_v15 = vshll.u32 %v3612_v33, %v2347_v9 }
 0x559   : > { %v2479_v28 = vsel %vm2471_vm3, %v2462_v58, %v2478_v4  ;;  %v2483_v50 = vsel %vm2471_vm3, %v2465_v39, %v2482_v14  ;;  %v2476_v27 = vsel %vm2470_vm2, %v2473_v60, %v2475_v46  ;;  %v2354_v0 = vshrl.u32 %v3613_v38, %v2348_v21 }
 0x55a   : > { %v2480_v48 = vsel %vm2470_vm2, %v2477_v45, %v2479_v28  ;;  %v2484_v36 = vsel %vm2470_vm2, %v2481_v5, %v2483_v50  ;;  %v2352_v25 = vor.u32 %v2351_v3, %v2350_v11  ;;  %v2356_v53 = vshll.u32 %v3613_v38, %v2347_v9 }
 0x55b   : > { %v4891_v57 = vmul.u32.u64.low %v4857_v59, %v2484_v36  ;;  %v4892_v6 = vmul.u32.u64.high %v4857_v59, %v2484_v36, %v4891_v57  ;;  %v4895_v34 = vmul.u32.u64.low %v4857_v59, %v2480_v48  ;;  %v4896_v37 = vmul.u32.u64.high %v4857_v59, %v2480_v48, %v4895_v34 }
 0x55c   : > { %v2355_v19 = vor.u32 %v2354_v0, %v2353_v15  ;;  %v2357_v18 = vshrl.u32 %v3614_v41, %v2348_v21  ;;  %v2349_v63 = vshrl.u32 %v3611_v31, %v2348_v21  ;;  %v2359_v49 = vshll.u32 %v3614_v41, %v2347_v9 }
 0x55d   : > { %v2360_v56 = vshrl.u32 %v3615_v44, %v2348_v21  ;;  %v2363_v20 = vshrl.u32 %v3616_v52, %v2348_v21  ;;  %v2492_v32 = vmul.u32 %v4857_v59, %v2476_v27  ;;  %v2362_v24 = vshll.u32 %v3615_v44, %v2347_v9 }
 0x55e   : > { %v2358_v13 = vor.u32 %v2357_v18, %v2356_v53  ;;  %vm2365_vm5 = vcmp.lt.s32.totalorder %v4859_v51, 1  ;;  %vm2494_vm6 = vc.u32 %v4892_v6, %v4895_v34  ;;  %v2495_v2 = vadd.s32 1, %v4896_v37 }
 0x55f   : > { %v2361_v17 = vor.u32 %v2360_v56, %v2359_v49  ;;  %vm2366_vm7 = vcmp.lt.s32.totalorder %v4859_v51, 2  ;;  %v2364_v29 = vor.u32 %v2363_v20, %v2362_v24  ;;  %vm2367_vm8 = vcmp.lt.s32.totalorder %v4859_v51, 3 }
 0x560   : > { %vm2368_vm9 = vcmp.lt.s32.totalorder %v4859_v51, 4  ;;  %v2373_v7 = vsel %vm2365_vm5, %v2352_v25, %v2355_v19  ;;  %v2496_v59 = vsel %vm2494_vm6, %v2495_v2, %v4896_v37  ;;  %v2377_v9 = vsel %vm2365_vm5, %v2355_v19, %v2358_v13 }
 0x561   : > { %v2370_v1 = vsel %vm2368_vm9, %v2358_v13, 2102212464  ;;  %v2374_v40 = vsel %vm2368_vm9, %v2361_v17, 920167782  ;;  %v2497_v16 = vadd.s32 %v2496_v59, %v2492_v32  ;;  %v2369_v10 = vsel %vm2365_vm5, %v2349_v63, %v2352_v25 }
 0x562   : > { %v2375_v58 = vsel %vm2367_vm8, %v2358_v13, %v2374_v40  ;;  %v2378_v21 = vsel %vm2368_vm9, %v2364_v29, 1326507024  ;;  %v2371_v39 = vsel %vm2367_vm8, %v2355_v19, %v2370_v1  ;;  %vm2656_vm10 = vcmp.gt.s32.totalorder %v4868_v55, 0 }
 0x563   : > { %v2376_v12 = vsel %vm2366_vm7, %v2373_v7, %v2375_v58  ;;  %v2379_v60 = vsel %vm2367_vm8, %v2361_v17, %v2378_v21  ;;  %v2498_v30 = vadd.s32 536870912, %v2497_v16  ;;  %v2653_v11 = vor.u32 8388608, %v4865_v26 }
 0x564   : > { %v2380_v45 = vsel %vm2366_vm7, %v2377_v9, %v2379_v60  ;;  %v4919_v5 = vmul.u32.u64.low %v4861_v43, %v2376_v12  ;;  %v4920_v46 = vmul.u32.u64.high %v4861_v43, %v2376_v12, %v4919_v5  ;;  %v2657_v28 = vsel %vm2656_vm10, %v4868_v55, 0 }
 0x565   : > { %v4924_v4 = vmul.u32.u64.low %v4861_v43, %v2380_v45  ;;  %v4925_v14 = vmul.u32.u64.high %v4861_v43, %v2380_v45, %v4924_v4  ;;  %v2499_v50 = vshrl.u32 %v2498_v30, 30  ;;  %v2372_v3 = vsel %vm2366_vm7, %v2369_v10, %v2371_v39 }
 0x566   : > { %v2659_v15 = vand.u32 31, %v2657_v28  ;;  %v2544_v27 = vand.u32 2139095040, %v4853_v54  ;;  %v2391_v36 = vadd.s32 1, %v4920_v46  ;;  %v2388_v57 = vmul.u32 %v4861_v43, %v2372_v3 }
 0x567   : > { %v2500_v48 = vshll.u32 %v2499_v50, 30  ;;  %vm2390_vm11 = vc.u32 %v4925_v14, %v4919_v5  ;;  %v4938_v26 = vand.u32 8388607, %v2541_v47  ;;  %v4943_v37 = vshll.u32 %v2653_v11, 8 }
 0x568   : > { %v2660_v0 = vsub.s32 32, %v2659_v15  ;;  %v2392_v51 = vsel %vm2390_vm11, %v2391_v36, %v4920_v46  ;;  %v2545_v25 = vshrl.u32 %v2544_v27, 23  ;;  %v2662_v53 = vshll.u32 %v3611_v31, %v2659_v15 }
 0x569   : > { %v4940_v55 = vsub.s32 %v2497_v16, %v2500_v48  ;;  %v2393_v19 = vadd.s32 %v2392_v51, %v2388_v57  ;;  %v2493_v63 = vadd.s32 %v4895_v34, %v4892_v6  ;;  %v2665_v56 = vshll.u32 %v3612_v33, %v2659_v15 }
 0x56a   : > { %v2663_v43 = vshrl.u32 %v3612_v33, %v2660_v0  ;;  %v2666_v18 = vshrl.u32 %v3613_v38, %v2660_v0  ;;  %v2669_v20 = vshrl.u32 %v3614_v41, %v2660_v0  ;;  %v2658_v13 = vshrl.u32 %v2657_v28, 5 }
 0x56b   : > { %v2503_v49 = vsub.s32 0, %v4940_v55  ;;  %v2394_v32 = vadd.s32 536870912, %v2393_v19  ;;  %v2668_v2 = vshll.u32 %v3613_v38, %v2659_v15  ;;  %v2671_v7 = vshll.u32 %v3614_v41, %v2659_v15 }
 0x56c   : > { %v2664_v24 = vor.u32 %v2663_v43, %v2662_v53  ;;  %v2667_v29 = vor.u32 %v2666_v18, %v2665_v56  ;;  %v2672_v59 = vshrl.u32 %v3615_v44, %v2660_v0  ;;  %v2523_v1 = vsub.s32 4, %v2499_v50 }
 0x56d   : > { %v3100_v17 = vmin.u32 %v2503_v49, %v4940_v55  ;;  %v4957_v6 = vshrl.u32 %v2394_v32, 30  ;;  %v2670_v34 = vor.u32 %v2669_v20, %v2668_v2  ;;  %v2675_v40 = vshrl.u32 %v3616_v52, %v2660_v0 }
 0x56e   : > { %v2661_v16 = vshrl.u32 %v3611_v31, %v2660_v0  ;;  %v2673_v10 = vor.u32 %v2672_v59, %v2671_v7  ;;  %v2674_v58 = vshll.u32 %v3615_v44, %v2659_v15  ;;  %vm2677_vm13 = vcmp.lt.s32.totalorder %v2658_v13, 1 }
 0x56f   : > { %v2505_v9 = vclz %v3100_v17  ;;  %v2396_v21 = vshll.u32 %v4957_v6, 30  ;;  %vm2679_vm15 = vcmp.lt.s32.totalorder %v2658_v13, 3  ;;  %vm2680_vm0 = vcmp.lt.s32.totalorder %v2658_v13, 4 }
 0x570   : > { %v2676_v12 = vor.u32 %v2675_v40, %v2674_v58  ;;  %v2685_v60 = vsel %vm2677_vm13, %v2664_v24, %v2667_v29  ;;  %v2686_v30 = vsel %vm2680_vm0, %v2673_v10, 920167782  ;;  %vm2678_vm1 = vcmp.lt.s32.totalorder %v2658_v13, 2 }
 0x571   : > { %v3101_v39 = vadd.s32 4294967294, %v2505_v9  ;;  %v4965_v45 = vsub.s32 %v2393_v19, %v2396_v21  ;;  %v2682_v46 = vsel %vm2680_vm0, %v2670_v34, 2102212464  ;;  %v2687_v4 = vsel %vm2679_vm15, %v2670_v34, %v2686_v30 }
 0x572   : > { %v2524_v11 = vsel %vm2439_vm12, %v2523_v1, %v2499_v50  ;;  %v2688_v28 = vsel %vm2678_vm1, %v2685_v60, %v2687_v4  ;;  %v3103_v3 = vadd.s32 4294967169, %v2545_v25  ;;  %v2681_v48 = vsel %vm2677_vm13, %v2661_v16, %v2664_v24 }
 0x573   : > { %vm3102_vm2 = vcmp.lt.s32.totalorder %v3101_v39, 0  ;;  %v2399_v27 = vsub.s32 0, %v4965_v45  ;;  %v2689_v36 = vsel %vm2677_vm13, %v2667_v29, %v2670_v34  ;;  %v2683_v51 = vsel %vm2679_vm15, %v2667_v29, %v2682_v46 }
 0x574   : > { %v2508_v15 = vsel %vm3102_vm2, 0, %v3101_v39  ;;  %v2690_v19 = vsel %vm2680_vm0, %v2676_v12, 1326507024  ;;  %vm2335_vm3 = vcmp.lt.s32.totalorder %v4840_v23, 0  ;;  %v2551_v17 = vadd.s32 1, %v3103_v3 }
 0x575   : > { %v2509_v0 = vsub.s32 32, %v2508_v15  ;;  %v2513_v57 = vsub.s32 4294967266, %v2508_v15  ;;  %v3096_v50 = vmin.u32 %v2399_v27, %v4965_v45  ;;  %v2691_v53 = vsel %vm2679_vm15, %v2673_v10, %v2690_v19 }
 0x576   : > { %v4981_v25 = vmul.u32.u64.low %v4943_v37, %v2688_v28  ;;  %v4982_v43 = vmul.u32.u64.high %v4943_v37, %v2688_v28, %v4981_v25  ;;  %v2510_v18 = vshll.u32 %v4940_v55, %v2508_v15  ;;  %v2692_v20 = vsel %vm2678_vm1, %v2689_v36, %v2691_v53 }
 0x577   : > { %v2511_v49 = vshrl.u32 %v2493_v63, %v2509_v0  ;;  %v2514_v56 = vadd.s32 127, %v2513_v57  ;;  %v2401_v32 = vclz %v3096_v50  ;;  %vm4993_vm4 = vcmp.le.f32.partialorder %v2437_v35, 0.7853982 }
 0x578   : > { %v4988_v24 = vmul.u32.u64.low %v4943_v37, %v2692_v20  ;;  %v4989_v2 = vmul.u32.u64.high %v4943_v37, %v2692_v20, %v4988_v24  ;;  %v2684_v55 = vsel %vm2678_vm1, %v2681_v48, %v2683_v51  ;;  %v2703_v1 = vadd.s32 1, %v4982_v43 }
 0x579   : > { %v2512_v7 = vor.u32 %v2511_v49, %v2510_v18  ;;  %v2515_v59 = vshll.u32 %v2514_v56, 23  ;;  %v3097_v63 = vadd.s32 4294967294, %v2401_v32  ;;  %v2549_v34 = vor.u32 8388608, %v4938_v26 }
 0x57a   : > { %vm2552_vm5 = vcmp.gt.s32.totalorder %v2551_v17, 0  ;;  %v2526_v9 = vsel %vm4993_vm4, 0, %v2524_v11  ;;  %v2419_v16 = vsub.s32 4, %v4957_v6  ;;  %v2700_v58 = vmul.u32 %v4943_v37, %v2684_v55 }
 0x57b   : > { %v2516_v40 = vor.u32 4788187, %v2515_v59  ;;  %v2553_v35 = vsel %vm2552_vm5, %v2551_v17, 0  ;;  %v2519_v10 = vcvt.s32.f32 %v2512_v7  ;;  %vm3098_vm6 = vcmp.lt.s32.totalorder %v3097_v63, 0 }
 0x57c   : > { %vm2702_vm7 = vc.u32 %v4989_v2, %v4981_v25  ;;  %v2404_v21 = vsel %vm3098_vm6, 0, %v3097_v63  ;;  %v2555_v26 = vand.u32 31, %v2553_v35  ;;  %v2389_v12 = vadd.s32 %v4919_v5, %v4925_v14 }
 0x57d   : > { %v2517_v13 = vand.u32 2147483647, %v2516_v40  ;;  %v2704_v39 = vsel %vm2702_vm7, %v2703_v1, %v4982_v43  ;;  %v2405_v60 = vsub.s32 32, %v2404_v21  ;;  %v2409_v30 = vsub.s32 4294967266, %v2404_v21 }
 0x57e   : > { %v2705_v46 = vadd.s32 %v2704_v39, %v2700_v58  ;;  %v5009_v11 = vadd.s32 3, %v2526_v9  ;;  %vm5013_vm8 = vcmp.le.f32.partialorder %v2333_v62, 0.7853982  ;;  %v5020_v28 = vsel %vm2335_vm3, %v2419_v16, %v4957_v6 }
 0x57f   : > { %v2520_v4 = vmul.f32 %v2519_v10, %v2517_v13  ;;  %v2556_v3 = vsub.s32 32, %v2555_v26  ;;  %v2406_v5 = vshll.u32 %v4965_v45, %v2404_v21  ;;  %v2407_v14 = vshrl.u32 %v2389_v12, %v2405_v60 }
 0x580   : > { %v2410_v15 = vadd.s32 127, %v2409_v30  ;;  %v2706_v27 = vadd.s32 536870912, %v2705_v46  ;;  %v5023_v36 = vshrl.u32 %v2553_v35, 5  ;;  %v2558_v0 = vshll.u32 %v3611_v31, %v2555_v26 }
 0x581   : > { %v2521_v48 = vxor.u32 2147483648, %v2520_v4  ;;  %v2559_v62 = vshrl.u32 %v3612_v33, %v2556_v3  ;;  %v2408_v57 = vor.u32 %v2407_v14, %v2406_v5  ;;  %v2565_v6 = vshrl.u32 %v3614_v41, %v2556_v3 }
 0x582   : > { %v2411_v51 = vshll.u32 %v2410_v15, 23  ;;  %v5027_v19 = vshrl.u32 %v2706_v27, 30  ;;  %v2561_v45 = vshll.u32 %v3612_v33, %v2555_v26  ;;  %v2562_v53 = vshrl.u32 %v3613_v38, %v2556_v3 }
 0x583   : > { %v2522_v50 = vsel %vm2439_vm12, %v2521_v48, %v2520_v4  ;;  %v2564_v43 = vshll.u32 %v3613_v38, %v2555_v26  ;;  %v2560_v20 = vor.u32 %v2559_v62, %v2558_v0  ;;  %v2415_v32 = vcvt.s32.f32 %v2408_v57 }
 0x584   : > { %v2525_v18 = vsel %vm4993_vm4, %v4838_v8, %v2522_v50  ;;  %v2412_v49 = vor.u32 4788187, %v2411_v51  ;;  %v2708_v56 = vshll.u32 %v5027_v19, 30  ;;  %v2567_v24 = vshll.u32 %v3614_v41, %v2555_v26 }
 0x585   : > { %3582 = vcosq.f32 %v2525_v18  ;;  %v2568_v17 = vshrl.u32 %v3615_v44, %v2556_v3  ;;  %v2566_v55 = vor.u32 %v2565_v6, %v2564_v43  ;;  %v2563_v63 = vor.u32 %v2562_v53, %v2561_v45 }
 0x586   : > { %3584 = vsinq.f32 %v2525_v18  ;;  %v2413_v7 = vand.u32 2147483647, %v2412_v49  ;;  %v5041_v59 = vsub.s32 %v2705_v46, %v2708_v56  ;;  %v2570_v29 = vshll.u32 %v3615_v44, %v2555_v26 }
 0x587   : > { %v2569_v1 = vor.u32 %v2568_v17, %v2567_v24  ;;  %v2571_v40 = vshrl.u32 %v3616_v52, %v2556_v3  ;;  %v2422_v16 = vsel %vm5013_vm8, 0, %v5020_v28  ;;  %v2589_v10 = vshll.u32 %v2549_v34, 8 }
 0x588   : > { %v2416_v9 = vmul.f32 %v2415_v32, %v2413_v7  ;;  %v2711_v35 = vsub.s32 0, %v5041_v59  ;;  %v2557_v58 = vshrl.u32 %v3611_v31, %v2556_v3  ;;  %vm2573_vm9 = vcmp.lt.s32.totalorder %v5023_v36, 1 }
 0x589   : > { %v2572_v13 = vor.u32 %v2571_v40, %v2570_v29  ;;  %vm2576_vm10 = vcmp.lt.s32.totalorder %v5023_v36, 4  ;;  %vm2574_vm11 = vcmp.lt.s32.totalorder %v5023_v36, 2  ;;  %vm2575_vm12 = vcmp.lt.s32.totalorder %v5023_v36, 3 }
 0x58a   : > { %v2417_v21 = vxor.u32 2147483648, %v2416_v9  ;;  %v3108_v39 = vmin.u32 %v2711_v35, %v5041_v59  ;;  %v2578_v26 = vsel %vm2576_vm10, %v2566_v55, 2102212464  ;;  %v2577_v12 = vsel %vm2573_vm9, %v2557_v58, %v2560_v20 }
 0x58b   : > { %v2581_v60 = vsel %vm2573_vm9, %v2560_v20, %v2563_v63  ;;  %v2582_v34 = vsel %vm2576_vm10, %v2569_v1, 920167782  ;;  %v2585_v28 = vsel %vm2573_vm9, %v2563_v63, %v2566_v55  ;;  %v2579_v5 = vsel %vm2575_vm12, %v2563_v63, %v2578_v26 }
 0x58c   : > { %v2418_v30 = vsel %vm2335_vm3, %v2417_v21, %v2416_v9  ;;  %v2713_v46 = vclz %v3108_v39  ;;  %v2583_v4 = vsel %vm2575_vm12, %v2566_v55, %v2582_v34  ;;  %v2586_v15 = vsel %vm2576_vm10, %v2572_v13, 1326507024 }
 0x58d   : > { %v2421_v3 = vsel %vm5013_vm8, %v4840_v23, %v2418_v30  ;;  %v2584_v14 = vsel %vm2574_vm11, %v2581_v60, %v2583_v4  ;;  %v2587_v48 = vsel %vm2575_vm12, %v2569_v1, %v2586_v15  ;;  %v2531_v0 = vand.u32 3, %v5009_v11 }
 0x58e   : > { %3586 = vcosq.f32 %v2421_v3  ;;  %v3109_v27 = vadd.s32 4294967294, %v2713_v46  ;;  %v2588_v57 = vsel %vm2574_vm11, %v2585_v28, %v2587_v48  ;;  %v2580_v50 = vsel %vm2574_vm11, %v2577_v12, %v2579_v5 }
 0x58f   : > { %v3583_v62 = vpop.eup %3582  ;;  %3588 = vsinq.f32 %v2421_v3  ;;  %v5071_v51 = vmul.u32.u64.low %v2589_v10, %v2584_v14  ;;  %v5072_v37 = vmul.u32.u64.high %v2589_v10, %v2584_v14, %v5071_v51  ;;  %v2426_v43 = vadd.s32 3, %v2422_v16 }
 0x590   : > { %v3585_v6 = vpop.eup %3584  ;;  %vm3110_vm13 = vcmp.lt.s32.totalorder %v3109_v27, 0  ;;  %v5077_v45 = vmul.u32.u64.low %v2589_v10, %v2588_v57  ;;  %v5078_v53 = vmul.u32.u64.high %v2589_v10, %v2588_v57, %v5077_v45  ;;  %vm2529_vm15 = vweird.f32 %v4838_v8 }
 0x591   : > { %v2716_v18 = vsel %vm3110_vm13, 0, %v3109_v27  ;;  %v2534_v11 = vxor.u32 2147483648, %v3585_v6  ;;  %vm2533_vm0 = vcmp.eq.s32.totalorder %v2531_v0, 0  ;;  %v2596_v56 = vmul.u32 %v2589_v10, %v2580_v50 }
 0x592   : > { %v2721_v49 = vsub.s32 4294967266, %v2716_v18  ;;  %v2599_v20 = vadd.s32 1, %v5072_v37  ;;  %v2537_v24 = vxor.u32 2147483648, %v3583_v62  ;;  %v2717_v17 = vsub.s32 32, %v2716_v18 }
 0x593   : > { %v2535_v32 = vsel %vm2533_vm0, %v3583_v62, %v2534_v11  ;;  %vm2598_vm1 = vc.u32 %v5078_v53, %v5071_v51  ;;  %vm2536_vm2 = vcmp.eq.s32.totalorder %v2531_v0, 2  ;;  %v2427_v55 = vand.u32 3, %v2426_v43 }
 0x594   : > { %v2722_v7 = vadd.s32 127, %v2721_v49  ;;  %v2600_v36 = vsel %vm2598_vm1, %v2599_v20, %v5072_v37  ;;  %vm2532_vm3 = vcmp.lt.s32.totalorder %v2531_v0, 2  ;;  %v2538_v63 = vsel %vm2536_vm2, %v2537_v24, %v3585_v6 }
 0x595   : > { %v2701_v1 = vadd.s32 %v4981_v25, %v4989_v2  ;;  %v2601_v40 = vadd.s32 %v2600_v36, %v2596_v56  ;;  %v2539_v9 = vsel %vm2532_vm3, %v2535_v32, %v2538_v63  ;;  %vm3618_vm4 = vmmov 0  }
 0x596   : > { %v2723_v29 = vshll.u32 %v2722_v7, 23  ;;  %v2540_v16 = vsel %vm2529_vm15, nan, %v2539_v9  ;;  %v3619_v13 = vmov 0.0   ;;  %vm2432_vm5 = vcmp.eq.s32.totalorder %v2427_v55, 2 }
 0x597   : > { %v2719_v10 = vshrl.u32 %v2701_v1, %v2717_v17  ;;  %v2602_v58 = vadd.s32 536870912, %v2601_v40  ;;  %3313 = vmatprep.mubr.msk.f32.mxu0 %vm3618_vm4, %v3619_v13  ;;  %v2718_v26 = vshll.u32 %v5041_v59, %v2716_v18  ;;  %vm2429_vm6 = vcmp.eq.s32.totalorder %v2427_v55, 0 }
 0x598   : > { %v3587_v35 = vpop.eup %3586  ;;  %v2724_v12 = vor.u32 4788187, %v2723_v29  ;;  %vm2428_vm7 = vcmp.lt.s32.totalorder %v2427_v55, 2  ;;  %vm2425_vm8 = vweird.f32 %v4840_v23  ;;  %vm2647_vm10 = vcmp.lt.s32.totalorder %v4848_v22, 0 }
 0x599   : > { %v3589_v21 = vpop.eup %3588  ;;  %v2433_v39 = vxor.u32 2147483648, %v3587_v35  ;;  %v2603_v60 = vshrl.u32 %v2602_v58, 30  ;;  %v2720_v34 = vor.u32 %v2719_v10, %v2718_v26  ;;  %v2597_v37 = vadd.s32 %v5071_v51, %v5078_v53 }
 0x59a   : > { %v2430_v25 = vxor.u32 2147483648, %v3589_v21  ;;  %v2725_v4 = vand.u32 2147483647, %v2724_v12  ;;  %vm5099_vm11 = vcmp.le.f32.partialorder %v2645_v61, 0.7853982  ;;  %v2731_v20 = vsub.s32 4, %v5027_v19 }
 0x59b   : > { %v2434_v2 = vsel %vm2432_vm5, %v2433_v39, %v3589_v21  ;;  %v2604_v30 = vshll.u32 %v2603_v60, 30  ;;  %v2727_v14 = vcvt.s32.f32 %v2720_v34  ;;  %v2627_v17 = vsub.s32 4, %v2603_v60 }
 0x59c   : > { %v2431_v8 = vsel %vm2429_vm6, %v3587_v35, %v2430_v25  ;;  %v2732_v61 = vsel %vm2647_vm10, %v2731_v20, %v5027_v19  ;;  %vm2543_vm12 = vcmp.lt.s32.totalorder %v4853_v54, 0  ;;  %vm2542_vm13 = vcmp.le.f32.partialorder %v2541_v47, 0.7853982 }
 0x59d   : > { %v2435_v46 = vsel %vm2428_vm7, %v2431_v8, %v2434_v2  ;;  %v2605_v28 = vsub.s32 %v2601_v40, %v2604_v30  ;;  %v2728_v59 = vmul.f32 %v2727_v14, %v2725_v4  ;;  %v2734_v7 = vsel %vm5099_vm11, 0, %v2732_v61 }
 0x59e   : > { %v2436_v3 = vsel %vm2425_vm8, nan, %v2435_v46  ;;  %v2628_v63 = vsel %vm2543_vm12, %v2627_v17, %v2603_v60  ;;  %v2738_v1 = vadd.s32 3, %v2734_v7  ;;  %vm2737_vm4 = vweird.f32 %v4848_v22 }
 0x59f   : > { %v3437_v5 = vpack.c.bf16 %v2540_v16, %v2436_v3  ;;  %v2607_v15 = vsub.s32 0, %v2605_v28  ;;  %v2729_v0 = vxor.u32 2147483648, %v2728_v59  ;;  %v2630_v19 = vsel %vm2542_vm13, 0, %v2628_v63  ;;  %v2754_v3 = vpop.permute.xlu0 %2753 }
 0x5a0   : > { %v2739_v16 = vand.u32 3, %v2738_v1  ;;  %v2634_v35 = vadd.s32 3, %v2630_v19  ;;  %vm2633_vm6 = vweird.f32 %v4853_v54 }
 0x5a1   : > { %3438 = vmatpush3.bf16.msra.mxu0 %v3437_v5  ;;  %v3104_v27 = vmin.u32 %v2607_v15, %v2605_v28  ;;  %v2730_v23 = vsel %vm2647_vm10, %v2729_v0, %v2728_v59 }
 0x5a2   : > { %3439 = vmatprep.subr.bf16.mxu0 %v3617_v42  ;;  %v2733_v11 = vsel %vm5099_vm11, %v4848_v22, %v2730_v23  ;;  %vm2741_vm15 = vcmp.eq.s32.totalorder %v2739_v16, 0  ;;  %vm2744_vm0 = vcmp.eq.s32.totalorder %v2739_v16, 2  ;;  %v2635_v13 = vand.u32 3, %v2634_v35 }
 0x5a3   : > { %v2609_v48 = vclz %v3104_v27  ;;  %3590 = vcosq.f32 %v2733_v11  ;;  %vm2740_vm1 = vcmp.lt.s32.totalorder %v2739_v16, 2 }
 0x5a4   : > { %3592 = vsinq.f32 %v2733_v11  ;;  %vm2640_vm2 = vcmp.eq.s32.totalorder %v2635_v13, 2  ;;  %vm2637_vm3 = vcmp.eq.s32.totalorder %v2635_v13, 0  ;;  %vm2636_vm5 = vcmp.lt.s32.totalorder %v2635_v13, 2 }
 0x5a5   : > { %v3105_v62 = vadd.s32 4294967294, %v2609_v48 }
 0x5a7   : > { %vm3106_vm9 = vcmp.lt.s32.totalorder %v3105_v62, 0 }
 0x5a8   : > { %v2612_v57 = vsel %vm3106_vm9, 0, %v3105_v62 }
 0x5a9   : > { %v2613_v6 = vsub.s32 32, %v2612_v57  ;;  %v2617_v50 = vsub.s32 4294967266, %v2612_v57  ;;  %v2614_v42 = vshll.u32 %v2605_v28, %v2612_v57  ;;  %v2749_v28 = vld [vmem:[%s5172_s10] sm:$0x3] }
 0x5ab   : > { %v2615_v43 = vshrl.u32 %v2597_v37, %v2613_v6  ;;  %v2618_v18 = vadd.s32 127, %v2617_v50 }
 0x5ad   : > { %v2616_v49 = vor.u32 %v2615_v43, %v2614_v42  ;;  %v2619_v56 = vshll.u32 %v2618_v18, 23  ;;  %v3591_v40 = vpop.eup %3590 }
 0x5ae   : > { %v3593_v9 = vpop.eup %3592  ;;  %v2745_v58 = vxor.u32 2147483648, %v3591_v40 }
 0x5af   : > { %v2620_v51 = vor.u32 4788187, %v2619_v56  ;;  %v2623_v32 = vcvt.s32.f32 %v2616_v49  ;;  %v2742_v10 = vxor.u32 2147483648, %v3593_v9 }
 0x5b0   : > { %v2746_v39 = vsel %vm2744_vm0, %v2745_v58, %v3593_v9 }
 0x5b1   : > { %v2621_v53 = vand.u32 2147483647, %v2620_v51  ;;  %v2743_v21 = vsel %vm2741_vm15, %v3591_v40, %v2742_v10 }
 0x5b2   : > { %v2747_v60 = vsel %vm2740_vm1, %v2743_v21, %v2746_v39 }
 0x5b3   : > { %v2624_v24 = vmul.f32 %v2623_v32, %v2621_v53  ;;  %v2748_v30 = vsel %vm2737_vm4, nan, %v2747_v60 }
 0x5b5   : > { %v2625_v36 = vxor.u32 2147483648, %v2624_v24 }
 0x5b7   : > { %v2626_v55 = vsel %vm2543_vm12, %v2625_v36, %v2624_v24 }
 0x5b8   : > { %v2629_v29 = vsel %vm2542_vm13, %v4853_v54, %v2626_v55 }
 0x5b9   : > { %3594 = vcosq.f32 %v2629_v29 }
 0x5ba   : > { %3596 = vsinq.f32 %v2629_v29 }
 0x5c3   : > { %v3595_v47 = vpop.eup %3594 }
 0x5c4   : > { %v3597_v26 = vpop.eup %3596  ;;  %v2641_v12 = vxor.u32 2147483648, %v3595_v47 }
 0x5c5   : > { %v2638_v25 = vxor.u32 2147483648, %v3597_v26 }
 0x5c6   : > { %v2642_v2 = vsel %vm2640_vm2, %v2641_v12, %v3597_v26 }
 0x5c7   : > { %v2639_v34 = vsel %vm2637_vm3, %v3595_v47, %v2638_v25 }
 0x5c8   : > { %v2643_v8 = vsel %vm2636_vm5, %v2639_v34, %v2642_v2 }
 0x5c9   : > { %v2644_v46 = vsel %vm2633_vm6, nan, %v2643_v8 }
 0x5ca   : > { %v3440_v4 = vpack.c.bf16 %v2748_v30, %v2644_v46 }
 0x5cc   : > { %3441 = vmatpush3.bf16.msra.mxu0 %v3440_v4 }
 0x5cf   : > { %3314 = vmatmul.mubr.msk.f32.vlgmr.msra.gmra.mrb[8].mxu0 %vm1048_vm14, %v2749_v28 }
 0x6a2   : > { %v2825_v5 = vpop.f32.mrb[8].mxu0 }
 0x6a3   : > { %v5122_v14 = vadd.f32 %v2825_v5, %v2754_v3  ;;  %v3315_v22 = vpop.f32.mrb[9].mxu0 }
 0x6a5   : > { %v2832_v15 = vand.u32 2139095040, %v5122_v14  ;;  %v2829_v48 = vand.u32 2147483647, %v5122_v14  ;;  %vm2831_vm13 = vcmp.lt.s32.totalorder %v5122_v14, 0  ;;  %vm2921_vm3 = vweird.f32 %v5122_v14 }
 0x6a7   : > { %v2833_v59 = vshrl.u32 %v2832_v15, 23  ;;  %v2836_v57 = vand.u32 8388607, %v2829_v48  ;;  %vm2830_vm15 = vcmp.le.f32.partialorder %v2829_v48, 0.7853982 }
 0x6a9   : > { %v3112_v27 = vadd.s32 4294967169, %v2833_v59  ;;  %v2837_v51 = vor.u32 8388608, %v2836_v57 }
 0x6ab   : > { %v2839_v54 = vadd.s32 1, %v3112_v27 }
 0x6ad   : > { %vm2840_vm7 = vcmp.gt.s32.totalorder %v2839_v54, 0 }
 0x6ae   : > { %v2841_v0 = vsel %vm2840_vm7, %v2839_v54, 0 }
 0x6af   : > { %v2843_v62 = vand.u32 31, %v2841_v0  ;;  %v2842_v37 = vshrl.u32 %v2841_v0, 5 }
 0x6b1   : > { %v2844_v23 = vsub.s32 32, %v2843_v62  ;;  %v2846_v6 = vshll.u32 %v3611_v31, %v2843_v62  ;;  %v2849_v50 = vshll.u32 %v3612_v33, %v2843_v62  ;;  %v2852_v43 = vshll.u32 %v3613_v38, %v2843_v62 }
 0x6b2   : > { %v2855_v11 = vshll.u32 %v3614_v41, %v2843_v62  ;;  %v2858_v56 = vshll.u32 %v3615_v44, %v2843_v62  ;;  %vm2861_vm14 = vcmp.lt.s32.totalorder %v2842_v37, 1  ;;  %vm2864_vm8 = vcmp.lt.s32.totalorder %v2842_v37, 4 }
 0x6b3   : > { %v2847_v45 = vshrl.u32 %v3612_v33, %v2844_v23  ;;  %v2850_v42 = vshrl.u32 %v3613_v38, %v2844_v23  ;;  %v2853_v18 = vshrl.u32 %v3614_v41, %v2844_v23  ;;  %v2856_v49 = vshrl.u32 %v3615_v44, %v2844_v23 }
 0x6b4   : > { %v2859_v20 = vshrl.u32 %v3616_v52, %v2844_v23  ;;  %v2845_v36 = vshrl.u32 %v3611_v31, %v2844_v23  ;;  %vm2863_vm9 = vcmp.lt.s32.totalorder %v2842_v37, 3  ;;  %vm2862_vm10 = vcmp.lt.s32.totalorder %v2842_v37, 2 }
 0x6b5   : > { %v2848_v53 = vor.u32 %v2847_v45, %v2846_v6  ;;  %v2851_v32 = vor.u32 %v2850_v42, %v2849_v50  ;;  %v2854_v61 = vor.u32 %v2853_v18, %v2852_v43  ;;  %v2857_v24 = vor.u32 %v2856_v49, %v2855_v11 }
 0x6b6   : > { %v2860_v33 = vor.u32 %v2859_v20, %v2858_v56  ;;  %v2877_v52 = vshll.u32 %v2837_v51, 8 }
 0x6b7   : > { %v2866_v17 = vsel %vm2864_vm8, %v2854_v61, 2102212464  ;;  %v2869_v38 = vsel %vm2861_vm14, %v2848_v53, %v2851_v32  ;;  %v2873_v7 = vsel %vm2861_vm14, %v2851_v32, %v2854_v61  ;;  %v2870_v41 = vsel %vm2864_vm8, %v2857_v24, 920167782 }
 0x6b8   : > { %v2874_v55 = vsel %vm2864_vm8, %v2860_v33, 1326507024  ;;  %v2871_v44 = vsel %vm2863_vm9, %v2854_v61, %v2870_v41  ;;  %v2865_v1 = vsel %vm2861_vm14, %v2845_v36, %v2848_v53  ;;  %v2867_v29 = vsel %vm2863_vm9, %v2851_v32, %v2866_v17 }
 0x6b9   : > { %v2875_v63 = vsel %vm2863_vm9, %v2857_v24, %v2874_v55  ;;  %v2872_v40 = vsel %vm2862_vm10, %v2869_v38, %v2871_v44  ;;  %v2868_v58 = vsel %vm2862_vm10, %v2865_v1, %v2867_v29 }
 0x6ba   : > { %v2876_v9 = vsel %vm2862_vm10, %v2873_v7, %v2875_v63  ;;  %v5142_v35 = vmul.u32.u64.low %v2877_v52, %v2872_v40  ;;  %v5143_v10 = vmul.u32.u64.high %v2877_v52, %v2872_v40, %v5142_v35  ;;  %v2884_v13 = vmul.u32 %v2877_v52, %v2868_v58 }
 0x6bb   : > { %v5139_v19 = vmul.u32.u64.low %v2877_v52, %v2876_v9  ;;  %v5140_v16 = vmul.u32.u64.high %v2877_v52, %v2876_v9, %v5139_v19 }
 0x6bc   : > { %v2887_v31 = vadd.s32 1, %v5143_v10 }
 0x6bd   : > { %vm2886_vm11 = vc.u32 %v5140_v16, %v5142_v35  ;;  %v2885_v46 = vadd.s32 %v5142_v35, %v5140_v16 }
 0x6be   : > { %v2888_v21 = vsel %vm2886_vm11, %v2887_v31, %v5143_v10 }
 0x6bf   : > { %v2889_v39 = vadd.s32 %v2888_v21, %v2884_v13 }
 0x6c1   : > { %v2890_v47 = vadd.s32 536870912, %v2889_v39 }
 0x6c3   : > { %v2891_v26 = vshrl.u32 %v2890_v47, 30 }
 0x6c5   : > { %v2892_v12 = vshll.u32 %v2891_v26, 30  ;;  %v2915_v57 = vsub.s32 4, %v2891_v26 }
 0x6c7   : > { %v2893_v60 = vsub.s32 %v2889_v39, %v2892_v12  ;;  %v2916_v6 = vsel %vm2831_vm13, %v2915_v57, %v2891_v26 }
 0x6c8   : > { %v2918_v45 = vsel %vm2830_vm15, 0, %v2916_v6 }
 0x6c9   : > { %v2895_v25 = vsub.s32 0, %v2893_v60  ;;  %v2922_v42 = vadd.s32 3, %v2918_v45 }
 0x6cb   : > { %v3113_v2 = vmin.u32 %v2895_v25, %v2893_v60  ;;  %v2923_v43 = vand.u32 3, %v2922_v42 }
 0x6cd   : > { %v2897_v34 = vclz %v3113_v2  ;;  %vm2928_vm0 = vcmp.eq.s32.totalorder %v2923_v43, 2  ;;  %vm2925_vm1 = vcmp.eq.s32.totalorder %v2923_v43, 0  ;;  %vm2924_vm2 = vcmp.lt.s32.totalorder %v2923_v43, 2 }
 0x6cf   : > { %v3114_v30 = vadd.s32 4294967294, %v2897_v34 }
 0x6d1   : > { %vm3115_vm12 = vcmp.lt.s32.totalorder %v3114_v30, 0 }
 0x6d2   : > { %v2900_v8 = vsel %vm3115_vm12, 0, %v3114_v30 }
 0x6d3   : > { %v2901_v4 = vsub.s32 32, %v2900_v8  ;;  %v2905_v28 = vsub.s32 4294967266, %v2900_v8  ;;  %v2902_v3 = vshll.u32 %v2893_v60, %v2900_v8 }
 0x6d5   : > { %v2903_v5 = vshrl.u32 %v2885_v46, %v2901_v4  ;;  %v2906_v22 = vadd.s32 127, %v2905_v28 }
 0x6d7   : > { %v2904_v15 = vor.u32 %v2903_v5, %v2902_v3  ;;  %v2907_v59 = vshll.u32 %v2906_v22, 23 }
 0x6d9   : > { %v2908_v27 = vor.u32 4788187, %v2907_v59  ;;  %v2911_v0 = vcvt.s32.f32 %v2904_v15 }
 0x6db   : > { %v2909_v54 = vand.u32 2147483647, %v2908_v27 }
 0x6dd   : > { %v2912_v62 = vmul.f32 %v2911_v0, %v2909_v54 }
 0x6df   : > { %v2913_v23 = vxor.u32 2147483648, %v2912_v62 }
 0x6e1   : > { %v2914_v37 = vsel %vm2831_vm13, %v2913_v23, %v2912_v62 }
 0x6e2   : > { %v2917_v50 = vsel %vm2830_vm15, %v5122_v14, %v2914_v37 }
 0x6e3   : > { %3598 = vcosq.f32 %v2917_v50 }
 0x6e4   : > { %3600 = vsinq.f32 %v2917_v50 }
 0x6ed   : > { %v3599_v18 = vpop.eup %3598 }
 0x6ee   : > { %v3601_v11 = vpop.eup %3600  ;;  %v2929_v49 = vxor.u32 2147483648, %v3599_v18 }
 0x6ef   : > { %v2926_v56 = vxor.u32 2147483648, %v3601_v11 }
 0x6f0   : > { %v2930_v20 = vsel %vm2928_vm0, %v2929_v49, %v3601_v11 }
 0x6f1   : > { %v2927_v48 = vsel %vm2925_vm1, %v3599_v18, %v2926_v56 }
 0x6f2   : > { %v2931_v51 = vsel %vm2924_vm2, %v2927_v48, %v2930_v20 }
 0x6f3   : > { %v2932_v53 = vsel %vm2921_vm3, nan, %v2931_v51 }
 0x6f4   : > { %2933 = vst [vmem:[%s413_s28] sm:$0x3] %v2932_v53 }
 0x6f5 PF: > { %s22_s21 = sadd.s32 1, %s3608_s21  }
 0x6f6   : > { %p19_p5 = scmp.ge.s32.totalorder %s22_s21, 5  }
 0x6f8   :  { %21 = sbr.rel (!%p19_p5) target bundleno = 1 (0x1), region = 98 }

</bundles_post_ra>
